<compile_context>
chip_gen: v7x
topology: tpu7x:2x2x1
jax: 0.10.0
libtpu: 0.0.40
codegen_flags: <defaults>
</compile_context>

<pallas_src>
import functools
import math

import jax
import jax.numpy as jnp
from jax.experimental import pallas as pl
from jax.experimental.pallas import tpu as pltpu


# ----------------------------------------------------------------------------
# helpers (parameter prep / BN folding)
# ----------------------------------------------------------------------------
def get_divisible_by(num, divisible_by):
    """Same semantics as hp.get_divisible_by for the values used here."""
    ret = int(num)
    if divisible_by > 0 and num % divisible_by != 0:
        ret = int((int(num) + divisible_by / 2) // divisible_by * divisible_by)
    return ret


def fold_bn(gamma, beta, mean, var, eps=1e-5):
    scale = gamma / jnp.sqrt(var + eps)
    bias = beta - mean * scale
    return scale, bias


def init_conv_bn(key, w_shape, c_out):
    """Deterministic synthetic conv weight + eval-mode BN folded to scale/bias."""
    k1, k2, k3, k4, k5 = jax.random.split(key, 5)
    w = jax.random.normal(k1, w_shape, jnp.float32) * 0.1
    gamma = 1.0 + 0.1 * jax.random.normal(k2, (c_out,), jnp.float32)
    beta = 0.1 * jax.random.normal(k3, (c_out,), jnp.float32)
    mean = 0.1 * jax.random.normal(k4, (c_out,), jnp.float32)
    var = jnp.abs(jax.random.normal(k5, (c_out,), jnp.float32)) + 0.5
    scale, bias = fold_bn(gamma, beta, mean, var)
    return w, scale, bias


# ----------------------------------------------------------------------------
# fused Pallas kernel
# ----------------------------------------------------------------------------
def _dw3x3_blocks(src_ref, C, taps, scale, bias, H, W, RB, emit_block):
    """3x3 stride-1 depthwise + folded-BN + ReLU over a zero-halo padded VMEM
    scratch ref (shape (H+2, Wp>=W+2, >=C)).

    Processes RB output rows per iteration (one sublane tile worth of rows) and
    hands each (rb, W, C) f32 block to emit_block(h0, rb, block).
    """
    # TODO(synk): at real H use lax.fori_loop(..., unroll=True) over the row
    # blocks instead of a static Python loop (bounded live ranges / code size).
    for h0 in range(0, H, RB):
        rb = min(RB, H - h0)
        acc = jnp.zeros((rb, W, C), jnp.float32)
        for kh in range(3):
            for kw in range(3):
                acc = acc + (src_ref[h0 + kh:h0 + kh + rb, kw:kw + W, 0:C]
                             * taps[kh * 3 + kw])
        emit_block(h0, rb, jnp.maximum(acc * scale + bias, 0.0))


def _ghost_bottleneck_kernel(
        x_ref, pw1_w_ref, pw2_w_ref, dww_ref, sb_ref,
        o_ref,
        g1p_ref, dm_ref, g2p_ref,
        *, H, W, Cin, I1, E, I2, Cout, RB, res_conn):
    f32, bf16 = jnp.float32, jnp.bfloat16
    del Cin  # implicit in x_ref's block shape
    n1, n2 = E - I1, Cout - I2

    # packed scale/bias channel offsets (sb_ref row 0 = scale, row 1 = bias)
    o_pw1, o_dw1, o_dwm = 0, I1, 2 * I1
    o_pw2, o_dw2 = 2 * I1 + E, 2 * I1 + E + I2
    # packed depthwise-weight channel offsets (dww_ref is (9, I1+E+I2))
    d_dw1, d_dwm, d_dw2 = 0, I1, I1 + E

    def sb(off, c):
        return sb_ref[0:1, off:off + c], sb_ref[1:2, off:off + c]

    def taps(off, c):
        # hoisted once per stage: JAX does not CSE broadcast_in_dim, so don't
        # re-materialise the tap broadcasts inside the row-block loop.
        return [jnp.broadcast_to(dww_ref[k:k + 1, off:off + c], (W, c))
                for k in range(9)]

    # ---- zero ONLY the halo ring of the padded scratches ---------------------
    # (interior rows/cols are fully overwritten below; full-scratch zeroing was
    #  an extra pass over the largest buffer.  Must run every grid step: with
    #  "parallel" semantics a core may never execute program_id 0.)
    for ref in (g1p_ref, g2p_ref):
        Wp, C = ref.shape[1], ref.shape[2]
        zrow = jnp.zeros((1, Wp, C), f32)
        ref[0:1] = zrow
        ref[H + 1:H + 2] = zrow
        zcol = jnp.zeros((H, 1, C), f32)
        ref[1:H + 1, 0:1, :] = zcol
        ref[1:H + 1, W + 1:W + 2, :] = zcol

    # ---- GhostModule #1: primary 1x1 conv + BN + ReLU (MXU, bf16 -> f32) -----
    x2d = x_ref[0]                                            # (H*W, Cin) bf16
    s, b = sb(o_pw1, I1)
    pw1 = jnp.dot(x2d, pw1_w_ref[...], preferred_element_type=f32)
    pw1 = jnp.maximum(pw1 * s + b, 0.0)                       # (H*W, I1) f32
    # ghost concat in place: pw half -> channels [0:I1) of the padded scratch,
    # ONE strided store (reshape only regroups sublanes; no per-row copy loop).
    g1p_ref[1:H + 1, 1:W + 1, 0:I1] = pw1.reshape(H, W, I1)

    # ---- GhostModule #1: cheap 3x3 depthwise -> channels [I1:E) in place -----
    s, b = sb(o_dw1, I1)
    t = taps(d_dw1, I1)

    def emit_g1(h0, rb, blk):                                 # blk: (rb, W, I1)
        v = blk if n1 == I1 else blk[:, :, 0:n1]
        g1p_ref[h0 + 1:h0 + 1 + rb, 1:W + 1, I1:E] = v

    _dw3x3_blocks(g1p_ref, I1, t, s, b, H, W, RB, emit_g1)

    # ---- main 3x3 depthwise (groups = E) + BN + ReLU --------------------------
    # stored as bf16: its only consumer is the bf16 MXU matmul of the pwl conv.
    s, b = sb(o_dwm, E)
    t = taps(d_dwm, E)

    def emit_main(h0, rb, blk):                               # blk: (rb, W, E)
        dm_ref[h0 * W:(h0 + rb) * W, :] = blk.reshape(rb * W, E).astype(bf16)

    _dw3x3_blocks(g1p_ref, E, t, s, b, H, W, RB, emit_main)

    # ---- GhostModule #2 (pwl): primary 1x1 conv + BN + ReLU -------------------
    s, b = sb(o_pw2, I2)
    pw2 = jnp.dot(dm_ref[...], pw2_w_ref[...], preferred_element_type=f32)
    pw2 = jnp.maximum(pw2 * s + b, 0.0)                       # (H*W, I2) f32
    g2p_ref[1:H + 1, 1:W + 1, :] = pw2.reshape(H, W, I2)      # one strided store

    # ---- GhostModule #2: cheap 3x3 depthwise ----------------------------------
    s, b = sb(o_dw2, I2)
    t = taps(d_dw2, I2)
    dw2_blocks = []

    def emit_g2(h0, rb, blk):                                 # blk: (rb, W, I2)
        v = blk if n2 == I2 else blk[:, :, 0:n2]
        dw2_blocks.append(v.reshape(rb * W, n2))

    _dw3x3_blocks(g2p_ref, I2, t, s, b, H, W, RB, emit_g2)
    dw2 = (dw2_blocks[0] if len(dw2_blocks) == 1
           else jnp.concatenate(dw2_blocks, axis=0))          # (H*W, n2)

    # ---- ghost concat + fused residual + ONE full-tile output store ----------
    out = jnp.concatenate([pw2, dw2], axis=-1)                # (H*W, Cout)
    if res_conn:
        out = out + x2d.astype(f32)        # Cin == Cout when res_conn; hoisted load
    # At real GhostNet channel counts (Cout % 128 == 0) this single store is
    # fully lane-dense / unmasked.
    o_ref[0] = out


# ----------------------------------------------------------------------------
# public forward (NCHW in / NCHW out, like the PyTorch module)
# ----------------------------------------------------------------------------
def ghost_bottleneck_forward(x_nchw, p, cfg):
    N, Cin, H, W = x_nchw.shape
    E, Cout = cfg["exp_channels"], cfg["out_channels"]
    I1, I2 = cfg["init1"], cfg["init2"]
    res_conn = cfg["res_conn"]
    if res_conn:
        assert Cin == Cout

    Wp = ((W + 2 + 7) // 8) * 8        # sublane-aligned padded scratch width
    RB = min(8, H)                     # depthwise row-block (one sublane tile)

    # NCHW -> NHWC once at the module boundary (channels -> TPU lanes); spatial
    # flattened to (N, H*W, C) so the 1x1 convs are plain MXU matmuls.
    # Activation carried as bf16: it is only the MXU LHS + the residual.
    x = jnp.transpose(x_nchw, (0, 2, 3, 1)).reshape(N, H * W, Cin)
    x = x.astype(jnp.bfloat16)

    # Pack the 14 tiny weight/scale/bias tensors into 4 slabs so each grid step
    # manages 5 DMA windows instead of 16.
    dww = jnp.concatenate([p["dw1_w"], p["dwm_w"], p["dw2_w"]], axis=1)  # (9, I1+E+I2)
    sb = jnp.stack([
        jnp.concatenate([p["pw1_s"], p["dw1_s"], p["dwm_s"], p["pw2_s"], p["dw2_s"]]),
        jnp.concatenate([p["pw1_b"], p["dw1_b"], p["dwm_b"], p["pw2_b"], p["dw2_b"]]),
    ], axis=0)                                                           # (2, 2I1+E+2I2)

    kern = functools.partial(
        _ghost_bottleneck_kernel, H=H, W=W, Cin=Cin, I1=I1, E=E, I2=I2,
        Cout=Cout, RB=RB, res_conn=res_conn)

    full2d = lambda n: (0, 0)
    out = pl.pallas_call(
        kern,
        # TODO(synk): at real image sizes add an H-tile grid axis (with real
        # neighbour-row halos) so each v7x TensorCore runs several grid steps
        # and the per-step working set stays within the scoped-VMEM budget.
        grid=(N,),
        in_specs=[
            pl.BlockSpec((1, H * W, Cin), lambda n: (n, 0, 0)),
            pl.BlockSpec((Cin, I1), full2d),
            pl.BlockSpec((E, I2), full2d),
            pl.BlockSpec(dww.shape, full2d),
            pl.BlockSpec(sb.shape, full2d),
        ],
        out_specs=pl.BlockSpec((1, H * W, Cout), lambda n: (n, 0, 0)),
        out_shape=jax.ShapeDtypeStruct((N, H * W, Cout), jnp.float32),
        scratch_shapes=[
            pltpu.VMEM((H + 2, Wp, E), jnp.float32),    # ghost-1 (pw | cheap dw), padded
            pltpu.VMEM((H * W, E), jnp.bfloat16),       # main-dw out (bf16: MXU-only consumer)
            pltpu.VMEM((H + 2, Wp, I2), jnp.float32),   # pwl pw half, padded
        ],
        compiler_params=pltpu.CompilerParams(
            dimension_semantics=("parallel",),
            vmem_limit_bytes=32 * 1024 * 1024),
    )(x, p["pw1_w"], p["pw2_w"], dww, sb)

    # back to NCHW only at the module boundary
    return jnp.transpose(out.reshape(N, H, W, Cout), (0, 3, 1, 2))


# ----------------------------------------------------------------------------
# pure-jnp reference (same math incl. the kernel's bf16 rounding points)
# ----------------------------------------------------------------------------
def _ref_pw(x, w_bf16, s, b):
    y = jnp.einsum("nhwc,cd->nhwd", x, w_bf16.astype(jnp.float32))
    return jnp.maximum(y * s + b, 0.0)


def _ref_dw(x, w9, s, b):
    N, H, W, C = x.shape
    xp = jnp.pad(x, ((0, 0), (1, 1), (1, 1), (0, 0)))
    acc = jnp.zeros_like(x)
    for kh in range(3):
        for kw in range(3):
            acc = acc + xp[:, kh:kh + H, kw:kw + W, :] * w9[kh * 3 + kw]
    return jnp.maximum(acc * s + b, 0.0)


def ghost_bottleneck_reference(x_nchw, p, cfg):
    E, Cout = cfg["exp_channels"], cfg["out_channels"]
    x = jnp.transpose(x_nchw, (0, 2, 3, 1))
    xb = x.astype(jnp.bfloat16).astype(jnp.float32)      # kernel carries x in bf16
    # GhostModule 1
    pw = _ref_pw(xb, p["pw1_w"], p["pw1_s"], p["pw1_b"])
    dw = _ref_dw(pw, p["dw1_w"], p["dw1_s"], p["dw1_b"])
    y = jnp.concatenate([pw, dw], axis=-1)[..., :E]
    # main depthwise
    y = _ref_dw(y, p["dwm_w"], p["dwm_s"], p["dwm_b"])
    y = y.astype(jnp.bfloat16).astype(jnp.float32)       # kernel stores dm in bf16
    # GhostModule 2 (pwl)
    pw = _ref_pw(y, p["pw2_w"], p["pw2_s"], p["pw2_b"])
    dw = _ref_dw(pw, p["dw2_w"], p["dw2_s"], p["dw2_b"])
    y = jnp.concatenate([pw, dw], axis=-1)[..., :Cout]
    if cfg["res_conn"]:
        y = y + xb
    return jnp.transpose(y, (0, 3, 1, 2))


# ----------------------------------------------------------------------------
# main
# ----------------------------------------------------------------------------
if __name__ == "__main__":
    N, Cin, H, W = 2, 8, 16, 16
    Cout_req = 8
    expansion, ratio, stride = 6, 2, 1

    exp_channels = get_divisible_by(Cin * expansion, ratio)   # 48
    out_channels = get_divisible_by(Cout_req, ratio)          # 8
    I1 = math.ceil(exp_channels / ratio)                      # 24
    I2 = math.ceil(out_channels / ratio)                      # 4
    res_conn = (Cin == out_channels) and (stride == 1)        # True

    cfg = dict(exp_channels=exp_channels, out_channels=out_channels,
               init1=I1, init2=I2, res_conn=res_conn)

    key = jax.random.PRNGKey(0)
    kx, k0, k1, k2, k3, k4 = jax.random.split(key, 6)

    # ---- parameters (deterministic synthetic init, eval-mode BN folded) ----
    pw1_w, pw1_s, pw1_b = init_conv_bn(k0, (Cin, I1), I1)            # pw primary 1x1
    dw1_w, dw1_s, dw1_b = init_conv_bn(k1, (3, 3, I1), I1)           # pw cheap 3x3 dw
    dwm_w, dwm_s, dwm_b = init_conv_bn(k2, (3, 3, exp_channels), exp_channels)
    pw2_w, pw2_s, pw2_b = init_conv_bn(k3, (exp_channels, I2), I2)   # pwl primary 1x1
    dw2_w, dw2_s, dw2_b = init_conv_bn(k4, (3, 3, I2), I2)           # pwl cheap 3x3 dw

    params = dict(
        pw1_w=pw1_w.astype(jnp.bfloat16),                            # MXU in bf16
        pw1_s=pw1_s, pw1_b=pw1_b,
        dw1_w=dw1_w.reshape(9, I1), dw1_s=dw1_s, dw1_b=dw1_b,
        dwm_w=dwm_w.reshape(9, exp_channels), dwm_s=dwm_s, dwm_b=dwm_b,
        pw2_w=pw2_w.astype(jnp.bfloat16),
        pw2_s=pw2_s, pw2_b=pw2_b,
        dw2_w=dw2_w.reshape(9, I2), dw2_s=dw2_s, dw2_b=dw2_b,
    )

    # ---- input (NCHW, like PyTorch) ----
    x = jax.random.normal(kx, (N, Cin, H, W), jnp.float32)

    out = jax.block_until_ready(ghost_bottleneck_forward(x, params, cfg))
    ref = jax.block_until_ready(ghost_bottleneck_reference(x, params, cfg))

    assert out.shape == (N, out_channels, H, W), out.shape
    err = float(jnp.max(jnp.abs(out - ref)))
    # kernel and reference share the same bf16 rounding points; only MXU vs XLA
    # f32 accumulation-order noise remains.
    assert err < 1e-2, err

    print("KERNEL_OK")
</pallas_src>

<mosaic_0001>
module attributes {stable_mosaic.version = 11 : i64} {
  func.func @_ghost_bottleneck_kernel(%arg0: i32, %arg1: memref<1x256x8xbf16, #tpu.memory_space<vmem>>, %arg2: memref<8x24xbf16, #tpu.memory_space<vmem>>, %arg3: memref<48x4xbf16, #tpu.memory_space<vmem>>, %arg4: memref<9x76xf32, #tpu.memory_space<vmem>>, %arg5: memref<2x104xf32, #tpu.memory_space<vmem>>, %arg6: memref<1x256x8xf32, #tpu.memory_space<vmem>>, %arg7: memref<18x24x48xf32, #tpu.memory_space<vmem>>, %arg8: memref<256x48xbf16, #tpu.memory_space<vmem>>, %arg9: memref<18x24x4xf32, #tpu.memory_space<vmem>>) attributes {dimension_semantics = [#tpu.dimension_semantics<parallel>], iteration_bounds = array<i64: 2>, scalar_prefetch = 0 : i64, scratch_operands = 3 : i64, tpu.core_type = #tpu.core_type<tc>, window_params = [{transform_indices = @transform_0, window_bounds = array<i64: 1, 256, 8>}, {pipeline_mode = #tpu.pipeline_mode<synchronous>, transform_indices = @transform_1, window_bounds = array<i64: 8, 24>}, {pipeline_mode = #tpu.pipeline_mode<synchronous>, transform_indices = @transform_2, window_bounds = array<i64: 48, 4>}, {pipeline_mode = #tpu.pipeline_mode<synchronous>, transform_indices = @transform_3, window_bounds = array<i64: 9, 76>}, {pipeline_mode = #tpu.pipeline_mode<synchronous>, transform_indices = @transform_4, window_bounds = array<i64: 2, 104>}, {transform_indices = @transform_5, window_bounds = array<i64: 1, 256, 8>}]} {
    %cst = arith.constant 0.000000e+00 : f32
    %0 = vector.broadcast %cst : f32 to vector<1x24x48xf32>
    %c0 = arith.constant 0 : index
    %c0_0 = arith.constant 0 : index
    %c0_1 = arith.constant 0 : index
    %1 = vector.load %arg7[%c0, %c0_0, %c0_1] : memref<18x24x48xf32, #tpu.memory_space<vmem>>, vector<1x24x48xf32>
    tpu.vector_store %arg7[%c0, %c0_0, %c0_1], %0 {strides = array<i32>} : memref<18x24x48xf32, #tpu.memory_space<vmem>>, vector<1x24x48xf32>,
    %c17 = arith.constant 17 : index
    %c0_2 = arith.constant 0 : index
    %c0_3 = arith.constant 0 : index
    %2 = vector.load %arg7[%c17, %c0_2, %c0_3] : memref<18x24x48xf32, #tpu.memory_space<vmem>>, vector<1x24x48xf32>
    tpu.vector_store %arg7[%c17, %c0_2, %c0_3], %0 {strides = array<i32>} : memref<18x24x48xf32, #tpu.memory_space<vmem>>, vector<1x24x48xf32>,
    %cst_4 = arith.constant 0.000000e+00 : f32
    %3 = vector.broadcast %cst_4 : f32 to vector<16x1x48xf32>
    %c1 = arith.constant 1 : index
    %c0_5 = arith.constant 0 : index
    %c0_6 = arith.constant 0 : index
    %4 = vector.load %arg7[%c1, %c0_5, %c0_6] : memref<18x24x48xf32, #tpu.memory_space<vmem>>, vector<16x1x48xf32>
    tpu.vector_store %arg7[%c1, %c0_5, %c0_6], %3 {strides = array<i32>} : memref<18x24x48xf32, #tpu.memory_space<vmem>>, vector<16x1x48xf32>,
    %c1_7 = arith.constant 1 : index
    %c17_8 = arith.constant 17 : index
    %c0_9 = arith.constant 0 : index
    %5 = vector.load %arg7[%c1_7, %c17_8, %c0_9] : memref<18x24x48xf32, #tpu.memory_space<vmem>>, vector<16x1x48xf32>
    tpu.vector_store %arg7[%c1_7, %c17_8, %c0_9], %3 {strides = array<i32>} : memref<18x24x48xf32, #tpu.memory_space<vmem>>, vector<16x1x48xf32>,
    %cst_10 = arith.constant 0.000000e+00 : f32
    %6 = vector.broadcast %cst_10 : f32 to vector<1x24x4xf32>
    %c0_11 = arith.constant 0 : index
    %c0_12 = arith.constant 0 : index
    %c0_13 = arith.constant 0 : index
    %7 = vector.load %arg9[%c0_11, %c0_12, %c0_13] : memref<18x24x4xf32, #tpu.memory_space<vmem>>, vector<1x24x4xf32>
    tpu.vector_store %arg9[%c0_11, %c0_12, %c0_13], %6 {strides = array<i32>} : memref<18x24x4xf32, #tpu.memory_space<vmem>>, vector<1x24x4xf32>,
    %c17_14 = arith.constant 17 : index
    %c0_15 = arith.constant 0 : index
    %c0_16 = arith.constant 0 : index
    %8 = vector.load %arg9[%c17_14, %c0_15, %c0_16] : memref<18x24x4xf32, #tpu.memory_space<vmem>>, vector<1x24x4xf32>
    tpu.vector_store %arg9[%c17_14, %c0_15, %c0_16], %6 {strides = array<i32>} : memref<18x24x4xf32, #tpu.memory_space<vmem>>, vector<1x24x4xf32>,
    %cst_17 = arith.constant 0.000000e+00 : f32
    %9 = vector.broadcast %cst_17 : f32 to vector<16x1x4xf32>
    %c1_18 = arith.constant 1 : index
    %c0_19 = arith.constant 0 : index
    %c0_20 = arith.constant 0 : index
    %10 = vector.load %arg9[%c1_18, %c0_19, %c0_20] : memref<18x24x4xf32, #tpu.memory_space<vmem>>, vector<16x1x4xf32>
    tpu.vector_store %arg9[%c1_18, %c0_19, %c0_20], %9 {strides = array<i32>} : memref<18x24x4xf32, #tpu.memory_space<vmem>>, vector<16x1x4xf32>,
    %c1_21 = arith.constant 1 : index
    %c17_22 = arith.constant 17 : index
    %c0_23 = arith.constant 0 : index
    %11 = vector.load %arg9[%c1_21, %c17_22, %c0_23] : memref<18x24x4xf32, #tpu.memory_space<vmem>>, vector<16x1x4xf32>
    tpu.vector_store %arg9[%c1_21, %c17_22, %c0_23], %9 {strides = array<i32>} : memref<18x24x4xf32, #tpu.memory_space<vmem>>, vector<16x1x4xf32>,
    %c0_24 = arith.constant 0 : index
    %c0_25 = arith.constant 0 : index
    %c0_26 = arith.constant 0 : index
    %12 = vector.load %arg1[%c0_24, %c0_25, %c0_26] : memref<1x256x8xbf16, #tpu.memory_space<vmem>>, vector<1x256x8xbf16>
    %13 = vector.shape_cast %12 : vector<1x256x8xbf16> to vector<256x8xbf16>
    %c0_27 = arith.constant 0 : index
    %c0_28 = arith.constant 0 : index
    %14 = vector.load %arg5[%c0_27, %c0_28] : memref<2x104xf32, #tpu.memory_space<vmem>>, vector<1x24xf32>
    %c1_29 = arith.constant 1 : index
    %c0_30 = arith.constant 0 : index
    %15 = vector.load %arg5[%c1_29, %c0_30] : memref<2x104xf32, #tpu.memory_space<vmem>>, vector<1x24xf32>
    %c0_31 = arith.constant 0 : index
    %c0_32 = arith.constant 0 : index
    %16 = vector.load %arg2[%c0_31, %c0_32] : memref<8x24xbf16, #tpu.memory_space<vmem>>, vector<8x24xbf16>
    %cst_33 = arith.constant dense<0.000000e+00> : vector<256x24xf32>
    %17 = tpu.matmul %13, %16, %cst_33 {dimension_numbers = #tpu.dot_dimension_numbers<[1], [0], [0], [1], [0, 0, 1, 1], [], []>} : vector<256x8xbf16>, vector<8x24xbf16>, vector<256x24xf32> -> vector<256x24xf32>
    %18 = vector.broadcast %14 : vector<1x24xf32> to vector<256x24xf32>
    %19 = arith.mulf %17, %18 : vector<256x24xf32>
    %20 = vector.broadcast %15 : vector<1x24xf32> to vector<256x24xf32>
    %21 = arith.addf %19, %20 : vector<256x24xf32>
    %cst_34 = arith.constant 0.000000e+00 : f32
    %22 = vector.broadcast %cst_34 : f32 to vector<256x24xf32>
    %23 = arith.maximumf %21, %22 : vector<256x24xf32>
    %24 = vector.shape_cast %23 : vector<256x24xf32> to vector<16x16x24xf32>
    %c1_35 = arith.constant 1 : index
    %c1_36 = arith.constant 1 : index
    %c0_37 = arith.constant 0 : index
    %25 = vector.load %arg7[%c1_35, %c1_36, %c0_37] : memref<18x24x48xf32, #tpu.memory_space<vmem>>, vector<16x16x24xf32>
    tpu.vector_store %arg7[%c1_35, %c1_36, %c0_37], %24 {strides = array<i32>} : memref<18x24x48xf32, #tpu.memory_space<vmem>>, vector<16x16x24xf32>,
    %c0_38 = arith.constant 0 : index
    %c24 = arith.constant 24 : index
    %26 = vector.load %arg5[%c0_38, %c24] : memref<2x104xf32, #tpu.memory_space<vmem>>, vector<1x24xf32>
    %c1_39 = arith.constant 1 : index
    %c24_40 = arith.constant 24 : index
    %27 = vector.load %arg5[%c1_39, %c24_40] : memref<2x104xf32, #tpu.memory_space<vmem>>, vector<1x24xf32>
    %c0_41 = arith.constant 0 : index
    %c0_42 = arith.constant 0 : index
    %28 = vector.load %arg4[%c0_41, %c0_42] : memref<9x76xf32, #tpu.memory_space<vmem>>, vector<1x24xf32>
    %29 = vector.shape_cast %28 : vector<1x24xf32> to vector<1x24xf32>
    %30 = vector.broadcast %29 : vector<1x24xf32> to vector<16x24xf32>
    %c1_43 = arith.constant 1 : index
    %c0_44 = arith.constant 0 : index
    %31 = vector.load %arg4[%c1_43, %c0_44] : memref<9x76xf32, #tpu.memory_space<vmem>>, vector<1x24xf32>
    %32 = vector.shape_cast %31 : vector<1x24xf32> to vector<1x24xf32>
    %33 = vector.broadcast %32 : vector<1x24xf32> to vector<16x24xf32>
    %c2 = arith.constant 2 : index
    %c0_45 = arith.constant 0 : index
    %34 = vector.load %arg4[%c2, %c0_45] : memref<9x76xf32, #tpu.memory_space<vmem>>, vector<1x24xf32>
    %35 = vector.shape_cast %34 : vector<1x24xf32> to vector<1x24xf32>
    %36 = vector.broadcast %35 : vector<1x24xf32> to vector<16x24xf32>
    %c3 = arith.constant 3 : index
    %c0_46 = arith.constant 0 : index
    %37 = vector.load %arg4[%c3, %c0_46] : memref<9x76xf32, #tpu.memory_space<vmem>>, vector<1x24xf32>
    %38 = vector.shape_cast %37 : vector<1x24xf32> to vector<1x24xf32>
    %39 = vector.broadcast %38 : vector<1x24xf32> to vector<16x24xf32>
    %c4 = arith.constant 4 : index
    %c0_47 = arith.constant 0 : index
    %40 = vector.load %arg4[%c4, %c0_47] : memref<9x76xf32, #tpu.memory_space<vmem>>, vector<1x24xf32>
    %41 = vector.shape_cast %40 : vector<1x24xf32> to vector<1x24xf32>
    %42 = vector.broadcast %41 : vector<1x24xf32> to vector<16x24xf32>
    %c5 = arith.constant 5 : index
    %c0_48 = arith.constant 0 : index
    %43 = vector.load %arg4[%c5, %c0_48] : memref<9x76xf32, #tpu.memory_space<vmem>>, vector<1x24xf32>
    %44 = vector.shape_cast %43 : vector<1x24xf32> to vector<1x24xf32>
    %45 = vector.broadcast %44 : vector<1x24xf32> to vector<16x24xf32>
    %c6 = arith.constant 6 : index
    %c0_49 = arith.constant 0 : index
    %46 = vector.load %arg4[%c6, %c0_49] : memref<9x76xf32, #tpu.memory_space<vmem>>, vector<1x24xf32>
    %47 = vector.shape_cast %46 : vector<1x24xf32> to vector<1x24xf32>
    %48 = vector.broadcast %47 : vector<1x24xf32> to vector<16x24xf32>
    %c7 = arith.constant 7 : index
    %c0_50 = arith.constant 0 : index
    %49 = vector.load %arg4[%c7, %c0_50] : memref<9x76xf32, #tpu.memory_space<vmem>>, vector<1x24xf32>
    %50 = vector.shape_cast %49 : vector<1x24xf32> to vector<1x24xf32>
    %51 = vector.broadcast %50 : vector<1x24xf32> to vector<16x24xf32>
    %c8 = arith.constant 8 : index
    %c0_51 = arith.constant 0 : index
    %52 = vector.load %arg4[%c8, %c0_51] : memref<9x76xf32, #tpu.memory_space<vmem>>, vector<1x24xf32>
    %53 = vector.shape_cast %52 : vector<1x24xf32> to vector<1x24xf32>
    %54 = vector.broadcast %53 : vector<1x24xf32> to vector<16x24xf32>
    %cst_52 = arith.constant 0.000000e+00 : f32
    %55 = vector.broadcast %cst_52 : f32 to vector<8x16x24xf32>
    %c0_53 = arith.constant 0 : index
    %c0_54 = arith.constant 0 : index
    %c0_55 = arith.constant 0 : index
    %56 = vector.load %arg7[%c0_53, %c0_54, %c0_55] : memref<18x24x48xf32, #tpu.memory_space<vmem>>, vector<8x16x24xf32>
    %57 = vector.shape_cast %30 : vector<16x24xf32> to vector<1x16x24xf32>
    %58 = vector.broadcast %57 : vector<1x16x24xf32> to vector<8x16x24xf32>
    %59 = arith.mulf %56, %58 : vector<8x16x24xf32>
    %60 = arith.addf %55, %59 : vector<8x16x24xf32>
    %c0_56 = arith.constant 0 : index
    %c1_57 = arith.constant 1 : index
    %c0_58 = arith.constant 0 : index
    %61 = vector.load %arg7[%c0_56, %c1_57, %c0_58] : memref<18x24x48xf32, #tpu.memory_space<vmem>>, vector<8x16x24xf32>
    %62 = vector.shape_cast %33 : vector<16x24xf32> to vector<1x16x24xf32>
    %63 = vector.broadcast %62 : vector<1x16x24xf32> to vector<8x16x24xf32>
    %64 = arith.mulf %61, %63 : vector<8x16x24xf32>
    %65 = arith.addf %60, %64 : vector<8x16x24xf32>
    %c0_59 = arith.constant 0 : index
    %c2_60 = arith.constant 2 : index
    %c0_61 = arith.constant 0 : index
    %66 = vector.load %arg7[%c0_59, %c2_60, %c0_61] : memref<18x24x48xf32, #tpu.memory_space<vmem>>, vector<8x16x24xf32>
    %67 = vector.shape_cast %36 : vector<16x24xf32> to vector<1x16x24xf32>
    %68 = vector.broadcast %67 : vector<1x16x24xf32> to vector<8x16x24xf32>
    %69 = arith.mulf %66, %68 : vector<8x16x24xf32>
    %70 = arith.addf %65, %69 : vector<8x16x24xf32>
    %c1_62 = arith.constant 1 : index
    %c0_63 = arith.constant 0 : index
    %c0_64 = arith.constant 0 : index
    %71 = vector.load %arg7[%c1_62, %c0_63, %c0_64] : memref<18x24x48xf32, #tpu.memory_space<vmem>>, vector<8x16x24xf32>
    %72 = vector.shape_cast %39 : vector<16x24xf32> to vector<1x16x24xf32>
    %73 = vector.broadcast %72 : vector<1x16x24xf32> to vector<8x16x24xf32>
    %74 = arith.mulf %71, %73 : vector<8x16x24xf32>
    %75 = arith.addf %70, %74 : vector<8x16x24xf32>
    %c1_65 = arith.constant 1 : index
    %c1_66 = arith.constant 1 : index
    %c0_67 = arith.constant 0 : index
    %76 = vector.load %arg7[%c1_65, %c1_66, %c0_67] : memref<18x24x48xf32, #tpu.memory_space<vmem>>, vector<8x16x24xf32>
    %77 = vector.shape_cast %42 : vector<16x24xf32> to vector<1x16x24xf32>
    %78 = vector.broadcast %77 : vector<1x16x24xf32> to vector<8x16x24xf32>
    %79 = arith.mulf %76, %78 : vector<8x16x24xf32>
    %80 = arith.addf %75, %79 : vector<8x16x24xf32>
    %c1_68 = arith.constant 1 : index
    %c2_69 = arith.constant 2 : index
    %c0_70 = arith.constant 0 : index
    %81 = vector.load %arg7[%c1_68, %c2_69, %c0_70] : memref<18x24x48xf32, #tpu.memory_space<vmem>>, vector<8x16x24xf32>
    %82 = vector.shape_cast %45 : vector<16x24xf32> to vector<1x16x24xf32>
    %83 = vector.broadcast %82 : vector<1x16x24xf32> to vector<8x16x24xf32>
    %84 = arith.mulf %81, %83 : vector<8x16x24xf32>
    %85 = arith.addf %80, %84 : vector<8x16x24xf32>
    %c2_71 = arith.constant 2 : index
    %c0_72 = arith.constant 0 : index
    %c0_73 = arith.constant 0 : index
    %86 = vector.load %arg7[%c2_71, %c0_72, %c0_73] : memref<18x24x48xf32, #tpu.memory_space<vmem>>, vector<8x16x24xf32>
    %87 = vector.shape_cast %48 : vector<16x24xf32> to vector<1x16x24xf32>
    %88 = vector.broadcast %87 : vector<1x16x24xf32> to vector<8x16x24xf32>
    %89 = arith.mulf %86, %88 : vector<8x16x24xf32>
    %90 = arith.addf %85, %89 : vector<8x16x24xf32>
    %c2_74 = arith.constant 2 : index
    %c1_75 = arith.constant 1 : index
    %c0_76 = arith.constant 0 : index
    %91 = vector.load %arg7[%c2_74, %c1_75, %c0_76] : memref<18x24x48xf32, #tpu.memory_space<vmem>>, vector<8x16x24xf32>
    %92 = vector.shape_cast %51 : vector<16x24xf32> to vector<1x16x24xf32>
    %93 = vector.broadcast %92 : vector<1x16x24xf32> to vector<8x16x24xf32>
    %94 = arith.mulf %91, %93 : vector<8x16x24xf32>
    %95 = arith.addf %90, %94 : vector<8x16x24xf32>
    %c2_77 = arith.constant 2 : index
    %c2_78 = arith.constant 2 : index
    %c0_79 = arith.constant 0 : index
    %96 = vector.load %arg7[%c2_77, %c2_78, %c0_79] : memref<18x24x48xf32, #tpu.memory_space<vmem>>, vector<8x16x24xf32>
    %97 = vector.shape_cast %54 : vector<16x24xf32> to vector<1x16x24xf32>
    %98 = vector.broadcast %97 : vector<1x16x24xf32> to vector<8x16x24xf32>
    %99 = arith.mulf %96, %98 : vector<8x16x24xf32>
    %100 = arith.addf %95, %99 : vector<8x16x24xf32>
    %101 = vector.shape_cast %26 : vector<1x24xf32> to vector<1x1x24xf32>
    %102 = vector.broadcast %101 : vector<1x1x24xf32> to vector<8x16x24xf32>
    %103 = arith.mulf %100, %102 : vector<8x16x24xf32>
    %104 = vector.shape_cast %27 : vector<1x24xf32> to vector<1x1x24xf32>
    %105 = vector.broadcast %104 : vector<1x1x24xf32> to vector<8x16x24xf32>
    %106 = arith.addf %103, %105 : vector<8x16x24xf32>
    %cst_80 = arith.constant 0.000000e+00 : f32
    %107 = vector.broadcast %cst_80 : f32 to vector<8x16x24xf32>
    %108 = arith.maximumf %106, %107 : vector<8x16x24xf32>
    %c1_81 = arith.constant 1 : index
    %c1_82 = arith.constant 1 : index
    %c24_83 = arith.constant 24 : index
    %109 = vector.load %arg7[%c1_81, %c1_82, %c24_83] : memref<18x24x48xf32, #tpu.memory_space<vmem>>, vector<8x16x24xf32>
    tpu.vector_store %arg7[%c1_81, %c1_82, %c24_83], %108 {strides = array<i32>} : memref<18x24x48xf32, #tpu.memory_space<vmem>>, vector<8x16x24xf32>,
    %cst_84 = arith.constant 0.000000e+00 : f32
    %110 = vector.broadcast %cst_84 : f32 to vector<8x16x24xf32>
    %c8_85 = arith.constant 8 : index
    %c0_86 = arith.constant 0 : index
    %c0_87 = arith.constant 0 : index
    %111 = vector.load %arg7[%c8_85, %c0_86, %c0_87] : memref<18x24x48xf32, #tpu.memory_space<vmem>>, vector<8x16x24xf32>
    %112 = vector.shape_cast %30 : vector<16x24xf32> to vector<1x16x24xf32>
    %113 = vector.broadcast %112 : vector<1x16x24xf32> to vector<8x16x24xf32>
    %114 = arith.mulf %111, %113 : vector<8x16x24xf32>
    %115 = arith.addf %110, %114 : vector<8x16x24xf32>
    %c8_88 = arith.constant 8 : index
    %c1_89 = arith.constant 1 : index
    %c0_90 = arith.constant 0 : index
    %116 = vector.load %arg7[%c8_88, %c1_89, %c0_90] : memref<18x24x48xf32, #tpu.memory_space<vmem>>, vector<8x16x24xf32>
    %117 = vector.shape_cast %33 : vector<16x24xf32> to vector<1x16x24xf32>
    %118 = vector.broadcast %117 : vector<1x16x24xf32> to vector<8x16x24xf32>
    %119 = arith.mulf %116, %118 : vector<8x16x24xf32>
    %120 = arith.addf %115, %119 : vector<8x16x24xf32>
    %c8_91 = arith.constant 8 : index
    %c2_92 = arith.constant 2 : index
    %c0_93 = arith.constant 0 : index
    %121 = vector.load %arg7[%c8_91, %c2_92, %c0_93] : memref<18x24x48xf32, #tpu.memory_space<vmem>>, vector<8x16x24xf32>
    %122 = vector.shape_cast %36 : vector<16x24xf32> to vector<1x16x24xf32>
    %123 = vector.broadcast %122 : vector<1x16x24xf32> to vector<8x16x24xf32>
    %124 = arith.mulf %121, %123 : vector<8x16x24xf32>
    %125 = arith.addf %120, %124 : vector<8x16x24xf32>
    %c9 = arith.constant 9 : index
    %c0_94 = arith.constant 0 : index
    %c0_95 = arith.constant 0 : index
    %126 = vector.load %arg7[%c9, %c0_94, %c0_95] : memref<18x24x48xf32, #tpu.memory_space<vmem>>, vector<8x16x24xf32>
    %127 = vector.shape_cast %39 : vector<16x24xf32> to vector<1x16x24xf32>
    %128 = vector.broadcast %127 : vector<1x16x24xf32> to vector<8x16x24xf32>
    %129 = arith.mulf %126, %128 : vector<8x16x24xf32>
    %130 = arith.addf %125, %129 : vector<8x16x24xf32>
    %c9_96 = arith.constant 9 : index
    %c1_97 = arith.constant 1 : index
    %c0_98 = arith.constant 0 : index
    %131 = vector.load %arg7[%c9_96, %c1_97, %c0_98] : memref<18x24x48xf32, #tpu.memory_space<vmem>>, vector<8x16x24xf32>
    %132 = vector.shape_cast %42 : vector<16x24xf32> to vector<1x16x24xf32>
    %133 = vector.broadcast %132 : vector<1x16x24xf32> to vector<8x16x24xf32>
    %134 = arith.mulf %131, %133 : vector<8x16x24xf32>
    %135 = arith.addf %130, %134 : vector<8x16x24xf32>
    %c9_99 = arith.constant 9 : index
    %c2_100 = arith.constant 2 : index
    %c0_101 = arith.constant 0 : index
    %136 = vector.load %arg7[%c9_99, %c2_100, %c0_101] : memref<18x24x48xf32, #tpu.memory_space<vmem>>, vector<8x16x24xf32>
    %137 = vector.shape_cast %45 : vector<16x24xf32> to vector<1x16x24xf32>
    %138 = vector.broadcast %137 : vector<1x16x24xf32> to vector<8x16x24xf32>
    %139 = arith.mulf %136, %138 : vector<8x16x24xf32>
    %140 = arith.addf %135, %139 : vector<8x16x24xf32>
    %c10 = arith.constant 10 : index
    %c0_102 = arith.constant 0 : index
    %c0_103 = arith.constant 0 : index
    %141 = vector.load %arg7[%c10, %c0_102, %c0_103] : memref<18x24x48xf32, #tpu.memory_space<vmem>>, vector<8x16x24xf32>
    %142 = vector.shape_cast %48 : vector<16x24xf32> to vector<1x16x24xf32>
    %143 = vector.broadcast %142 : vector<1x16x24xf32> to vector<8x16x24xf32>
    %144 = arith.mulf %141, %143 : vector<8x16x24xf32>
    %145 = arith.addf %140, %144 : vector<8x16x24xf32>
    %c10_104 = arith.constant 10 : index
    %c1_105 = arith.constant 1 : index
    %c0_106 = arith.constant 0 : index
    %146 = vector.load %arg7[%c10_104, %c1_105, %c0_106] : memref<18x24x48xf32, #tpu.memory_space<vmem>>, vector<8x16x24xf32>
    %147 = vector.shape_cast %51 : vector<16x24xf32> to vector<1x16x24xf32>
    %148 = vector.broadcast %147 : vector<1x16x24xf32> to vector<8x16x24xf32>
    %149 = arith.mulf %146, %148 : vector<8x16x24xf32>
    %150 = arith.addf %145, %149 : vector<8x16x24xf32>
    %c10_107 = arith.constant 10 : index
    %c2_108 = arith.constant 2 : index
    %c0_109 = arith.constant 0 : index
    %151 = vector.load %arg7[%c10_107, %c2_108, %c0_109] : memref<18x24x48xf32, #tpu.memory_space<vmem>>, vector<8x16x24xf32>
    %152 = vector.shape_cast %54 : vector<16x24xf32> to vector<1x16x24xf32>
    %153 = vector.broadcast %152 : vector<1x16x24xf32> to vector<8x16x24xf32>
    %154 = arith.mulf %151, %153 : vector<8x16x24xf32>
    %155 = arith.addf %150, %154 : vector<8x16x24xf32>
    %156 = vector.shape_cast %26 : vector<1x24xf32> to vector<1x1x24xf32>
    %157 = vector.broadcast %156 : vector<1x1x24xf32> to vector<8x16x24xf32>
    %158 = arith.mulf %155, %157 : vector<8x16x24xf32>
    %159 = vector.shape_cast %27 : vector<1x24xf32> to vector<1x1x24xf32>
    %160 = vector.broadcast %159 : vector<1x1x24xf32> to vector<8x16x24xf32>
    %161 = arith.addf %158, %160 : vector<8x16x24xf32>
    %cst_110 = arith.constant 0.000000e+00 : f32
    %162 = vector.broadcast %cst_110 : f32 to vector<8x16x24xf32>
    %163 = arith.maximumf %161, %162 : vector<8x16x24xf32>
    %c9_111 = arith.constant 9 : index
    %c1_112 = arith.constant 1 : index
    %c24_113 = arith.constant 24 : index
    %164 = vector.load %arg7[%c9_111, %c1_112, %c24_113] : memref<18x24x48xf32, #tpu.memory_space<vmem>>, vector<8x16x24xf32>
    tpu.vector_store %arg7[%c9_111, %c1_112, %c24_113], %163 {strides = array<i32>} : memref<18x24x48xf32, #tpu.memory_space<vmem>>, vector<8x16x24xf32>,
    %c0_114 = arith.constant 0 : index
    %c48 = arith.constant 48 : index
    %165 = vector.load %arg5[%c0_114, %c48] : memref<2x104xf32, #tpu.memory_space<vmem>>, vector<1x48xf32>
    %c1_115 = arith.constant 1 : index
    %c48_116 = arith.constant 48 : index
    %166 = vector.load %arg5[%c1_115, %c48_116] : memref<2x104xf32, #tpu.memory_space<vmem>>, vector<1x48xf32>
    %c0_117 = arith.constant 0 : index
    %c24_118 = arith.constant 24 : index
    %167 = vector.load %arg4[%c0_117, %c24_118] : memref<9x76xf32, #tpu.memory_space<vmem>>, vector<1x48xf32>
    %168 = vector.shape_cast %167 : vector<1x48xf32> to vector<1x48xf32>
    %169 = vector.broadcast %168 : vector<1x48xf32> to vector<16x48xf32>
    %c1_119 = arith.constant 1 : index
    %c24_120 = arith.constant 24 : index
    %170 = vector.load %arg4[%c1_119, %c24_120] : memref<9x76xf32, #tpu.memory_space<vmem>>, vector<1x48xf32>
    %171 = vector.shape_cast %170 : vector<1x48xf32> to vector<1x48xf32>
    %172 = vector.broadcast %171 : vector<1x48xf32> to vector<16x48xf32>
    %c2_121 = arith.constant 2 : index
    %c24_122 = arith.constant 24 : index
    %173 = vector.load %arg4[%c2_121, %c24_122] : memref<9x76xf32, #tpu.memory_space<vmem>>, vector<1x48xf32>
    %174 = vector.shape_cast %173 : vector<1x48xf32> to vector<1x48xf32>
    %175 = vector.broadcast %174 : vector<1x48xf32> to vector<16x48xf32>
    %c3_123 = arith.constant 3 : index
    %c24_124 = arith.constant 24 : index
    %176 = vector.load %arg4[%c3_123, %c24_124] : memref<9x76xf32, #tpu.memory_space<vmem>>, vector<1x48xf32>
    %177 = vector.shape_cast %176 : vector<1x48xf32> to vector<1x48xf32>
    %178 = vector.broadcast %177 : vector<1x48xf32> to vector<16x48xf32>
    %c4_125 = arith.constant 4 : index
    %c24_126 = arith.constant 24 : index
    %179 = vector.load %arg4[%c4_125, %c24_126] : memref<9x76xf32, #tpu.memory_space<vmem>>, vector<1x48xf32>
    %180 = vector.shape_cast %179 : vector<1x48xf32> to vector<1x48xf32>
    %181 = vector.broadcast %180 : vector<1x48xf32> to vector<16x48xf32>
    %c5_127 = arith.constant 5 : index
    %c24_128 = arith.constant 24 : index
    %182 = vector.load %arg4[%c5_127, %c24_128] : memref<9x76xf32, #tpu.memory_space<vmem>>, vector<1x48xf32>
    %183 = vector.shape_cast %182 : vector<1x48xf32> to vector<1x48xf32>
    %184 = vector.broadcast %183 : vector<1x48xf32> to vector<16x48xf32>
    %c6_129 = arith.constant 6 : index
    %c24_130 = arith.constant 24 : index
    %185 = vector.load %arg4[%c6_129, %c24_130] : memref<9x76xf32, #tpu.memory_space<vmem>>, vector<1x48xf32>
    %186 = vector.shape_cast %185 : vector<1x48xf32> to vector<1x48xf32>
    %187 = vector.broadcast %186 : vector<1x48xf32> to vector<16x48xf32>
    %c7_131 = arith.constant 7 : index
    %c24_132 = arith.constant 24 : index
    %188 = vector.load %arg4[%c7_131, %c24_132] : memref<9x76xf32, #tpu.memory_space<vmem>>, vector<1x48xf32>
    %189 = vector.shape_cast %188 : vector<1x48xf32> to vector<1x48xf32>
    %190 = vector.broadcast %189 : vector<1x48xf32> to vector<16x48xf32>
    %c8_133 = arith.constant 8 : index
    %c24_134 = arith.constant 24 : index
    %191 = vector.load %arg4[%c8_133, %c24_134] : memref<9x76xf32, #tpu.memory_space<vmem>>, vector<1x48xf32>
    %192 = vector.shape_cast %191 : vector<1x48xf32> to vector<1x48xf32>
    %193 = vector.broadcast %192 : vector<1x48xf32> to vector<16x48xf32>
    %cst_135 = arith.constant 0.000000e+00 : f32
    %194 = vector.broadcast %cst_135 : f32 to vector<8x16x48xf32>
    %c0_136 = arith.constant 0 : index
    %c0_137 = arith.constant 0 : index
    %c0_138 = arith.constant 0 : index
    %195 = vector.load %arg7[%c0_136, %c0_137, %c0_138] : memref<18x24x48xf32, #tpu.memory_space<vmem>>, vector<8x16x48xf32>
    %196 = vector.shape_cast %169 : vector<16x48xf32> to vector<1x16x48xf32>
    %197 = vector.broadcast %196 : vector<1x16x48xf32> to vector<8x16x48xf32>
    %198 = arith.mulf %195, %197 : vector<8x16x48xf32>
    %199 = arith.addf %194, %198 : vector<8x16x48xf32>
    %c0_139 = arith.constant 0 : index
    %c1_140 = arith.constant 1 : index
    %c0_141 = arith.constant 0 : index
    %200 = vector.load %arg7[%c0_139, %c1_140, %c0_141] : memref<18x24x48xf32, #tpu.memory_space<vmem>>, vector<8x16x48xf32>
    %201 = vector.shape_cast %172 : vector<16x48xf32> to vector<1x16x48xf32>
    %202 = vector.broadcast %201 : vector<1x16x48xf32> to vector<8x16x48xf32>
    %203 = arith.mulf %200, %202 : vector<8x16x48xf32>
    %204 = arith.addf %199, %203 : vector<8x16x48xf32>
    %c0_142 = arith.constant 0 : index
    %c2_143 = arith.constant 2 : index
    %c0_144 = arith.constant 0 : index
    %205 = vector.load %arg7[%c0_142, %c2_143, %c0_144] : memref<18x24x48xf32, #tpu.memory_space<vmem>>, vector<8x16x48xf32>
    %206 = vector.shape_cast %175 : vector<16x48xf32> to vector<1x16x48xf32>
    %207 = vector.broadcast %206 : vector<1x16x48xf32> to vector<8x16x48xf32>
    %208 = arith.mulf %205, %207 : vector<8x16x48xf32>
    %209 = arith.addf %204, %208 : vector<8x16x48xf32>
    %c1_145 = arith.constant 1 : index
    %c0_146 = arith.constant 0 : index
    %c0_147 = arith.constant 0 : index
    %210 = vector.load %arg7[%c1_145, %c0_146, %c0_147] : memref<18x24x48xf32, #tpu.memory_space<vmem>>, vector<8x16x48xf32>
    %211 = vector.shape_cast %178 : vector<16x48xf32> to vector<1x16x48xf32>
    %212 = vector.broadcast %211 : vector<1x16x48xf32> to vector<8x16x48xf32>
    %213 = arith.mulf %210, %212 : vector<8x16x48xf32>
    %214 = arith.addf %209, %213 : vector<8x16x48xf32>
    %c1_148 = arith.constant 1 : index
    %c1_149 = arith.constant 1 : index
    %c0_150 = arith.constant 0 : index
    %215 = vector.load %arg7[%c1_148, %c1_149, %c0_150] : memref<18x24x48xf32, #tpu.memory_space<vmem>>, vector<8x16x48xf32>
    %216 = vector.shape_cast %181 : vector<16x48xf32> to vector<1x16x48xf32>
    %217 = vector.broadcast %216 : vector<1x16x48xf32> to vector<8x16x48xf32>
    %218 = arith.mulf %215, %217 : vector<8x16x48xf32>
    %219 = arith.addf %214, %218 : vector<8x16x48xf32>
    %c1_151 = arith.constant 1 : index
    %c2_152 = arith.constant 2 : index
    %c0_153 = arith.constant 0 : index
    %220 = vector.load %arg7[%c1_151, %c2_152, %c0_153] : memref<18x24x48xf32, #tpu.memory_space<vmem>>, vector<8x16x48xf32>
    %221 = vector.shape_cast %184 : vector<16x48xf32> to vector<1x16x48xf32>
    %222 = vector.broadcast %221 : vector<1x16x48xf32> to vector<8x16x48xf32>
    %223 = arith.mulf %220, %222 : vector<8x16x48xf32>
    %224 = arith.addf %219, %223 : vector<8x16x48xf32>
    %c2_154 = arith.constant 2 : index
    %c0_155 = arith.constant 0 : index
    %c0_156 = arith.constant 0 : index
    %225 = vector.load %arg7[%c2_154, %c0_155, %c0_156] : memref<18x24x48xf32, #tpu.memory_space<vmem>>, vector<8x16x48xf32>
    %226 = vector.shape_cast %187 : vector<16x48xf32> to vector<1x16x48xf32>
    %227 = vector.broadcast %226 : vector<1x16x48xf32> to vector<8x16x48xf32>
    %228 = arith.mulf %225, %227 : vector<8x16x48xf32>
    %229 = arith.addf %224, %228 : vector<8x16x48xf32>
    %c2_157 = arith.constant 2 : index
    %c1_158 = arith.constant 1 : index
    %c0_159 = arith.constant 0 : index
    %230 = vector.load %arg7[%c2_157, %c1_158, %c0_159] : memref<18x24x48xf32, #tpu.memory_space<vmem>>, vector<8x16x48xf32>
    %231 = vector.shape_cast %190 : vector<16x48xf32> to vector<1x16x48xf32>
    %232 = vector.broadcast %231 : vector<1x16x48xf32> to vector<8x16x48xf32>
    %233 = arith.mulf %230, %232 : vector<8x16x48xf32>
    %234 = arith.addf %229, %233 : vector<8x16x48xf32>
    %c2_160 = arith.constant 2 : index
    %c2_161 = arith.constant 2 : index
    %c0_162 = arith.constant 0 : index
    %235 = vector.load %arg7[%c2_160, %c2_161, %c0_162] : memref<18x24x48xf32, #tpu.memory_space<vmem>>, vector<8x16x48xf32>
    %236 = vector.shape_cast %193 : vector<16x48xf32> to vector<1x16x48xf32>
    %237 = vector.broadcast %236 : vector<1x16x48xf32> to vector<8x16x48xf32>
    %238 = arith.mulf %235, %237 : vector<8x16x48xf32>
    %239 = arith.addf %234, %238 : vector<8x16x48xf32>
    %240 = vector.shape_cast %165 : vector<1x48xf32> to vector<1x1x48xf32>
    %241 = vector.broadcast %240 : vector<1x1x48xf32> to vector<8x16x48xf32>
    %242 = arith.mulf %239, %241 : vector<8x16x48xf32>
    %243 = vector.shape_cast %166 : vector<1x48xf32> to vector<1x1x48xf32>
    %244 = vector.broadcast %243 : vector<1x1x48xf32> to vector<8x16x48xf32>
    %245 = arith.addf %242, %244 : vector<8x16x48xf32>
    %cst_163 = arith.constant 0.000000e+00 : f32
    %246 = vector.broadcast %cst_163 : f32 to vector<8x16x48xf32>
    %247 = arith.maximumf %245, %246 : vector<8x16x48xf32>
    %248 = vector.shape_cast %247 : vector<8x16x48xf32> to vector<128x48xf32>
    %249 = arith.truncf %248 : vector<128x48xf32> to vector<128x48xbf16>
    %c0_164 = arith.constant 0 : index
    %c0_165 = arith.constant 0 : index
    %250 = vector.load %arg8[%c0_164, %c0_165] : memref<256x48xbf16, #tpu.memory_space<vmem>>, vector<128x48xbf16>
    tpu.vector_store %arg8[%c0_164, %c0_165], %249 {strides = array<i32>} : memref<256x48xbf16, #tpu.memory_space<vmem>>, vector<128x48xbf16>,
    %cst_166 = arith.constant 0.000000e+00 : f32
    %251 = vector.broadcast %cst_166 : f32 to vector<8x16x48xf32>
    %c8_167 = arith.constant 8 : index
    %c0_168 = arith.constant 0 : index
    %c0_169 = arith.constant 0 : index
    %252 = vector.load %arg7[%c8_167, %c0_168, %c0_169] : memref<18x24x48xf32, #tpu.memory_space<vmem>>, vector<8x16x48xf32>
    %253 = vector.shape_cast %169 : vector<16x48xf32> to vector<1x16x48xf32>
    %254 = vector.broadcast %253 : vector<1x16x48xf32> to vector<8x16x48xf32>
    %255 = arith.mulf %252, %254 : vector<8x16x48xf32>
    %256 = arith.addf %251, %255 : vector<8x16x48xf32>
    %c8_170 = arith.constant 8 : index
    %c1_171 = arith.constant 1 : index
    %c0_172 = arith.constant 0 : index
    %257 = vector.load %arg7[%c8_170, %c1_171, %c0_172] : memref<18x24x48xf32, #tpu.memory_space<vmem>>, vector<8x16x48xf32>
    %258 = vector.shape_cast %172 : vector<16x48xf32> to vector<1x16x48xf32>
    %259 = vector.broadcast %258 : vector<1x16x48xf32> to vector<8x16x48xf32>
    %260 = arith.mulf %257, %259 : vector<8x16x48xf32>
    %261 = arith.addf %256, %260 : vector<8x16x48xf32>
    %c8_173 = arith.constant 8 : index
    %c2_174 = arith.constant 2 : index
    %c0_175 = arith.constant 0 : index
    %262 = vector.load %arg7[%c8_173, %c2_174, %c0_175] : memref<18x24x48xf32, #tpu.memory_space<vmem>>, vector<8x16x48xf32>
    %263 = vector.shape_cast %175 : vector<16x48xf32> to vector<1x16x48xf32>
    %264 = vector.broadcast %263 : vector<1x16x48xf32> to vector<8x16x48xf32>
    %265 = arith.mulf %262, %264 : vector<8x16x48xf32>
    %266 = arith.addf %261, %265 : vector<8x16x48xf32>
    %c9_176 = arith.constant 9 : index
    %c0_177 = arith.constant 0 : index
    %c0_178 = arith.constant 0 : index
    %267 = vector.load %arg7[%c9_176, %c0_177, %c0_178] : memref<18x24x48xf32, #tpu.memory_space<vmem>>, vector<8x16x48xf32>
    %268 = vector.shape_cast %178 : vector<16x48xf32> to vector<1x16x48xf32>
    %269 = vector.broadcast %268 : vector<1x16x48xf32> to vector<8x16x48xf32>
    %270 = arith.mulf %267, %269 : vector<8x16x48xf32>
    %271 = arith.addf %266, %270 : vector<8x16x48xf32>
    %c9_179 = arith.constant 9 : index
    %c1_180 = arith.constant 1 : index
    %c0_181 = arith.constant 0 : index
    %272 = vector.load %arg7[%c9_179, %c1_180, %c0_181] : memref<18x24x48xf32, #tpu.memory_space<vmem>>, vector<8x16x48xf32>
    %273 = vector.shape_cast %181 : vector<16x48xf32> to vector<1x16x48xf32>
    %274 = vector.broadcast %273 : vector<1x16x48xf32> to vector<8x16x48xf32>
    %275 = arith.mulf %272, %274 : vector<8x16x48xf32>
    %276 = arith.addf %271, %275 : vector<8x16x48xf32>
    %c9_182 = arith.constant 9 : index
    %c2_183 = arith.constant 2 : index
    %c0_184 = arith.constant 0 : index
    %277 = vector.load %arg7[%c9_182, %c2_183, %c0_184] : memref<18x24x48xf32, #tpu.memory_space<vmem>>, vector<8x16x48xf32>
    %278 = vector.shape_cast %184 : vector<16x48xf32> to vector<1x16x48xf32>
    %279 = vector.broadcast %278 : vector<1x16x48xf32> to vector<8x16x48xf32>
    %280 = arith.mulf %277, %279 : vector<8x16x48xf32>
    %281 = arith.addf %276, %280 : vector<8x16x48xf32>
    %c10_185 = arith.constant 10 : index
    %c0_186 = arith.constant 0 : index
    %c0_187 = arith.constant 0 : index
    %282 = vector.load %arg7[%c10_185, %c0_186, %c0_187] : memref<18x24x48xf32, #tpu.memory_space<vmem>>, vector<8x16x48xf32>
    %283 = vector.shape_cast %187 : vector<16x48xf32> to vector<1x16x48xf32>
    %284 = vector.broadcast %283 : vector<1x16x48xf32> to vector<8x16x48xf32>
    %285 = arith.mulf %282, %284 : vector<8x16x48xf32>
    %286 = arith.addf %281, %285 : vector<8x16x48xf32>
    %c10_188 = arith.constant 10 : index
    %c1_189 = arith.constant 1 : index
    %c0_190 = arith.constant 0 : index
    %287 = vector.load %arg7[%c10_188, %c1_189, %c0_190] : memref<18x24x48xf32, #tpu.memory_space<vmem>>, vector<8x16x48xf32>
    %288 = vector.shape_cast %190 : vector<16x48xf32> to vector<1x16x48xf32>
    %289 = vector.broadcast %288 : vector<1x16x48xf32> to vector<8x16x48xf32>
    %290 = arith.mulf %287, %289 : vector<8x16x48xf32>
    %291 = arith.addf %286, %290 : vector<8x16x48xf32>
    %c10_191 = arith.constant 10 : index
    %c2_192 = arith.constant 2 : index
    %c0_193 = arith.constant 0 : index
    %292 = vector.load %arg7[%c10_191, %c2_192, %c0_193] : memref<18x24x48xf32, #tpu.memory_space<vmem>>, vector<8x16x48xf32>
    %293 = vector.shape_cast %193 : vector<16x48xf32> to vector<1x16x48xf32>
    %294 = vector.broadcast %293 : vector<1x16x48xf32> to vector<8x16x48xf32>
    %295 = arith.mulf %292, %294 : vector<8x16x48xf32>
    %296 = arith.addf %291, %295 : vector<8x16x48xf32>
    %297 = vector.shape_cast %165 : vector<1x48xf32> to vector<1x1x48xf32>
    %298 = vector.broadcast %297 : vector<1x1x48xf32> to vector<8x16x48xf32>
    %299 = arith.mulf %296, %298 : vector<8x16x48xf32>
    %300 = vector.shape_cast %166 : vector<1x48xf32> to vector<1x1x48xf32>
    %301 = vector.broadcast %300 : vector<1x1x48xf32> to vector<8x16x48xf32>
    %302 = arith.addf %299, %301 : vector<8x16x48xf32>
    %cst_194 = arith.constant 0.000000e+00 : f32
    %303 = vector.broadcast %cst_194 : f32 to vector<8x16x48xf32>
    %304 = arith.maximumf %302, %303 : vector<8x16x48xf32>
    %305 = vector.shape_cast %304 : vector<8x16x48xf32> to vector<128x48xf32>
    %306 = arith.truncf %305 : vector<128x48xf32> to vector<128x48xbf16>
    %c128 = arith.constant 128 : index
    %c0_195 = arith.constant 0 : index
    %307 = vector.load %arg8[%c128, %c0_195] : memref<256x48xbf16, #tpu.memory_space<vmem>>, vector<128x48xbf16>
    tpu.vector_store %arg8[%c128, %c0_195], %306 {strides = array<i32>} : memref<256x48xbf16, #tpu.memory_space<vmem>>, vector<128x48xbf16>,
    %c0_196 = arith.constant 0 : index
    %c96 = arith.constant 96 : index
    %308 = vector.load %arg5[%c0_196, %c96] : memref<2x104xf32, #tpu.memory_space<vmem>>, vector<1x4xf32>
    %c1_197 = arith.constant 1 : index
    %c96_198 = arith.constant 96 : index
    %309 = vector.load %arg5[%c1_197, %c96_198] : memref<2x104xf32, #tpu.memory_space<vmem>>, vector<1x4xf32>
    %c0_199 = arith.constant 0 : index
    %c0_200 = arith.constant 0 : index
    %310 = vector.load %arg8[%c0_199, %c0_200] : memref<256x48xbf16, #tpu.memory_space<vmem>>, vector<256x48xbf16>
    %c0_201 = arith.constant 0 : index
    %c0_202 = arith.constant 0 : index
    %311 = vector.load %arg3[%c0_201, %c0_202] : memref<48x4xbf16, #tpu.memory_space<vmem>>, vector<48x4xbf16>
    %cst_203 = arith.constant dense<0.000000e+00> : vector<256x4xf32>
    %312 = tpu.matmul %310, %311, %cst_203 {dimension_numbers = #tpu.dot_dimension_numbers<[1], [0], [0], [1], [0, 0, 1, 1], [], []>} : vector<256x48xbf16>, vector<48x4xbf16>, vector<256x4xf32> -> vector<256x4xf32>
    %313 = vector.broadcast %308 : vector<1x4xf32> to vector<256x4xf32>
    %314 = arith.mulf %312, %313 : vector<256x4xf32>
    %315 = vector.broadcast %309 : vector<1x4xf32> to vector<256x4xf32>
    %316 = arith.addf %314, %315 : vector<256x4xf32>
    %cst_204 = arith.constant 0.000000e+00 : f32
    %317 = vector.broadcast %cst_204 : f32 to vector<256x4xf32>
    %318 = arith.maximumf %316, %317 : vector<256x4xf32>
    %319 = vector.shape_cast %318 : vector<256x4xf32> to vector<16x16x4xf32>
    %c1_205 = arith.constant 1 : index
    %c1_206 = arith.constant 1 : index
    %c0_207 = arith.constant 0 : index
    %320 = vector.load %arg9[%c1_205, %c1_206, %c0_207] : memref<18x24x4xf32, #tpu.memory_space<vmem>>, vector<16x16x4xf32>
    tpu.vector_store %arg9[%c1_205, %c1_206, %c0_207], %319 {strides = array<i32>} : memref<18x24x4xf32, #tpu.memory_space<vmem>>, vector<16x16x4xf32>,
    %c0_208 = arith.constant 0 : index
    %c100 = arith.constant 100 : index
    %321 = vector.load %arg5[%c0_208, %c100] : memref<2x104xf32, #tpu.memory_space<vmem>>, vector<1x4xf32>
    %c1_209 = arith.constant 1 : index
    %c100_210 = arith.constant 100 : index
    %322 = vector.load %arg5[%c1_209, %c100_210] : memref<2x104xf32, #tpu.memory_space<vmem>>, vector<1x4xf32>
    %c0_211 = arith.constant 0 : index
    %c72 = arith.constant 72 : index
    %323 = vector.load %arg4[%c0_211, %c72] : memref<9x76xf32, #tpu.memory_space<vmem>>, vector<1x4xf32>
    %324 = vector.shape_cast %323 : vector<1x4xf32> to vector<1x4xf32>
    %325 = vector.broadcast %324 : vector<1x4xf32> to vector<16x4xf32>
    %c1_212 = arith.constant 1 : index
    %c72_213 = arith.constant 72 : index
    %326 = vector.load %arg4[%c1_212, %c72_213] : memref<9x76xf32, #tpu.memory_space<vmem>>, vector<1x4xf32>
    %327 = vector.shape_cast %326 : vector<1x4xf32> to vector<1x4xf32>
    %328 = vector.broadcast %327 : vector<1x4xf32> to vector<16x4xf32>
    %c2_214 = arith.constant 2 : index
    %c72_215 = arith.constant 72 : index
    %329 = vector.load %arg4[%c2_214, %c72_215] : memref<9x76xf32, #tpu.memory_space<vmem>>, vector<1x4xf32>
    %330 = vector.shape_cast %329 : vector<1x4xf32> to vector<1x4xf32>
    %331 = vector.broadcast %330 : vector<1x4xf32> to vector<16x4xf32>
    %c3_216 = arith.constant 3 : index
    %c72_217 = arith.constant 72 : index
    %332 = vector.load %arg4[%c3_216, %c72_217] : memref<9x76xf32, #tpu.memory_space<vmem>>, vector<1x4xf32>
    %333 = vector.shape_cast %332 : vector<1x4xf32> to vector<1x4xf32>
    %334 = vector.broadcast %333 : vector<1x4xf32> to vector<16x4xf32>
    %c4_218 = arith.constant 4 : index
    %c72_219 = arith.constant 72 : index
    %335 = vector.load %arg4[%c4_218, %c72_219] : memref<9x76xf32, #tpu.memory_space<vmem>>, vector<1x4xf32>
    %336 = vector.shape_cast %335 : vector<1x4xf32> to vector<1x4xf32>
    %337 = vector.broadcast %336 : vector<1x4xf32> to vector<16x4xf32>
    %c5_220 = arith.constant 5 : index
    %c72_221 = arith.constant 72 : index
    %338 = vector.load %arg4[%c5_220, %c72_221] : memref<9x76xf32, #tpu.memory_space<vmem>>, vector<1x4xf32>
    %339 = vector.shape_cast %338 : vector<1x4xf32> to vector<1x4xf32>
    %340 = vector.broadcast %339 : vector<1x4xf32> to vector<16x4xf32>
    %c6_222 = arith.constant 6 : index
    %c72_223 = arith.constant 72 : index
    %341 = vector.load %arg4[%c6_222, %c72_223] : memref<9x76xf32, #tpu.memory_space<vmem>>, vector<1x4xf32>
    %342 = vector.shape_cast %341 : vector<1x4xf32> to vector<1x4xf32>
    %343 = vector.broadcast %342 : vector<1x4xf32> to vector<16x4xf32>
    %c7_224 = arith.constant 7 : index
    %c72_225 = arith.constant 72 : index
    %344 = vector.load %arg4[%c7_224, %c72_225] : memref<9x76xf32, #tpu.memory_space<vmem>>, vector<1x4xf32>
    %345 = vector.shape_cast %344 : vector<1x4xf32> to vector<1x4xf32>
    %346 = vector.broadcast %345 : vector<1x4xf32> to vector<16x4xf32>
    %c8_226 = arith.constant 8 : index
    %c72_227 = arith.constant 72 : index
    %347 = vector.load %arg4[%c8_226, %c72_227] : memref<9x76xf32, #tpu.memory_space<vmem>>, vector<1x4xf32>
    %348 = vector.shape_cast %347 : vector<1x4xf32> to vector<1x4xf32>
    %349 = vector.broadcast %348 : vector<1x4xf32> to vector<16x4xf32>
    %cst_228 = arith.constant 0.000000e+00 : f32
    %350 = vector.broadcast %cst_228 : f32 to vector<8x16x4xf32>
    %c0_229 = arith.constant 0 : index
    %c0_230 = arith.constant 0 : index
    %c0_231 = arith.constant 0 : index
    %351 = vector.load %arg9[%c0_229, %c0_230, %c0_231] : memref<18x24x4xf32, #tpu.memory_space<vmem>>, vector<8x16x4xf32>
    %352 = vector.shape_cast %325 : vector<16x4xf32> to vector<1x16x4xf32>
    %353 = vector.broadcast %352 : vector<1x16x4xf32> to vector<8x16x4xf32>
    %354 = arith.mulf %351, %353 : vector<8x16x4xf32>
    %355 = arith.addf %350, %354 : vector<8x16x4xf32>
    %c0_232 = arith.constant 0 : index
    %c1_233 = arith.constant 1 : index
    %c0_234 = arith.constant 0 : index
    %356 = vector.load %arg9[%c0_232, %c1_233, %c0_234] : memref<18x24x4xf32, #tpu.memory_space<vmem>>, vector<8x16x4xf32>
    %357 = vector.shape_cast %328 : vector<16x4xf32> to vector<1x16x4xf32>
    %358 = vector.broadcast %357 : vector<1x16x4xf32> to vector<8x16x4xf32>
    %359 = arith.mulf %356, %358 : vector<8x16x4xf32>
    %360 = arith.addf %355, %359 : vector<8x16x4xf32>
    %c0_235 = arith.constant 0 : index
    %c2_236 = arith.constant 2 : index
    %c0_237 = arith.constant 0 : index
    %361 = vector.load %arg9[%c0_235, %c2_236, %c0_237] : memref<18x24x4xf32, #tpu.memory_space<vmem>>, vector<8x16x4xf32>
    %362 = vector.shape_cast %331 : vector<16x4xf32> to vector<1x16x4xf32>
    %363 = vector.broadcast %362 : vector<1x16x4xf32> to vector<8x16x4xf32>
    %364 = arith.mulf %361, %363 : vector<8x16x4xf32>
    %365 = arith.addf %360, %364 : vector<8x16x4xf32>
    %c1_238 = arith.constant 1 : index
    %c0_239 = arith.constant 0 : index
    %c0_240 = arith.constant 0 : index
    %366 = vector.load %arg9[%c1_238, %c0_239, %c0_240] : memref<18x24x4xf32, #tpu.memory_space<vmem>>, vector<8x16x4xf32>
    %367 = vector.shape_cast %334 : vector<16x4xf32> to vector<1x16x4xf32>
    %368 = vector.broadcast %367 : vector<1x16x4xf32> to vector<8x16x4xf32>
    %369 = arith.mulf %366, %368 : vector<8x16x4xf32>
    %370 = arith.addf %365, %369 : vector<8x16x4xf32>
    %c1_241 = arith.constant 1 : index
    %c1_242 = arith.constant 1 : index
    %c0_243 = arith.constant 0 : index
    %371 = vector.load %arg9[%c1_241, %c1_242, %c0_243] : memref<18x24x4xf32, #tpu.memory_space<vmem>>, vector<8x16x4xf32>
    %372 = vector.shape_cast %337 : vector<16x4xf32> to vector<1x16x4xf32>
    %373 = vector.broadcast %372 : vector<1x16x4xf32> to vector<8x16x4xf32>
    %374 = arith.mulf %371, %373 : vector<8x16x4xf32>
    %375 = arith.addf %370, %374 : vector<8x16x4xf32>
    %c1_244 = arith.constant 1 : index
    %c2_245 = arith.constant 2 : index
    %c0_246 = arith.constant 0 : index
    %376 = vector.load %arg9[%c1_244, %c2_245, %c0_246] : memref<18x24x4xf32, #tpu.memory_space<vmem>>, vector<8x16x4xf32>
    %377 = vector.shape_cast %340 : vector<16x4xf32> to vector<1x16x4xf32>
    %378 = vector.broadcast %377 : vector<1x16x4xf32> to vector<8x16x4xf32>
    %379 = arith.mulf %376, %378 : vector<8x16x4xf32>
    %380 = arith.addf %375, %379 : vector<8x16x4xf32>
    %c2_247 = arith.constant 2 : index
    %c0_248 = arith.constant 0 : index
    %c0_249 = arith.constant 0 : index
    %381 = vector.load %arg9[%c2_247, %c0_248, %c0_249] : memref<18x24x4xf32, #tpu.memory_space<vmem>>, vector<8x16x4xf32>
    %382 = vector.shape_cast %343 : vector<16x4xf32> to vector<1x16x4xf32>
    %383 = vector.broadcast %382 : vector<1x16x4xf32> to vector<8x16x4xf32>
    %384 = arith.mulf %381, %383 : vector<8x16x4xf32>
    %385 = arith.addf %380, %384 : vector<8x16x4xf32>
    %c2_250 = arith.constant 2 : index
    %c1_251 = arith.constant 1 : index
    %c0_252 = arith.constant 0 : index
    %386 = vector.load %arg9[%c2_250, %c1_251, %c0_252] : memref<18x24x4xf32, #tpu.memory_space<vmem>>, vector<8x16x4xf32>
    %387 = vector.shape_cast %346 : vector<16x4xf32> to vector<1x16x4xf32>
    %388 = vector.broadcast %387 : vector<1x16x4xf32> to vector<8x16x4xf32>
    %389 = arith.mulf %386, %388 : vector<8x16x4xf32>
    %390 = arith.addf %385, %389 : vector<8x16x4xf32>
    %c2_253 = arith.constant 2 : index
    %c2_254 = arith.constant 2 : index
    %c0_255 = arith.constant 0 : index
    %391 = vector.load %arg9[%c2_253, %c2_254, %c0_255] : memref<18x24x4xf32, #tpu.memory_space<vmem>>, vector<8x16x4xf32>
    %392 = vector.shape_cast %349 : vector<16x4xf32> to vector<1x16x4xf32>
    %393 = vector.broadcast %392 : vector<1x16x4xf32> to vector<8x16x4xf32>
    %394 = arith.mulf %391, %393 : vector<8x16x4xf32>
    %395 = arith.addf %390, %394 : vector<8x16x4xf32>
    %396 = vector.shape_cast %321 : vector<1x4xf32> to vector<1x1x4xf32>
    %397 = vector.broadcast %396 : vector<1x1x4xf32> to vector<8x16x4xf32>
    %398 = arith.mulf %395, %397 : vector<8x16x4xf32>
    %399 = vector.shape_cast %322 : vector<1x4xf32> to vector<1x1x4xf32>
    %400 = vector.broadcast %399 : vector<1x1x4xf32> to vector<8x16x4xf32>
    %401 = arith.addf %398, %400 : vector<8x16x4xf32>
    %cst_256 = arith.constant 0.000000e+00 : f32
    %402 = vector.broadcast %cst_256 : f32 to vector<8x16x4xf32>
    %403 = arith.maximumf %401, %402 : vector<8x16x4xf32>
    %404 = vector.shape_cast %403 : vector<8x16x4xf32> to vector<128x4xf32>
    %cst_257 = arith.constant 0.000000e+00 : f32
    %405 = vector.broadcast %cst_257 : f32 to vector<8x16x4xf32>
    %c8_258 = arith.constant 8 : index
    %c0_259 = arith.constant 0 : index
    %c0_260 = arith.constant 0 : index
    %406 = vector.load %arg9[%c8_258, %c0_259, %c0_260] : memref<18x24x4xf32, #tpu.memory_space<vmem>>, vector<8x16x4xf32>
    %407 = vector.shape_cast %325 : vector<16x4xf32> to vector<1x16x4xf32>
    %408 = vector.broadcast %407 : vector<1x16x4xf32> to vector<8x16x4xf32>
    %409 = arith.mulf %406, %408 : vector<8x16x4xf32>
    %410 = arith.addf %405, %409 : vector<8x16x4xf32>
    %c8_261 = arith.constant 8 : index
    %c1_262 = arith.constant 1 : index
    %c0_263 = arith.constant 0 : index
    %411 = vector.load %arg9[%c8_261, %c1_262, %c0_263] : memref<18x24x4xf32, #tpu.memory_space<vmem>>, vector<8x16x4xf32>
    %412 = vector.shape_cast %328 : vector<16x4xf32> to vector<1x16x4xf32>
    %413 = vector.broadcast %412 : vector<1x16x4xf32> to vector<8x16x4xf32>
    %414 = arith.mulf %411, %413 : vector<8x16x4xf32>
    %415 = arith.addf %410, %414 : vector<8x16x4xf32>
    %c8_264 = arith.constant 8 : index
    %c2_265 = arith.constant 2 : index
    %c0_266 = arith.constant 0 : index
    %416 = vector.load %arg9[%c8_264, %c2_265, %c0_266] : memref<18x24x4xf32, #tpu.memory_space<vmem>>, vector<8x16x4xf32>
    %417 = vector.shape_cast %331 : vector<16x4xf32> to vector<1x16x4xf32>
    %418 = vector.broadcast %417 : vector<1x16x4xf32> to vector<8x16x4xf32>
    %419 = arith.mulf %416, %418 : vector<8x16x4xf32>
    %420 = arith.addf %415, %419 : vector<8x16x4xf32>
    %c9_267 = arith.constant 9 : index
    %c0_268 = arith.constant 0 : index
    %c0_269 = arith.constant 0 : index
    %421 = vector.load %arg9[%c9_267, %c0_268, %c0_269] : memref<18x24x4xf32, #tpu.memory_space<vmem>>, vector<8x16x4xf32>
    %422 = vector.shape_cast %334 : vector<16x4xf32> to vector<1x16x4xf32>
    %423 = vector.broadcast %422 : vector<1x16x4xf32> to vector<8x16x4xf32>
    %424 = arith.mulf %421, %423 : vector<8x16x4xf32>
    %425 = arith.addf %420, %424 : vector<8x16x4xf32>
    %c9_270 = arith.constant 9 : index
    %c1_271 = arith.constant 1 : index
    %c0_272 = arith.constant 0 : index
    %426 = vector.load %arg9[%c9_270, %c1_271, %c0_272] : memref<18x24x4xf32, #tpu.memory_space<vmem>>, vector<8x16x4xf32>
    %427 = vector.shape_cast %337 : vector<16x4xf32> to vector<1x16x4xf32>
    %428 = vector.broadcast %427 : vector<1x16x4xf32> to vector<8x16x4xf32>
    %429 = arith.mulf %426, %428 : vector<8x16x4xf32>
    %430 = arith.addf %425, %429 : vector<8x16x4xf32>
    %c9_273 = arith.constant 9 : index
    %c2_274 = arith.constant 2 : index
    %c0_275 = arith.constant 0 : index
    %431 = vector.load %arg9[%c9_273, %c2_274, %c0_275] : memref<18x24x4xf32, #tpu.memory_space<vmem>>, vector<8x16x4xf32>
    %432 = vector.shape_cast %340 : vector<16x4xf32> to vector<1x16x4xf32>
    %433 = vector.broadcast %432 : vector<1x16x4xf32> to vector<8x16x4xf32>
    %434 = arith.mulf %431, %433 : vector<8x16x4xf32>
    %435 = arith.addf %430, %434 : vector<8x16x4xf32>
    %c10_276 = arith.constant 10 : index
    %c0_277 = arith.constant 0 : index
    %c0_278 = arith.constant 0 : index
    %436 = vector.load %arg9[%c10_276, %c0_277, %c0_278] : memref<18x24x4xf32, #tpu.memory_space<vmem>>, vector<8x16x4xf32>
    %437 = vector.shape_cast %343 : vector<16x4xf32> to vector<1x16x4xf32>
    %438 = vector.broadcast %437 : vector<1x16x4xf32> to vector<8x16x4xf32>
    %439 = arith.mulf %436, %438 : vector<8x16x4xf32>
    %440 = arith.addf %435, %439 : vector<8x16x4xf32>
    %c10_279 = arith.constant 10 : index
    %c1_280 = arith.constant 1 : index
    %c0_281 = arith.constant 0 : index
    %441 = vector.load %arg9[%c10_279, %c1_280, %c0_281] : memref<18x24x4xf32, #tpu.memory_space<vmem>>, vector<8x16x4xf32>
    %442 = vector.shape_cast %346 : vector<16x4xf32> to vector<1x16x4xf32>
    %443 = vector.broadcast %442 : vector<1x16x4xf32> to vector<8x16x4xf32>
    %444 = arith.mulf %441, %443 : vector<8x16x4xf32>
    %445 = arith.addf %440, %444 : vector<8x16x4xf32>
    %c10_282 = arith.constant 10 : index
    %c2_283 = arith.constant 2 : index
    %c0_284 = arith.constant 0 : index
    %446 = vector.load %arg9[%c10_282, %c2_283, %c0_284] : memref<18x24x4xf32, #tpu.memory_space<vmem>>, vector<8x16x4xf32>
    %447 = vector.shape_cast %349 : vector<16x4xf32> to vector<1x16x4xf32>
    %448 = vector.broadcast %447 : vector<1x16x4xf32> to vector<8x16x4xf32>
    %449 = arith.mulf %446, %448 : vector<8x16x4xf32>
    %450 = arith.addf %445, %449 : vector<8x16x4xf32>
    %451 = vector.shape_cast %321 : vector<1x4xf32> to vector<1x1x4xf32>
    %452 = vector.broadcast %451 : vector<1x1x4xf32> to vector<8x16x4xf32>
    %453 = arith.mulf %450, %452 : vector<8x16x4xf32>
    %454 = vector.shape_cast %322 : vector<1x4xf32> to vector<1x1x4xf32>
    %455 = vector.broadcast %454 : vector<1x1x4xf32> to vector<8x16x4xf32>
    %456 = arith.addf %453, %455 : vector<8x16x4xf32>
    %cst_285 = arith.constant 0.000000e+00 : f32
    %457 = vector.broadcast %cst_285 : f32 to vector<8x16x4xf32>
    %458 = arith.maximumf %456, %457 : vector<8x16x4xf32>
    %459 = vector.shape_cast %458 : vector<8x16x4xf32> to vector<128x4xf32>
    %460 = tpu.concatenate %404, %459 in 0 : vector<128x4xf32>, vector<128x4xf32> -> vector<256x4xf32>
    %461 = tpu.concatenate %318, %460 in 1 : vector<256x4xf32>, vector<256x4xf32> -> vector<256x8xf32>
    %462 = arith.extf %13 : vector<256x8xbf16> to vector<256x8xf32>
    %463 = arith.addf %461, %462 : vector<256x8xf32>
    %c0_286 = arith.constant 0 : index
    %c0_287 = arith.constant 0 : index
    %c0_288 = arith.constant 0 : index
    %464 = vector.load %arg6[%c0_286, %c0_287, %c0_288] : memref<1x256x8xf32, #tpu.memory_space<vmem>>, vector<1x256x8xf32>
    %465 = vector.shape_cast %464 : vector<1x256x8xf32> to vector<256x8xf32>
    %466 = vector.shape_cast %463 : vector<256x8xf32> to vector<1x256x8xf32>
    tpu.vector_store %arg6[%c0_286, %c0_287, %c0_288], %466 {strides = array<i32>} : memref<1x256x8xf32, #tpu.memory_space<vmem>>, vector<1x256x8xf32>,
    return
  }
  func.func @transform_0(%arg0: i32) -> (i32, i32, i32) {
    %c0_i32 = arith.constant 0 : i32
    %c0_i32_0 = arith.constant 0 : i32
    %c0_i32_1 = arith.constant 0 : i32
    return %arg0, %c0_i32, %c0_i32_0 : i32, i32, i32
  }
  func.func @transform_1(%arg0: i32) -> (i32, i32) {
    %c0_i32 = arith.constant 0 : i32
    %c0_i32_0 = arith.constant 0 : i32
    %c0_i32_1 = arith.constant 0 : i32
    return %c0_i32, %c0_i32_0 : i32, i32
  }
  func.func @transform_2(%arg0: i32) -> (i32, i32) {
    %c0_i32 = arith.constant 0 : i32
    %c0_i32_0 = arith.constant 0 : i32
    %c0_i32_1 = arith.constant 0 : i32
    return %c0_i32, %c0_i32_0 : i32, i32
  }
  func.func @transform_3(%arg0: i32) -> (i32, i32) {
    %c0_i32 = arith.constant 0 : i32
    %c0_i32_0 = arith.constant 0 : i32
    %c0_i32_1 = arith.constant 0 : i32
    return %c0_i32, %c0_i32_0 : i32, i32
  }
  func.func @transform_4(%arg0: i32) -> (i32, i32) {
    %c0_i32 = arith.constant 0 : i32
    %c0_i32_0 = arith.constant 0 : i32
    %c0_i32_1 = arith.constant 0 : i32
    return %c0_i32, %c0_i32_0 : i32, i32
  }
  func.func @transform_5(%arg0: i32) -> (i32, i32, i32) {
    %c0_i32 = arith.constant 0 : i32
    %c0_i32_0 = arith.constant 0 : i32
    %c0_i32_1 = arith.constant 0 : i32
    return %arg0, %c0_i32, %c0_i32_0 : i32, i32, i32
  }
}

</mosaic_0001>

<bundles_post_ra>
// kernel: tpu_custom_call.1
= control target key start
LH: loop header
LB: loop body
LE: loop exit
PB: predicated region body
PF: predicated region fallthrough
CT: control target
= control target key end

     0   :  { %s5156_s18 = smov 0   ;;  %s8552_s0 = inlined_call_operand.vmem [shape: bf16[2,256,8], index: 0, kind: input, shape index: {}]   ;;  %s8553_s1 = inlined_call_operand.vmem [shape: bf16[8,24], index: 1, kind: input, shape index: {}]   ;;  %s8554_s2 = inlined_call_operand.vmem [shape: bf16[48,4], index: 2, kind: input, shape index: {}]   ;;  %s8555_s3 = inlined_call_operand.vmem [shape: f32[9,76], index: 3, kind: input, shape index: {}]   ;;  %s8556_s4 = inlined_call_operand.vmem [shape: f32[2,104], index: 4, kind: input, shape index: {}]   ;;  %s8557_s5 = inlined_call_operand.vmem [shape: f32[2,256,8], index: 5, kind: output, shape index: {}]  }
   0x1 LB: > { %s4824_s19 = sadd.s32 4294967295, %s5116_s18   ;;  %p4828_p0 = scmp.ge.s32.totalorder %s5116_s18, 1  ;;  %s5116_s18 = sphi %s5156_s18, %s15_s18  }
   0x2   : > { %p187_p1 = scmp.lt.s32.totalorder %s5116_s18, 3 }
   0x4   : > { %p188_p2 = pnand %p4828_p0, %p187_p1 }
   0x6   : > { %191 = sbr.rel (%p188_p2) target bundleno = 1089 (0x441), region = 40 }
   0xd   : > { %v344_v0 = vld [vmem:[%s8553_s1] sm:$0xf]  ;;  %vm474_vm0 = vcmask 1043456   ;;  %p215_p3 = scmp.lt.s32.totalorder %s4824_s19, 1  ;;  %s5118_s26 = smov 104   ;;  %vm425_vm1 = vcmask 64512  }
   0xe   : > { %5033 = vmatprep.subr.msk.bf16.mxu0 %vm474_vm0, %v344_v0  ;;  %v476_v1 = vsel %vm474_vm0, %v344_v0, 0  ;;  %v5170_v2 = vld [vmem:[%s8556_s4] ss:$0 sm:$0xff]  ;;  %v5175_v3 = vld [vmem:[%s8556_s4 + $0x1] ss:$0 sm:$0xff]  ;;  %vm226_vm2 = vcmask 392192  }
   0xf   : > { %4962 = vmatpush3.bf16.msra.mxu0 %v476_v1  ;;  %s8787_s19 = smov (!%p215_p3, %s4824_s19), 1  ;;  %1261 = vrot.lane.b32.xlu0 %v5170_v2, %s5118_s26  ;;  %v8558_v20 = vmov 0.0   ;;  %vm235_vm3 = vcmask 385024   ;;  %v5302_v26 = vld [vmem:[%s8555_s3] ss:$0 sm:$0xff]  ;;  %vm743_vm4 = vcmask 195584  }
  0x10   : > { %s4923_s27 = sshll.u32 %s8787_s19, 7  ;;  %227 = vst.msk [vmem:[#allocation2] sm:$0xff] %vm226_vm2, %v8558_v20  ;;  %228 = vst.msk [vmem:[#allocation2 + $0x8] sm:$0xff] %vm226_vm2, %v8558_v20  ;;  %v5309_v30 = vld [vmem:[%s8555_s3 + $0x1] ss:$0 sm:$0xff]  ;;  %s5121_s10 = smov 80  }
  0x11   : > { %s5185_s30 = scalar_lea.vmem %s8552_s0, %s4923_s27  ;;  %229 = vst.msk [vmem:[#allocation2 + $0x10] sm:$0xff] %vm226_vm2, %v8558_v20  ;;  %231 = vst.msk [vmem:[#allocation2 + $0x198] sm:$0xff] %vm226_vm2, %v8558_v20  ;;  %v5321_v42 = vld [vmem:[%s8555_s3 + $0x2] ss:$0 sm:$0xff]  ;;  %v5338_v61 = vld [vmem:[%s8555_s3 + $0x6] ss:$0 sm:$0xff] }
  0x12   : > { %v310_v4 = vld [vmem:[%s5185_s30] sm:$0xff]   ;;  %v312_v5 = vld [vmem:[%s5185_s30 + $0x8] sm:$0xff]   ;;  %v314_v6 = vld [vmem:[%s5185_s30 + $0x10] sm:$0xff]   ;;  %232 = vst.msk [vmem:[#allocation2 + $0x1a0] sm:$0xff] %vm226_vm2, %v8558_v20  ;;  %s5120_s27 = smov 24   ;;  %vm1384_vm5 = vcmask 392384  }
  0x13   : > { %1285 = vrot.lane.b32.xlu0 %v5175_v3, %s5118_s26  ;;  %4963 = vmatprep.mubr.msk.bf16.mxu0 %vm425_vm1, %v310_v4  ;;  %v316_v7 = vld [vmem:[%s5185_s30 + $0x18] sm:$0xff]   ;;  %v318_v8 = vld [vmem:[%s5185_s30 + $0x20] sm:$0xff]   ;;  %v320_v9 = vld [vmem:[%s5185_s30 + $0x28] sm:$0xff]   ;;  %233 = vst.msk [vmem:[#allocation2 + $0x1a8] sm:$0xff] %vm226_vm2, %v8558_v20  ;;  %s5123_s24 = smov 56   ;;  %s5124_s16 = smov 28  }
  0x14   : > { %4964 = vmatmul.mubr.msk.bf16.vlgmr.msra.gmra.mrb[0].mxu0 %vm425_vm1, %v312_v5  ;;  %v322_v10 = vld [vmem:[%s5185_s30 + $0x30] sm:$0xff]   ;;  %v324_v11 = vld [vmem:[%s5185_s30 + $0x38] sm:$0xff]   ;;  %v326_v12 = vld [vmem:[%s5185_s30 + $0x40] sm:$0xff]   ;;  %236 = vst.msk [vmem:[#allocation2 + $0x18] sm:$0x1] %vm235_vm3, %v8558_v20  ;;  %vm268_vm6 = vcmask 31744  }
  0x15   : > { %4967 = vmatprep.mubr.msk.bf16.mxu0 %vm425_vm1, %v314_v6  ;;  %v328_v13 = vld [vmem:[%s5185_s30 + $0x48] sm:$0xff]   ;;  %v330_v14 = vld [vmem:[%s5185_s30 + $0x50] sm:$0xff]   ;;  %v332_v15 = vld [vmem:[%s5185_s30 + $0x58] sm:$0xff]   ;;  %237 = vst.msk [vmem:[#allocation2 + $0x30] sm:$0x1] %vm235_vm3, %v8558_v20  ;;  %vm277_vm7 = vcmask 24576  }
  0x16   : > { %v334_v16 = vld [vmem:[%s5185_s30 + $0x60] sm:$0xff]   ;;  %v336_v17 = vld [vmem:[%s5185_s30 + $0x68] sm:$0xff]   ;;  %v338_v18 = vld [vmem:[%s5185_s30 + $0x70] sm:$0xff]   ;;  %238 = vst.msk [vmem:[#allocation2 + $0x48] sm:$0x1] %vm235_vm3, %v8558_v20  ;;  %s5125_s17 = smov 4  }
  0x17   : > { %v340_v19 = vld [vmem:[%s5185_s30 + $0x78] sm:$0xff]   ;;  %239 = vst.msk [vmem:[#allocation2 + $0x60] sm:$0x1] %vm235_vm3, %v8558_v20  ;;  %240 = vst.msk [vmem:[#allocation2 + $0x78] sm:$0x1] %vm235_vm3, %v8558_v20  ;;  %v787_v31 = vld [vmem:[#allocation2] sm:$0xff] }
  0x18   : > { %241 = vst.msk [vmem:[#allocation2 + $0x90] sm:$0x1] %vm235_vm3, %v8558_v20  ;;  %242 = vst.msk [vmem:[#allocation2 + $0xa8] sm:$0x1] %vm235_vm3, %v8558_v20  ;;  %v839_v32 = vld [vmem:[#allocation2 + $0x1] sm:$0xff]  ;;  %v807_v39 = vmul.f32 %v5302_v26, %v787_v31  ;;  %v840_v47 = vld [vmem:[#allocation2 + $0x9] sm:$0xff] }
  0x19   : > { %243 = vst.msk [vmem:[#allocation2 + $0xc0] sm:$0x1] %vm235_vm3, %v8558_v20  ;;  %244 = vst.msk [vmem:[#allocation2 + $0xd8] sm:$0x1] %vm235_vm3, %v8558_v20  ;;  %v859_v40 = vmul.f32 %v5309_v30, %v839_v32  ;;  %v891_v43 = vld [vmem:[#allocation2 + $0x2] sm:$0xff]  ;;  %v860_v58 = vmul.f32 %v5309_v30, %v840_v47 }
  0x1a   : > { %245 = vst.msk [vmem:[#allocation2 + $0xf0] sm:$0x1] %vm235_vm3, %v8558_v20  ;;  %246 = vst.msk [vmem:[#allocation2 + $0x108] sm:$0x1] %vm235_vm3, %v8558_v20  ;;  %v788_v46 = vld [vmem:[#allocation2 + $0x8] sm:$0xff]  ;;  %v911_v53 = vmul.f32 %v5321_v42, %v891_v43 }
  0x1b   : > { %247 = vst.msk [vmem:[#allocation2 + $0x120] sm:$0x1] %vm235_vm3, %v8558_v20  ;;  %248 = vst.msk [vmem:[#allocation2 + $0x138] sm:$0x1] %vm235_vm3, %v8558_v20  ;;  %v875_v52 = vadd.f32 %v859_v40, %v807_v39  ;;  %v808_v57 = vmul.f32 %v5302_v26, %v788_v46  ;;  %v5343_v62 = vld [vmem:[%s8555_s3 + $0x7] ss:$0 sm:$0xff] }
  0x1c   : > { %4968 = vmatmul.mubr.msk.bf16.gmra.mrb[4].mxu0 %vm425_vm1, %v316_v7  ;;  %249 = vst.msk [vmem:[#allocation2 + $0x150] sm:$0x1] %vm235_vm3, %v8558_v20  ;;  %250 = vst.msk [vmem:[#allocation2 + $0x168] sm:$0x1] %vm235_vm3, %v8558_v20  ;;  %v5349_v1 = vld [vmem:[%s8555_s3 + $0x3] ss:$0 sm:$0xff] }
  0x1d   : > { %4971 = vmatprep.mubr.msk.bf16.mxu0 %vm425_vm1, %v318_v8  ;;  %251 = vst.msk [vmem:[#allocation2 + $0x180] sm:$0x1] %vm235_vm3, %v8558_v20  ;;  %252 = vst.msk [vmem:[#allocation2 + $0x29] sm:$0x1] %vm235_vm3, %v8558_v20  ;;  %v5354_v4 = vld [vmem:[%s8555_s3 + $0x4] ss:$0 sm:$0xff]  ;;  %v927_v8 = vadd.f32 %v911_v53, %v875_v52 }
  0x1e   : > { %253 = vst.msk [vmem:[#allocation2 + $0x41] sm:$0x1] %vm235_vm3, %v8558_v20  ;;  %254 = vst.msk [vmem:[#allocation2 + $0x59] sm:$0x1] %vm235_vm3, %v8558_v20  ;;  %v5360_v7 = vld [vmem:[%s8555_s3 + $0x8] ss:$0 sm:$0xff] }
  0x1f   : > { %255 = vst.msk [vmem:[#allocation2 + $0x71] sm:$0x1] %vm235_vm3, %v8558_v20  ;;  %256 = vst.msk [vmem:[#allocation2 + $0x89] sm:$0x1] %vm235_vm3, %v8558_v20 }
  0x20   : > { %257 = vst.msk [vmem:[#allocation2 + $0xa1] sm:$0x1] %vm235_vm3, %v8558_v20  ;;  %258 = vst.msk [vmem:[#allocation2 + $0xb9] sm:$0x1] %vm235_vm3, %v8558_v20 }
  0x21   : > { %259 = vst.msk [vmem:[#allocation2 + $0xd1] sm:$0x1] %vm235_vm3, %v8558_v20  ;;  %260 = vst.msk [vmem:[#allocation2 + $0xe9] sm:$0x1] %vm235_vm3, %v8558_v20 }
  0x22   : > { %261 = vst.msk [vmem:[#allocation2 + $0x101] sm:$0x1] %vm235_vm3, %v8558_v20  ;;  %262 = vst.msk [vmem:[#allocation2 + $0x119] sm:$0x1] %vm235_vm3, %v8558_v20 }
  0x23   : > { %263 = vst.msk [vmem:[#allocation2 + $0x131] sm:$0x1] %vm235_vm3, %v8558_v20  ;;  %264 = vst.msk [vmem:[#allocation2 + $0x149] sm:$0x1] %vm235_vm3, %v8558_v20 }
  0x24   : > { %4972 = vmatmul.mubr.msk.bf16.gmra.mrb[8].mxu0 %vm425_vm1, %v320_v9  ;;  %265 = vst.msk [vmem:[#allocation2 + $0x161] sm:$0x1] %vm235_vm3, %v8558_v20  ;;  %266 = vst.msk [vmem:[#allocation2 + $0x179] sm:$0x1] %vm235_vm3, %v8558_v20 }
  0x25   : > { %4975 = vmatprep.mubr.msk.bf16.mxu0 %vm425_vm1, %v322_v10  ;;  %267 = vst.msk [vmem:[#allocation2 + $0x191] sm:$0x1] %vm235_vm3, %v8558_v20 }
  0x2c   : > { %4976 = vmatmul.mubr.msk.bf16.gmra.mrb[12].mxu0 %vm425_vm1, %v324_v11 }
  0x2d   : > { %4979 = vmatprep.mubr.msk.bf16.mxu0 %vm425_vm1, %v326_v12 }
  0x34   : > { %4980 = vmatmul.mubr.msk.bf16.gmra.mrb[16].mxu0 %vm425_vm1, %v328_v13 }
  0x35   : > { %4983 = vmatprep.mubr.msk.bf16.mxu0 %vm425_vm1, %v330_v14 }
  0x3c   : > { %4984 = vmatmul.mubr.msk.bf16.gmra.mrb[20].mxu0 %vm425_vm1, %v332_v15 }
  0x3d   : > { %4987 = vmatprep.mubr.msk.bf16.mxu0 %vm425_vm1, %v334_v16  ;;  %v5367_v16 = vadd.f32 %v860_v58, %v808_v57 }
  0x44   : > { %4988 = vmatmul.mubr.msk.bf16.gmra.mrb[24].mxu0 %vm425_vm1, %v336_v17 }
  0x45   : > { %4991 = vmatprep.mubr.msk.bf16.mxu0 %vm425_vm1, %v338_v18 }
  0x4c   : > { %4992 = vmatmul.mubr.msk.bf16.gmra.mrb[28].mxu0 %vm425_vm1, %v340_v19  ;;  %v5373_v19 = vld [vmem:[%s8555_s3 + $0x5] ss:$0 sm:$0xff] }
  0x81   : > { %v5400_v58 = vpop.permute.xlu0 %1261 }
  0xe7   : > { %v4965_v21 = vpop.f32.mrb[0].mxu0 }
  0xe8   : > { %v645_v22 = vmul.f32 %v4965_v21, %v5170_v2  ;;  %v512_v23 = vpop.f32.mrb[1].mxu0 }
  0xe9   : > { %v643_v24 = vmul.f32 %v5170_v2, %v512_v23  ;;  %v4966_v25 = vpop.f32.mrb[2].mxu0 }
  0xea   : > { %v681_v27 = vadd.f32 %v5175_v3, %v645_v22  ;;  %v646_v28 = vmul.f32 %v4966_v25, %v5170_v2  ;;  %v515_v29 = vpop.f32.mrb[3].mxu0 }
  0xeb   : > { %v679_v33 = vadd.f32 %v5175_v3, %v643_v24  ;;  %v644_v34 = vmul.f32 %v5170_v2, %v515_v29 }
  0xec   : > { %v713_v35 = vmax.f32 %v681_v27, 0.0  ;;  %v682_v36 = vadd.f32 %v5175_v3, %v646_v28 }
  0xed   : > { %v711_v37 = vmax.f32 %v679_v33, 0.0  ;;  %v680_v38 = vadd.f32 %v5175_v3, %v644_v34 }
  0xee   : > { %746 = vst.msk [vmem:[#allocation2 + $0x31] sm:$0xff] %vm743_vm4, %v713_v35  ;;  %v714_v41 = vmax.f32 %v682_v36, 0.0 }
  0xef   : > { %744 = vst.msk [vmem:[#allocation2 + $0x19] sm:$0xff] %vm743_vm4, %v711_v37  ;;  %v712_v44 = vmax.f32 %v680_v38, 0.0  ;;  %v4969_v45 = vpop.f32.mrb[4].mxu0 }
  0xf0   : > { %747 = vst.msk [vmem:[#allocation2 + $0x39] sm:$0xff] %vm743_vm4, %v714_v41  ;;  %v649_v48 = vmul.f32 %v4969_v45, %v5170_v2  ;;  %v528_v49 = vpop.f32.mrb[5].mxu0 }
  0xf1   : > { %745 = vst.msk [vmem:[#allocation2 + $0x21] sm:$0xff] %vm743_vm4, %v712_v44  ;;  %v647_v50 = vmul.f32 %v5170_v2, %v528_v49  ;;  %v4970_v51 = vpop.f32.mrb[6].mxu0 }
  0xf2   : > { %v685_v54 = vadd.f32 %v5175_v3, %v649_v48  ;;  %v650_v55 = vmul.f32 %v4970_v51, %v5170_v2  ;;  %v531_v56 = vpop.f32.mrb[7].mxu0 }
  0xf3   : > { %v683_v59 = vadd.f32 %v5175_v3, %v647_v50  ;;  %v648_v60 = vmul.f32 %v5170_v2, %v531_v56 }
  0xf4   : > { %v717_v63 = vmax.f32 %v685_v54, 0.0  ;;  %v686_v0 = vadd.f32 %v5175_v3, %v650_v55 }
  0xf5   : > { %v715_v5 = vmax.f32 %v683_v59, 0.0  ;;  %v684_v6 = vadd.f32 %v5175_v3, %v648_v60  ;;  %v1100_v9 = vld [vmem:[#allocation2 + $0x30] sm:$0xff] }
  0xf6   : > { %v1152_v10 = vld [vmem:[#allocation2 + $0x31] sm:$0xff]  ;;  %750 = vst.msk [vmem:[#allocation2 + $0x61] sm:$0xff] %vm743_vm4, %v717_v63  ;;  %v718_v11 = vmax.f32 %v686_v0, 0.0  ;;  %v995_v13 = vld [vmem:[#allocation2 + $0x19] sm:$0xff]  ;;  %v1120_v14 = vmul.f32 %v5338_v61, %v1100_v9  ;;  %v965_v24 = vmul.f32 %v5349_v1, %v1100_v9  ;;  %v811_v47 = vmul.f32 %v5302_v26, %v1100_v9 }
  0xf7   : > { %v943_v12 = vld [vmem:[#allocation2 + $0x18] sm:$0xff]  ;;  %v5365_v15 = vmul.f32 %v5343_v62, %v1152_v10  ;;  %748 = vst.msk [vmem:[#allocation2 + $0x49] sm:$0xff] %vm743_vm4, %v715_v5  ;;  %v716_v17 = vmax.f32 %v684_v6, 0.0  ;;  %v4973_v18 = vpop.f32.mrb[8].mxu0  ;;  %v1015_v28 = vmul.f32 %v5354_v4, %v995_v13  ;;  %v861_v32 = vmul.f32 %v5309_v30, %v995_v13 }
  0xf8   : > { %v963_v21 = vmul.f32 %v5349_v1, %v943_v12  ;;  %v1204_v22 = vld [vmem:[#allocation2 + $0x32] sm:$0xff]  ;;  %v809_v23 = vmul.f32 %v5302_v26, %v943_v12  ;;  %751 = vst.msk [vmem:[#allocation2 + $0x69] sm:$0xff] %vm743_vm4, %v718_v11  ;;  %v653_v25 = vmul.f32 %v4973_v18, %v5170_v2  ;;  %v544_v27 = vpop.f32.mrb[9].mxu0  ;;  %v1047_v29 = vld [vmem:[#allocation2 + $0x1a] sm:$0xff]  ;;  %v1017_v37 = vmul.f32 %v5354_v4, %v1152_v10 }
  0xf9   : > { %v1224_v31 = vmul.f32 %v5360_v7, %v1204_v22  ;;  %749 = vst.msk [vmem:[#allocation2 + $0x51] sm:$0xff] %vm743_vm4, %v716_v17  ;;  %v651_v33 = vmul.f32 %v5170_v2, %v544_v27  ;;  %v4974_v34 = vpop.f32.mrb[10].mxu0  ;;  %v913_v36 = vmul.f32 %v5321_v42, %v1047_v29  ;;  %v1067_v41 = vmul.f32 %v5373_v19, %v1047_v29 }
  0xfa   : > { %v979_v35 = vadd.f32 %v963_v21, %v927_v8  ;;  %v689_v38 = vadd.f32 %v5175_v3, %v653_v25  ;;  %v654_v39 = vmul.f32 %v4974_v34, %v5170_v2  ;;  %v547_v40 = vpop.f32.mrb[11].mxu0  ;;  %v877_v43 = vadd.f32 %v861_v32, %v809_v23 }
  0xfb   : > { %v687_v44 = vadd.f32 %v5175_v3, %v651_v33  ;;  %v652_v45 = vmul.f32 %v5170_v2, %v547_v40  ;;  %v863_v51 = vmul.f32 %v5309_v30, %v1152_v10  ;;  %v915_v55 = vmul.f32 %v5321_v42, %v1204_v22 }
  0xfc   : > { %v1031_v46 = vadd.f32 %v1015_v28, %v979_v35  ;;  %v721_v48 = vmax.f32 %v689_v38, 0.0  ;;  %v690_v49 = vadd.f32 %v5175_v3, %v654_v39  ;;  %v929_v50 = vadd.f32 %v913_v36, %v877_v43 }
  0xfd   : > { %v719_v52 = vmax.f32 %v687_v44, 0.0  ;;  %v688_v53 = vadd.f32 %v5175_v3, %v652_v45  ;;  %v5397_v56 = vld [vmem:[#allocation2 + $0x60] sm:$0xff]  ;;  %v1069_v60 = vmul.f32 %v5373_v19, %v1204_v22  ;;  %v879_v5 = vadd.f32 %v863_v51, %v811_v47 }
  0xfe   : > { %v1083_v54 = vadd.f32 %v1067_v41, %v1031_v46  ;;  %754 = vst.msk [vmem:[#allocation2 + $0x91] sm:$0xff] %vm743_vm4, %v721_v48  ;;  %v722_v57 = vmax.f32 %v690_v49, 0.0  ;;  %v981_v59 = vadd.f32 %v965_v24, %v929_v50  ;;  %v1102_v63 = vld [vmem:[#allocation2 + $0x48] sm:$0xff]  ;;  %v1124_v11 = vmul.f32 %v5338_v61, %v5397_v56  ;;  %v5423_v41 = vpop.permute.xlu0 %1285 }
  0xff   : > { %v1154_v0 = vld [vmem:[#allocation2 + $0x49] sm:$0xff]  ;;  %752 = vst.msk [vmem:[#allocation2 + $0x79] sm:$0xff] %vm743_vm4, %v719_v52  ;;  %v720_v6 = vmax.f32 %v688_v53, 0.0  ;;  %v4977_v8 = vpop.f32.mrb[12].mxu0  ;;  %v1122_v10 = vmul.f32 %v5338_v61, %v1102_v63  ;;  %v931_v21 = vadd.f32 %v915_v55, %v879_v5  ;;  %v967_v22 = vmul.f32 %v5349_v1, %v1102_v63  ;;  %v5420_v39 = vld [vmem:[#allocation2 + $0x61] sm:$0xff] }
 0x100   : > { %v1136_v9 = vadd.f32 %v1120_v14, %v1083_v54  ;;  %755 = vst.msk [vmem:[#allocation2 + $0x99] sm:$0xff] %vm743_vm4, %v722_v57  ;;  %v657_v12 = vmul.f32 %v4977_v8, %v5170_v2  ;;  %v560_v13 = vpop.f32.mrb[13].mxu0  ;;  %v1033_v17 = vadd.f32 %v1017_v37, %v981_v59  ;;  %v1206_v18 = vld [vmem:[#allocation2 + $0x4a] sm:$0xff]  ;;  %v1174_v25 = vmul.f32 %v5343_v62, %v1154_v0  ;;  %v5431_v52 = vld [vmem:[#allocation2 + $0x62] sm:$0xff] }
 0x101   : > { %753 = vst.msk [vmem:[#allocation2 + $0x81] sm:$0xff] %vm743_vm4, %v720_v6  ;;  %v655_v23 = vmul.f32 %v5170_v2, %v560_v13  ;;  %v4978_v14 = vpop.f32.mrb[14].mxu0  ;;  %v1019_v27 = vmul.f32 %v5354_v4, %v1154_v0  ;;  %v983_v34 = vadd.f32 %v967_v22, %v931_v21  ;;  %v1071_v38 = vmul.f32 %v5373_v19, %v1206_v18 }
 0x102   : > { %v1188_v24 = vadd.f32 %v5365_v15, %v1136_v9  ;;  %v693_v28 = vadd.f32 %v5175_v3, %v657_v12  ;;  %v658_v29 = vmul.f32 %v4978_v14, %v5170_v2  ;;  %v563_v32 = vpop.f32.mrb[15].mxu0  ;;  %v1085_v33 = vadd.f32 %v1069_v60, %v1033_v17 }
 0x103   : > { %v691_v35 = vadd.f32 %v5175_v3, %v655_v23  ;;  %v656_v36 = vmul.f32 %v5170_v2, %v563_v32  ;;  %v1035_v44 = vadd.f32 %v1019_v27, %v983_v34  ;;  %v1226_v48 = vmul.f32 %v5360_v7, %v1206_v18  ;;  %v892_v27 = vld [vmem:[#allocation2 + $0xa] sm:$0xff] }
 0x104   : > { %v1240_v37 = vadd.f32 %v1224_v31, %v1188_v24  ;;  %v725_v15 = vmax.f32 %v693_v28, 0.0  ;;  %v694_v40 = vadd.f32 %v5175_v3, %v658_v29  ;;  %v1138_v43 = vadd.f32 %v1122_v10, %v1085_v33 }
 0x105   : > { %v723_v45 = vmax.f32 %v691_v35, 0.0  ;;  %v692_v46 = vadd.f32 %v5175_v3, %v656_v36  ;;  %v1087_v50 = vadd.f32 %v1071_v38, %v1035_v44  ;;  %v1176_v51 = vmul.f32 %v5343_v62, %v5420_v39 }
 0x106   : > { %v1264_v47 = vmul.f32 %v5400_v58, %v1240_v37  ;;  %758 = vst.msk [vmem:[#allocation2 + $0xc1] sm:$0xff] %vm743_vm4, %v725_v15  ;;  %v726_v31 = vmax.f32 %v694_v40, 0.0  ;;  %v1190_v49 = vadd.f32 %v1174_v25, %v1138_v43  ;;  %v813_v57 = vmul.f32 %v5302_v26, %v1102_v63  ;;  %v5454_v34 = vld [vmem:[#allocation2 + $0x78] sm:$0xff] }
 0x107   : > { %756 = vst.msk [vmem:[#allocation2 + $0xa9] sm:$0xff] %vm743_vm4, %v723_v45  ;;  %v724_v53 = vmax.f32 %v692_v46, 0.0  ;;  %v4981_v54 = vpop.f32.mrb[16].mxu0  ;;  %v865_v59 = vmul.f32 %v5309_v30, %v1154_v0  ;;  %v1140_v8 = vadd.f32 %v1124_v11, %v1087_v50  ;;  %v917_v9 = vmul.f32 %v5321_v42, %v1206_v18  ;;  %v5461_v44 = vld [vmem:[#allocation2 + $0x79] sm:$0xff] }
 0x108   : > { %v1288_v55 = vadd.f32 %v5423_v41, %v1264_v47  ;;  %759 = vst.msk [vmem:[#allocation2 + $0xc9] sm:$0xff] %vm743_vm4, %v726_v31  ;;  %v661_v60 = vmul.f32 %v4981_v54, %v5170_v2  ;;  %v576_v5 = vpop.f32.mrb[17].mxu0  ;;  %v1242_v6 = vadd.f32 %v1226_v48, %v1190_v49  ;;  %v1228_v63 = vmul.f32 %v5360_v7, %v5431_v52  ;;  %v5475_v54 = vld [vmem:[#allocation2 + $0x7a] sm:$0xff] }
 0x109   : > { %757 = vst.msk [vmem:[#allocation2 + $0xb1] sm:$0xff] %vm743_vm4, %v724_v53  ;;  %v659_v10 = vmul.f32 %v5170_v2, %v576_v5  ;;  %v4982_v12 = vpop.f32.mrb[18].mxu0  ;;  %v881_v17 = vadd.f32 %v865_v59, %v813_v57  ;;  %v1192_v11 = vadd.f32 %v1176_v51, %v1140_v8  ;;  %v969_v25 = vmul.f32 %v5349_v1, %v5397_v56 }
 0x10a   : > { %v1304_v13 = vmax.f32 %v1288_v55, 0.0  ;;  %v697_v0 = vadd.f32 %v5175_v3, %v661_v60  ;;  %v662_v21 = vmul.f32 %v4982_v12, %v5170_v2  ;;  %v579_v22 = vpop.f32.mrb[19].mxu0  ;;  %v1266_v23 = vmul.f32 %v5400_v58, %v1242_v6 }
 0x10b   : > { %v695_v18 = vadd.f32 %v5175_v3, %v659_v10  ;;  %v660_v14 = vmul.f32 %v5170_v2, %v579_v22  ;;  %v933_v24 = vadd.f32 %v917_v9, %v881_v17  ;;  %v1244_v33 = vadd.f32 %v1228_v63, %v1192_v11 }
 0x10c   : > { %1336 = vrot.lane.b32.xlu0 %v1304_v13, %s5120_s27  ;;  %v729_v28 = vmax.f32 %v697_v0, 0.0  ;;  %v698_v29 = vadd.f32 %v5175_v3, %v662_v21  ;;  %v1290_v32 = vadd.f32 %v5423_v41, %v1266_v23  ;;  %v1021_v38 = vmul.f32 %v5354_v4, %v5420_v39  ;;  %v5495_v21 = vld [vmem:[#allocation2 + $0x90] sm:$0xff] }
 0x10d   : > { %v727_v35 = vmax.f32 %v695_v18, 0.0  ;;  %v696_v36 = vadd.f32 %v5175_v3, %v660_v14  ;;  %v985_v37 = vadd.f32 %v969_v25, %v933_v24  ;;  %v1268_v43 = vmul.f32 %v5400_v58, %v1244_v33 }
 0x10e   : > { %762 = vst.msk [vmem:[#allocation2 + $0xf1] sm:$0xff] %vm743_vm4, %v729_v28  ;;  %v730_v15 = vmax.f32 %v698_v29, 0.0  ;;  %v1306_v40 = vmax.f32 %v1290_v32, 0.0  ;;  %v5464_v45 = vmul.f32 %v5321_v42, %v892_v27  ;;  %v1073_v31 = vmul.f32 %v5373_v19, %v5431_v52  ;;  %v5500_v18 = vld [vmem:[#allocation2 + $0xa8] sm:$0xff]  ;;  %v5507_v29 = vld [vmem:[#allocation2 + $0x91] sm:$0xff] }
 0x10f   : > { %760 = vst.msk [vmem:[#allocation2 + $0xd9] sm:$0xff] %vm743_vm4, %v727_v35  ;;  %v728_v46 = vmax.f32 %v696_v36, 0.0  ;;  %v4985_v47 = vpop.f32.mrb[20].mxu0  ;;  %v1037_v48 = vadd.f32 %v1021_v38, %v985_v37  ;;  %v1126_v49 = vmul.f32 %v5338_v61, %v5454_v34  ;;  %v1292_v53 = vadd.f32 %v5423_v41, %v1268_v43  ;;  %v5502_v14 = vld [vmem:[#allocation2 + $0xa9] sm:$0xff]  ;;  %v5516_v38 = vld [vmem:[#allocation2 + $0x92] sm:$0xff] }
 0x110   : > { %763 = vst.msk [vmem:[#allocation2 + $0xf9] sm:$0xff] %vm743_vm4, %v730_v15  ;;  %1340 = vrot.lane.b32.xlu0 %v1306_v40, %s5120_s27  ;;  %v665_v50 = vmul.f32 %v4985_v47, %v5170_v2  ;;  %v592_v51 = vpop.f32.mrb[21].mxu0  ;;  %v815_v55 = vmul.f32 %v5302_v26, %v5397_v56  ;;  %v867_v57 = vmul.f32 %v5309_v30, %v5420_v39  ;;  %v5509_v32 = vld [vmem:[#allocation2 + $0xaa] sm:$0xff] }
 0x111   : > { %761 = vst.msk [vmem:[#allocation2 + $0xe1] sm:$0xff] %vm743_vm4, %v728_v46  ;;  %v663_v59 = vmul.f32 %v5170_v2, %v592_v51  ;;  %v4986_v60 = vpop.f32.mrb[22].mxu0  ;;  %v1089_v5 = vadd.f32 %v1073_v31, %v1037_v48  ;;  %v1178_v6 = vmul.f32 %v5343_v62, %v5461_v44  ;;  %v919_v8 = vmul.f32 %v5321_v42, %v5431_v52  ;;  %v5523_v48 = vld [vmem:[#allocation2 + $0xc0] sm:$0xff] }
 0x112   : > { %v701_v9 = vadd.f32 %v5175_v3, %v665_v50  ;;  %v666_v10 = vmul.f32 %v4986_v60, %v5170_v2  ;;  %v595_v56 = vpop.f32.mrb[23].mxu0  ;;  %v883_v12 = vadd.f32 %v867_v57, %v815_v55  ;;  %v971_v39 = vmul.f32 %v5349_v1, %v5454_v34 }
 0x113   : > { %v699_v13 = vadd.f32 %v5175_v3, %v663_v59  ;;  %v664_v63 = vmul.f32 %v5170_v2, %v595_v56  ;;  %v1142_v17 = vadd.f32 %v1126_v49, %v1089_v5  ;;  %v1230_v0 = vmul.f32 %v5360_v7, %v5475_v54 }
 0x114   : > { %v733_v52 = vmax.f32 %v701_v9, 0.0  ;;  %v702_v22 = vadd.f32 %v5175_v3, %v666_v10  ;;  %1996 = vrot.lane.b32.xlu0 %v5302_v26, %s5118_s26  ;;  %v1308_v23 = vmax.f32 %v1292_v53, 0.0  ;;  %v935_v11 = vadd.f32 %v919_v8, %v883_v12 }
 0x115   : > { %v731_v24 = vmax.f32 %v699_v13, 0.0  ;;  %v700_v25 = vadd.f32 %v5175_v3, %v664_v63  ;;  %v1194_v27 = vadd.f32 %v1178_v6, %v1142_v17  ;;  %v1023_v28 = vmul.f32 %v5354_v4, %v5461_v44  ;;  %v5537_v6 = vld [vmem:[#allocation2 + $0xc1] sm:$0xff] }
 0x116   : > { %766 = vst.msk [vmem:[#allocation2 + $0x121] sm:$0xff] %vm743_vm4, %v733_v52  ;;  %v734_v33 = vmax.f32 %v702_v22, 0.0  ;;  %v987_v35 = vadd.f32 %v971_v39, %v935_v11  ;;  %v1075_v36 = vmul.f32 %v5373_v19, %v5475_v54  ;;  %v1128_v37 = vmul.f32 %v5338_v61, %v5495_v21  ;;  %v5543_v39 = vld [vmem:[#allocation2 + $0xc2] sm:$0xff]  ;;  %v5548_v52 = vld [vmem:[#allocation2 + $0xd8] sm:$0xff] }
 0x117   : > { %764 = vst.msk [vmem:[#allocation2 + $0x109] sm:$0xff] %vm743_vm4, %v731_v24  ;;  %v732_v15 = vmax.f32 %v700_v25, 0.0  ;;  %v4989_v40 = vpop.f32.mrb[24].mxu0  ;;  %v1246_v43 = vadd.f32 %v1230_v0, %v1194_v27  ;;  %v821_v46 = vmul.f32 %v5302_v26, %v5500_v18  ;;  %v873_v47 = vmul.f32 %v5309_v30, %v5502_v14  ;;  %v5555_v25 = vld [vmem:[#allocation2 + $0xb0] sm:$0xff] }
 0x118   : > { %767 = vst.msk [vmem:[#allocation2 + $0x129] sm:$0xff] %vm743_vm4, %v734_v33  ;;  %1344 = vrot.lane.b32.xlu0 %v1308_v23, %s5120_s27  ;;  %v669_v31 = vmul.f32 %v4989_v40, %v5170_v2  ;;  %v608_v49 = vpop.f32.mrb[25].mxu0  ;;  %v1039_v50 = vadd.f32 %v1023_v28, %v987_v35  ;;  %v1180_v51 = vmul.f32 %v5343_v62, %v5507_v29  ;;  %v5557_v27 = vld [vmem:[#allocation2 + $0xb1] sm:$0xff]  ;;  %v5564_v40 = vld [vmem:[#allocation2 + $0xda] sm:$0xff] }
 0x119   : > { %v925_v53 = vmul.f32 %v5321_v42, %v5509_v32  ;;  %765 = vst.msk [vmem:[#allocation2 + $0x111] sm:$0xff] %vm743_vm4, %v732_v15  ;;  %v667_v55 = vmul.f32 %v5170_v2, %v608_v49  ;;  %v4990_v57 = vpop.f32.mrb[26].mxu0  ;;  %v1270_v59 = vmul.f32 %v5400_v58, %v1246_v43  ;;  %v1232_v60 = vmul.f32 %v5360_v7, %v5516_v38  ;;  %v5562_v15 = vld [vmem:[#allocation2 + $0xd9] sm:$0xff] }
 0x11a   : > { %v889_v5 = vadd.f32 %v873_v47, %v821_v46  ;;  %v705_v8 = vadd.f32 %v5175_v3, %v669_v31  ;;  %v670_v9 = vmul.f32 %v4990_v57, %v5170_v2  ;;  %v611_v10 = vpop.f32.mrb[27].mxu0  ;;  %v1091_v56 = vadd.f32 %v1075_v36, %v1039_v50  ;;  %v5569_v31 = vld [vmem:[#allocation2 + $0xb2] sm:$0xff] }
 0x11b   : > { %v977_v12 = vmul.f32 %v5349_v1, %v5523_v48  ;;  %v703_v13 = vadd.f32 %v5175_v3, %v667_v55  ;;  %v668_v63 = vmul.f32 %v5170_v2, %v611_v10  ;;  %v1294_v17 = vadd.f32 %v5423_v41, %v1270_v59  ;;  %v5576_v59 = vld [vmem:[#allocation2 + $0xc8] sm:$0xff] }
 0x11c   : > { %v941_v0 = vadd.f32 %v925_v53, %v889_v5  ;;  %v737_v22 = vmax.f32 %v705_v8, 0.0  ;;  %v706_v23 = vadd.f32 %v5175_v3, %v670_v9  ;;  %2108 = vrot.lane.b32.xlu0 %v5321_v42, %s5118_s26  ;;  %v1144_v11 = vadd.f32 %v1128_v37, %v1091_v56 }
 0x11d   : > { %v1029_v24 = vmul.f32 %v5354_v4, %v5537_v6  ;;  %v735_v28 = vmax.f32 %v703_v13, 0.0  ;;  %v704_v33 = vadd.f32 %v5175_v3, %v668_v63  ;;  %v1081_v36 = vmul.f32 %v5373_v19, %v5543_v39 }
 0x11e   : > { %v993_v35 = vadd.f32 %v977_v12, %v941_v0  ;;  %770 = vst.msk [vmem:[#allocation2 + $0x151] sm:$0xff] %vm743_vm4, %v737_v22  ;;  %v738_v37 = vmax.f32 %v706_v23, 0.0  ;;  %v1310_v43 = vmax.f32 %v1294_v17, 0.0  ;;  %v1196_v46 = vadd.f32 %v1180_v51, %v1144_v11  ;;  %v5589_v0 = vld [vmem:[#allocation2 + $0xc9] sm:$0xff] }
 0x11f   : > { %v1134_v47 = vmul.f32 %v5338_v61, %v5548_v52  ;;  %768 = vst.msk [vmem:[#allocation2 + $0x139] sm:$0xff] %vm743_vm4, %v735_v28  ;;  %v736_v49 = vmax.f32 %v704_v33, 0.0  ;;  %v4993_v50 = vpop.f32.mrb[28].mxu0  ;;  %v822_v55 = vmul.f32 %v5302_v26, %v5555_v25  ;;  %v874_v57 = vmul.f32 %v5309_v30, %v5557_v27 }
 0x120   : > { %v1045_v53 = vadd.f32 %v1029_v24, %v993_v35  ;;  %771 = vst.msk [vmem:[#allocation2 + $0x159] sm:$0xff] %vm743_vm4, %v738_v37  ;;  %1348 = vrot.lane.b32.xlu0 %v1310_v43, %s5120_s27  ;;  %v673_v51 = vmul.f32 %v4993_v50, %v5170_v2  ;;  %v624_v5 = vpop.f32.mrb[29].mxu0  ;;  %v1248_v8 = vadd.f32 %v1232_v60, %v1196_v46  ;;  %v5598_v37 = vld [vmem:[#allocation2 + $0xca] sm:$0xff] }
 0x121   : > { %v1186_v9 = vmul.f32 %v5343_v62, %v5562_v15  ;;  %v1238_v10 = vmul.f32 %v5360_v7, %v5564_v40  ;;  %769 = vst.msk [vmem:[#allocation2 + $0x141] sm:$0xff] %vm743_vm4, %v736_v49  ;;  %v671_v56 = vmul.f32 %v5170_v2, %v624_v5  ;;  %v4994_v12 = vpop.f32.mrb[30].mxu0  ;;  %v890_v63 = vadd.f32 %v874_v57, %v822_v55 }
 0x122   : > { %v1097_v13 = vadd.f32 %v1081_v36, %v1045_v53  ;;  %v926_v17 = vmul.f32 %v5321_v42, %v5569_v31  ;;  %v709_v60 = vadd.f32 %v5175_v3, %v673_v51  ;;  %v674_v22 = vmul.f32 %v4994_v12, %v5170_v2  ;;  %v627_v23 = vpop.f32.mrb[31].mxu0 }
 0x123   : > { %v1272_v11 = vmul.f32 %v5400_v58, %v1248_v8  ;;  %v978_v24 = vmul.f32 %v5349_v1, %v5576_v59  ;;  %v707_v28 = vadd.f32 %v5175_v3, %v671_v56  ;;  %v672_v33 = vmul.f32 %v5170_v2, %v627_v23  ;;  %v5610_v8 = vld [vmem:[#allocation2 + $0xe0] sm:$0xff] }
 0x124   : > { %v1150_v35 = vadd.f32 %v1134_v47, %v1097_v13  ;;  %v942_v36 = vadd.f32 %v926_v17, %v890_v63  ;;  %v741_v43 = vmax.f32 %v709_v60, 0.0  ;;  %v710_v46 = vadd.f32 %v5175_v3, %v674_v22  ;;  %2220 = vrot.lane.b32.xlu0 %v5354_v4, %s5118_s26  ;;  %v5613_v63 = vld [vmem:[#allocation2 + $0xe1] sm:$0xff] }
 0x125   : > { %v1296_v49 = vadd.f32 %v5423_v41, %v1272_v11  ;;  %v1030_v50 = vmul.f32 %v5354_v4, %v5589_v0  ;;  %v739_v53 = vmax.f32 %v707_v28, 0.0  ;;  %v708_v55 = vadd.f32 %v5175_v3, %v672_v33  ;;  %8630 = vst [vmem:[#allocation5_spill] sm:$0xff] %v5613_v63  ;;  %v5615_v17 = vld [vmem:[#allocation2 + $0xe2] sm:$0xff] }
 0x126   : > { %v1202_v57 = vadd.f32 %v1186_v9, %v1150_v35  ;;  %v994_v2 = vadd.f32 %v978_v24, %v942_v36  ;;  %774 = vst.msk [vmem:[#allocation2 + $0x181] sm:$0xff] %vm743_vm4, %v741_v43  ;;  %v742_v47 = vmax.f32 %v710_v46, 0.0  ;;  %v1082_v5 = vmul.f32 %v5373_v19, %v5598_v37  ;;  %8631 = vst [vmem:[#allocation6_spill] sm:$0xff] %v5615_v17  ;;  %v944_v9 = vld [vmem:[#allocation2 + $0x20] sm:$0xff] }
 0x127   : > { %v1312_v51 = vmax.f32 %v1296_v49, 0.0  ;;  %772 = vst.msk [vmem:[#allocation2 + $0x169] sm:$0xff] %vm743_vm4, %v739_v53  ;;  %v740_v56 = vmax.f32 %v708_v55, 0.0  ;;  %v817_v3 = vmul.f32 %v5302_v26, %v5454_v34  ;;  %v869_v60 = vmul.f32 %v5309_v30, %v5461_v44  ;;  %v996_v24 = vld [vmem:[#allocation2 + $0x21] sm:$0xff]  ;;  %v1101_v55 = vld [vmem:[#allocation2 + $0x38] sm:$0xff] }
 0x128   : > { %v1254_v12 = vadd.f32 %v1238_v10, %v1202_v57  ;;  %v1046_v13 = vadd.f32 %v1030_v50, %v994_v2  ;;  %775 = vst.msk [vmem:[#allocation2 + $0x189] sm:$0xff] %vm743_vm4, %v742_v47  ;;  %v921_v22 = vmul.f32 %v5321_v42, %v5475_v54  ;;  %v928_v10 = vadd.f32 %v5464_v45, %v5367_v16  ;;  %v1048_v43 = vld [vmem:[#allocation2 + $0x22] sm:$0xff]  ;;  %v1153_v57 = vld [vmem:[#allocation2 + $0x39] sm:$0xff] }
 0x129   : > { %1352 = vrot.lane.b32.xlu0 %v1312_v51, %s5120_s27  ;;  %773 = vst.msk [vmem:[#allocation2 + $0x171] sm:$0xff] %vm743_vm4, %v740_v56  ;;  %v1135_v34 = vmul.f32 %v5338_v61, %v5610_v8  ;;  %v1187_v28 = vmul.f32 %v5343_v62, %v5613_v63  ;;  %v1239_v44 = vmul.f32 %v5360_v7, %v5615_v17 }
 0x12a   : > { %v1278_v23 = vmul.f32 %v5400_v58, %v1254_v12  ;;  %v1098_v11 = vadd.f32 %v1082_v5, %v1046_v13  ;;  %v885_v33 = vadd.f32 %v869_v60, %v817_v3  ;;  %v964_v54 = vmul.f32 %v5349_v1, %v944_v9  ;;  %v1205_v3 = vld [vmem:[#allocation2 + $0x3a] sm:$0xff] }
 0x12b   : > { %v973_v35 = vmul.f32 %v5349_v1, %v5495_v21  ;;  %v1025_v36 = vmul.f32 %v5354_v4, %v5507_v29  ;;  %v1077_v49 = vmul.f32 %v5373_v19, %v5516_v38  ;;  %v1016_v53 = vmul.f32 %v5354_v4, %v996_v24 }
 0x12c   : > { %v1302_v16 = vadd.f32 %v5423_v41, %v1278_v23  ;;  %v1151_v45 = vadd.f32 %v1135_v34, %v1098_v11  ;;  %v937_v46 = vadd.f32 %v921_v22, %v885_v33  ;;  %v980_v50 = vadd.f32 %v964_v54, %v928_v10  ;;  %v5651_v22 = vld [vmem:[#allocation2 + $0x98] sm:$0xff] }
 0x12d   : > { %2332 = vrot.lane.b32.xlu0 %v5338_v61, %s5118_s26  ;;  %v1130_v51 = vmul.f32 %v5338_v61, %v5500_v18  ;;  %v810_v5 = vmul.f32 %v5302_v26, %v944_v9  ;;  %v1068_v13 = vmul.f32 %v5373_v19, %v1048_v43  ;;  %v862_v60 = vmul.f32 %v5309_v30, %v996_v24  ;;  %v5658_v9 = vld [vmem:[#allocation2 + $0x99] sm:$0xff] }
 0x12e   : > { %v1318_v2 = vmax.f32 %v1302_v16, 0.0  ;;  %v1203_v47 = vadd.f32 %v1187_v28, %v1151_v45  ;;  %v989_v56 = vadd.f32 %v973_v35, %v937_v46  ;;  %v1032_v12 = vadd.f32 %v1016_v53, %v980_v50  ;;  %v5661_v24 = vld [vmem:[#allocation2 + $0x9a] sm:$0xff] }
 0x12f   : > { %v1182_v23 = vmul.f32 %v5343_v62, %v5502_v14  ;;  %v1121_v11 = vmul.f32 %v5338_v61, %v1101_v55  ;;  %v1173_v34 = vmul.f32 %v5343_v62, %v1153_v57  ;;  %v878_v54 = vadd.f32 %v862_v60, %v810_v5 }
 0x130   : > { %1364 = vrot.lane.b32.xlu1 %v1318_v2, %s5120_s27  ;;  %v1255_v10 = vadd.f32 %v1239_v44, %v1203_v47  ;;  %v1041_v28 = vadd.f32 %v1025_v36, %v989_v56  ;;  %v1084_v33 = vadd.f32 %v1068_v13, %v1032_v12  ;;  %v914_v16 = vmul.f32 %v5321_v42, %v1048_v43  ;;  %v1103_v47 = vld [vmem:[#allocation2 + $0x50] sm:$0xff] }
 0x131   : > { %v1225_v44 = vmul.f32 %v5360_v7, %v1205_v3  ;;  %v966_v35 = vmul.f32 %v5349_v1, %v1101_v55  ;;  %v820_v46 = vmul.f32 %v5302_v26, %v5651_v22  ;;  %v872_v36 = vmul.f32 %v5309_v30, %v5658_v9 }
 0x132   : > { %v1279_v45 = vmul.f32 %v5400_v58, %v1255_v10  ;;  %v1093_v50 = vadd.f32 %v1077_v49, %v1041_v28  ;;  %v1137_v53 = vadd.f32 %v1121_v11, %v1084_v33  ;;  %v930_v2 = vadd.f32 %v914_v16, %v878_v54  ;;  %v1155_v49 = vld [vmem:[#allocation2 + $0x51] sm:$0xff] }
 0x133   : > { %v1018_v5 = vmul.f32 %v5354_v4, %v1153_v57  ;;  %v924_v56 = vmul.f32 %v5321_v42, %v5661_v24  ;;  %v976_v12 = vmul.f32 %v5349_v1, %v5555_v25  ;;  %v888_v11 = vadd.f32 %v872_v36, %v820_v46  ;;  %v1207_v36 = vld [vmem:[#allocation2 + $0x52] sm:$0xff] }
 0x134   : > { %v1303_v43 = vadd.f32 %v5423_v41, %v1279_v45  ;;  %v1146_v13 = vadd.f32 %v1130_v51, %v1093_v50  ;;  %v1189_v60 = vadd.f32 %v1173_v34, %v1137_v53  ;;  %v982_v10 = vadd.f32 %v966_v35, %v930_v2 }
 0x135   : > { %v1234_v33 = vmul.f32 %v5360_v7, %v5509_v32  ;;  %v1070_v54 = vmul.f32 %v5373_v19, %v1205_v3  ;;  %v1123_v16 = vmul.f32 %v5338_v61, %v1103_v47  ;;  %v940_v63 = vadd.f32 %v924_v56, %v888_v11 }
 0x136   : > { %v1319_v28 = vmax.f32 %v1303_v43, 0.0  ;;  %v1198_v45 = vadd.f32 %v1182_v23, %v1146_v13  ;;  %v1241_v20 = vadd.f32 %v1225_v44, %v1189_v60  ;;  %v1034_v17 = vadd.f32 %v1018_v5, %v982_v10 }
 0x137   : > { %v1175_v51 = vmul.f32 %v5343_v62, %v1155_v49  ;;  %v1028_v34 = vmul.f32 %v5354_v4, %v5557_v27  ;;  %v812_v35 = vmul.f32 %v5302_v26, %v1101_v55  ;;  %v864_v46 = vmul.f32 %v5309_v30, %v1153_v57 }
 0x138   : > { %1366 = vrot.lane.b32.xlu1 %v1319_v28, %s5120_s27  ;;  %v1250_v50 = vadd.f32 %v1234_v33, %v1198_v45  ;;  %v1265_v53 = vmul.f32 %v5400_v58, %v1241_v20  ;;  %v1086_v2 = vadd.f32 %v1070_v54, %v1034_v17  ;;  %v992_v23 = vadd.f32 %v976_v12, %v940_v63  ;;  %v1105_v54 = vld [vmem:[#allocation2 + $0x68] sm:$0xff] }
 0x139   : > { %v1080_v44 = vmul.f32 %v5373_v19, %v5569_v31  ;;  %v880_v43 = vadd.f32 %v864_v46, %v812_v35  ;;  %v916_v5 = vmul.f32 %v5321_v42, %v1205_v3  ;;  %v968_v56 = vmul.f32 %v5349_v1, %v1103_v47 }
 0x13a   : > { %v1274_v13 = vmul.f32 %v5400_v58, %v1250_v50  ;;  %v1289_v55 = vadd.f32 %v5423_v41, %v1265_v53  ;;  %v1139_v60 = vadd.f32 %v1123_v16, %v1086_v2  ;;  %v1044_v57 = vadd.f32 %v1028_v34, %v992_v23  ;;  %v1157_v53 = vld [vmem:[#allocation2 + $0x69] sm:$0xff] }
 0x13b   : > { %v1227_v10 = vmul.f32 %v5360_v7, %v1207_v36  ;;  %v1133_v20 = vmul.f32 %v5338_v61, %v5576_v59  ;;  %v932_v63 = vadd.f32 %v916_v5, %v880_v43  ;;  %v1020_v33 = vmul.f32 %v5354_v4, %v1155_v49  ;;  %v1209_v5 = vld [vmem:[#allocation2 + $0x6a] sm:$0xff] }
 0x13c   : > { %v1298_v17 = vadd.f32 %v5423_v41, %v1274_v13  ;;  %v1305_v12 = vmax.f32 %v1289_v55, 0.0  ;;  %v1191_v11 = vadd.f32 %v1175_v51, %v1139_v60  ;;  %v1096_v28 = vadd.f32 %v1080_v44, %v1044_v57  ;;  %v1107_v55 = vld [vmem:[#allocation2 + $0x80] sm:$0xff] }
 0x13d   : > { %v984_v3 = vadd.f32 %v968_v56, %v932_v63  ;;  %v814_v45 = vmul.f32 %v5302_v26, %v1103_v47  ;;  %v866_v16 = vmul.f32 %v5309_v30, %v1155_v49  ;;  %v1185_v59 = vmul.f32 %v5343_v62, %v5589_v0 }
 0x13e   : > { %v1314_v34 = vmax.f32 %v1298_v17, 0.0  ;;  %1338 = vrot.lane.b32.xlu1 %v1305_v12, %s5120_s27  ;;  %v1243_v35 = vadd.f32 %v1227_v10, %v1191_v11  ;;  %v1149_v46 = vadd.f32 %v1133_v20, %v1096_v28  ;;  %v1072_v51 = vmul.f32 %v5373_v19, %v1207_v36 }
 0x13f   : > { %v1036_v50 = vadd.f32 %v1020_v33, %v984_v3  ;;  %v882_v2 = vadd.f32 %v866_v16, %v814_v45  ;;  %v918_v23 = vmul.f32 %v5321_v42, %v1207_v36  ;;  %v1237_v44 = vmul.f32 %v5360_v7, %v5598_v37  ;;  %v1159_v3 = vld [vmem:[#allocation2 + $0x81] sm:$0xff] }
 0x140   : > { %1356 = vrot.lane.b32.xlu0 %v1314_v34, %s5120_s27  ;;  %v1267_v47 = vmul.f32 %v5400_v58, %v1243_v35  ;;  %v1201_v49 = vadd.f32 %v1185_v59, %v1149_v46  ;;  %v1125_v43 = vmul.f32 %v5338_v61, %v1105_v54  ;;  %v970_v13 = vmul.f32 %v5349_v1, %v1105_v54  ;;  %v1211_v46 = vld [vmem:[#allocation2 + $0x82] sm:$0xff] }
 0x141   : > { %v1088_v56 = vadd.f32 %v1072_v51, %v1036_v50  ;;  %v934_v0 = vadd.f32 %v918_v23, %v882_v2  ;;  %v816_v60 = vmul.f32 %v5302_v26, %v1105_v54  ;;  %v1177_v10 = vmul.f32 %v5343_v62, %v1157_v53 }
 0x142   : > { %v1291_v36 = vadd.f32 %v5423_v41, %v1267_v47  ;;  %v1253_v57 = vadd.f32 %v1237_v44, %v1201_v49  ;;  %v868_v20 = vmul.f32 %v5309_v30, %v1157_v53  ;;  %v1022_v37 = vmul.f32 %v5354_v4, %v1157_v53 }
 0x143   : > { %v1141_v63 = vadd.f32 %v1125_v43, %v1088_v56  ;;  %v986_v17 = vadd.f32 %v970_v13, %v934_v0  ;;  %v920_v12 = vmul.f32 %v5321_v42, %v1209_v5  ;;  %v972_v54 = vmul.f32 %v5349_v1, %v1107_v55 }
 0x144   : > { %2444 = vrot.lane.b32.xlu0 %v5360_v7, %s5118_s26  ;;  %v1307_v11 = vmax.f32 %v1291_v36, 0.0  ;;  %v1277_v28 = vmul.f32 %v5400_v58, %v1253_v57  ;;  %v884_v33 = vadd.f32 %v868_v20, %v816_v60  ;;  %v1229_v16 = vmul.f32 %v5360_v7, %v1209_v5 }
 0x145   : > { %v1193_v45 = vadd.f32 %v1177_v10, %v1141_v63  ;;  %v1038_v34 = vadd.f32 %v1022_v37, %v986_v17  ;;  %v1074_v35 = vmul.f32 %v5373_v19, %v1209_v5  ;;  %v1127_v50 = vmul.f32 %v5338_v61, %v1107_v55  ;;  %v4888_v37 = vld [vmem:[%s8556_s4 + $0x1] ss:$0 sm:$0xff] }
 0x146   : > { %1342 = vrot.lane.b32.xlu1 %v1307_v11, %s5120_s27  ;;  %v1301_v59 = vadd.f32 %v5423_v41, %v1277_v28  ;;  %v936_v51 = vadd.f32 %v920_v12, %v884_v33  ;;  %v818_v53 = vmul.f32 %v5302_v26, %v1107_v55  ;;  %v1179_v47 = vmul.f32 %v5343_v62, %v1159_v3  ;;  %v5755_v28 = vld [vmem:[%s8555_s3 + $0x1] ss:$0 sm:$0xff] }
 0x147   : > { %v1245_v2 = vadd.f32 %v1229_v16, %v1193_v45  ;;  %v1090_v23 = vadd.f32 %v1074_v35, %v1038_v34  ;;  %v870_v49 = vmul.f32 %v5309_v30, %v1159_v3  ;;  %v1231_v43 = vmul.f32 %v5360_v7, %v1211_v46  ;;  %8632 = vst [vmem:[#allocation7_spill] sm:$0xff] %v5755_v28 }
 0x148   : > { %v1317_v44 = vmax.f32 %v1301_v59, 0.0  ;;  %v988_v5 = vadd.f32 %v972_v54, %v936_v51  ;;  %v1024_v56 = vmul.f32 %v5354_v4, %v1159_v3  ;;  %v922_v36 = vmul.f32 %v5321_v42, %v1211_v46 }
 0x149   : > { %v1269_v0 = vmul.f32 %v5400_v58, %v1245_v2  ;;  %v1143_v13 = vadd.f32 %v1127_v50, %v1090_v23  ;;  %v886_v60 = vadd.f32 %v870_v49, %v818_v53  ;;  %v1076_v55 = vmul.f32 %v5373_v19, %v1211_v46 }
 0x14a   : > { %1362 = vrot.lane.b32.xlu0 %v1317_v44, %s5120_s27  ;;  %2052 = vrot.lane.b32.xlu1 %v5309_v30, %s5118_s26  ;;  %v1040_v26 = vadd.f32 %v1024_v56, %v988_v5  ;;  %v1129_v57 = vmul.f32 %v5338_v61, %v5651_v22  ;;  %v974_v17 = vmul.f32 %v5349_v1, %v5651_v22  ;;  %v5748_v30 = vld [vmem:[%s8555_s3] ss:$0 sm:$0xff] }
 0x14b   : > { %v1293_v10 = vadd.f32 %v5423_v41, %v1269_v0  ;;  %v1195_v20 = vadd.f32 %v1179_v47, %v1143_v13  ;;  %v938_v63 = vadd.f32 %v922_v36, %v886_v60  ;;  %v819_v11 = vmul.f32 %v5748_v30, %v5495_v21  ;;  %v5803_v0 = vld [vmem:[%s8555_s3 + $0x7] ss:$0 sm:$0xff] }
 0x14c   : > { %v1092_v12 = vadd.f32 %v1076_v55, %v1040_v26  ;;  %v871_v22 = vmul.f32 %v5755_v28, %v5507_v29  ;;  %v923_v3 = vmul.f32 %v5321_v42, %v5516_v38  ;;  %v1026_v16 = vmul.f32 %v5354_v4, %v5658_v9 }
 0x14d   : > { %v1309_v33 = vmax.f32 %v1293_v10, 0.0  ;;  %v1247_v54 = vadd.f32 %v1231_v43, %v1195_v20  ;;  %v990_v45 = vadd.f32 %v974_v17, %v938_v63  ;;  %v1181_v21 = vmul.f32 %v5343_v62, %v5658_v9 }
 0x14e   : > { %v1145_v34 = vadd.f32 %v1129_v57, %v1092_v12  ;;  %v887_v35 = vadd.f32 %v871_v22, %v819_v11  ;;  %v975_v46 = vmul.f32 %v5349_v1, %v5500_v18  ;;  %2508 = vrot.lane.b32.xlu0 %v4888_v37, %s5121_s10  ;;  %v1078_v38 = vmul.f32 %v5373_v19, %v5661_v24  ;;  %v8634_v57 = vld [vmem:[#allocation5_spill] sm:$0xff]  ;;  %v5833_v12 = vld [vmem:[#allocation2 + $0xf0] sm:$0xff] }
 0x14f   : > { %1346 = vrot.lane.b32.xlu1 %v1309_v33, %s5120_s27  ;;  %v1271_v42 = vmul.f32 %v5400_v58, %v1247_v54  ;;  %v1042_v29 = vadd.f32 %v1026_v16, %v990_v45  ;;  %v1233_v50 = vmul.f32 %v5360_v7, %v5661_v24  ;;  %v1131_v18 = vmul.f32 %v5338_v61, %v5555_v25  ;;  %v4885_v37 = vld [vmem:[%s8555_s3 + $0x7] ss:$0 sm:$0xff]  ;;  %v5840_v33 = vld [vmem:[%s8555_s3 + $0x3] ss:$0 sm:$0xff]  ;;  %v5847_v16 = vld [vmem:[#allocation2 + $0xf1] sm:$0xff] }
 0x150   : > { %v1197_v59 = vadd.f32 %v1181_v21, %v1145_v34  ;;  %v939_v9 = vadd.f32 %v923_v3, %v887_v35  ;;  %v1027_v47 = vmul.f32 %v5354_v4, %v5502_v14  ;;  %v1183_v44 = vmul.f32 %v5343_v62, %v5557_v27  ;;  %v5789_v4 = vld [vmem:[%s8555_s3 + $0x6] ss:$0 sm:$0xff]  ;;  %v8635_v34 = vld [vmem:[#allocation6_spill] sm:$0xff] }
 0x151   : > { %v1295_v51 = vadd.f32 %v5423_v41, %v1271_v42  ;;  %v1094_v53 = vadd.f32 %v1078_v38, %v1042_v29  ;;  %v1079_v43 = vmul.f32 %v5373_v19, %v5509_v32  ;;  %v1235_v62 = vmul.f32 %v5360_v7, %v5569_v31  ;;  %v5813_v7 = vld [vmem:[%s8555_s3 + $0x8] ss:$0 sm:$0xff]  ;;  %v5066_v45 = vld [vmem:[%s8554_s2] sm:$0xff]  }
 0x152   : > { %v1249_v2 = vadd.f32 %v1233_v50, %v1197_v59  ;;  %v991_v23 = vadd.f32 %v975_v46, %v939_v9  ;;  %v1420_v14 = vmul.f32 %v5748_v30, %v5548_v52  ;;  %v1468_v32 = vmul.f32 %v5755_v28, %v5562_v15  ;;  %v5067_v35 = vld [vmem:[%s8554_s2 + $0x8] sm:$0xff]   ;;  %v5855_v46 = vld [vmem:[#allocation2 + $0xf8] sm:$0xff]  ;;  %v5860_v29 = vld [vmem:[%s8555_s3 + $0x4] ss:$0 sm:$0xff]  ;;  %4995 = vmatprep.subr.bf16.mxu1 %v5066_v45 }
 0x153   : > { %2164 = vrot.lane.b32.xlu1 %v5349_v1, %s5118_s26  ;;  %v1147_v49 = vadd.f32 %v1131_v18, %v1094_v53  ;;  %v1311_v5 = vmax.f32 %v1295_v51, 0.0  ;;  %v1132_v1 = vmul.f32 %v5789_v4, %v5523_v48  ;;  %v1184_v48 = vmul.f32 %v5803_v0, %v5537_v6  ;;  %v5820_v6 = vld [vmem:[%s8555_s3 + $0x2] ss:$0 sm:$0xff]  ;;  %4996 = vmatpush3.bf16.msra.mxu1 %v5066_v45  ;;  %v5869_v18 = vld [vmem:[#allocation2 + $0xf2] sm:$0xff] }
 0x154   : > { %v1043_v24 = vadd.f32 %v1027_v47, %v991_v23  ;;  %v1273_v56 = vmul.f32 %v5400_v58, %v1249_v2  ;;  %v1236_v31 = vmul.f32 %v5813_v7, %v5543_v39  ;;  %v1484_v26 = vadd.f32 %v1468_v32, %v1420_v14  ;;  %8633 = vst [vmem:[#allocation8_spill] sm:$0xff] %v5820_v6  ;;  %v5068_v23 = vld [vmem:[%s8554_s2 + $0x10] sm:$0xff]   ;;  %v5877_v47 = vld [vmem:[#allocation2 + $0xf9] sm:$0xff] }
 0x155   : > { %v1199_v61 = vadd.f32 %v1183_v44, %v1147_v49  ;;  %v1516_v55 = vmul.f32 %v5820_v6, %v5564_v40  ;;  %v1469_v10 = vmul.f32 %v5755_v28, %v8634_v57  ;;  %v1565_v54 = vmul.f32 %v5840_v33, %v5833_v12  ;;  %4997 = vmatprep.subr.bf16.mxu1 %v5067_v35  ;;  %v1694_v44 = vld [vmem:[#allocation2 + $0x108] sm:$0xff]  ;;  %v5895_v32 = vld [vmem:[#allocation2 + $0xfa] sm:$0xff] }
 0x156   : > { %v1095_v25 = vadd.f32 %v1079_v43, %v1043_v24  ;;  %v1297_v13 = vadd.f32 %v5423_v41, %v1273_v56  ;;  %v1517_v21 = vmul.f32 %v5820_v6, %v8635_v34  ;;  %v1613_v38 = vmul.f32 %v5860_v29, %v5847_v16 }
 0x157   : > { %1350 = vrot.lane.b32.xlu1 %v1311_v5, %s5120_s27  ;;  %v1251_v60 = vadd.f32 %v1235_v62, %v1199_v61  ;;  %v1532_v39 = vadd.f32 %v1516_v55, %v1484_v26  ;;  %v1422_v51 = vmul.f32 %v5748_v30, %v5833_v12  ;;  %v1470_v53 = vmul.f32 %v5755_v28, %v5847_v16  ;;  %v5882_v5 = vld [vmem:[%s8555_s3 + $0x5] ss:$0 sm:$0xff]  ;;  %v1695_v26 = vld [vmem:[#allocation2 + $0x110] sm:$0xff] }
 0x158   : > { %v1148_v27 = vadd.f32 %v1132_v1, %v1095_v25  ;;  %v1313_v20 = vmax.f32 %v1297_v13, 0.0  ;;  %v1566_v2 = vmul.f32 %v5840_v33, %v5855_v46  ;;  %v1661_v56 = vmul.f32 %v5882_v5, %v5869_v18  ;;  %4998 = vmatpush3.bf16.msra.mxu1 %v5067_v35 }
 0x159   : > { %v1275_v63 = vmul.f32 %v5400_v58, %v1251_v60  ;;  %v1581_v42 = vadd.f32 %v1565_v54, %v1532_v39  ;;  %v1486_v61 = vadd.f32 %v1470_v53, %v1422_v51  ;;  %v1518_v25 = vmul.f32 %v5820_v6, %v5869_v18  ;;  %4999 = vmatprep.subr.bf16.mxu1 %v5068_v23  ;;  %v4887_v60 = vld [vmem:[%s8556_s4] ss:$0 sm:$0xff] }
 0x15a   : > { %v1200_v36 = vadd.f32 %v1184_v48, %v1148_v27  ;;  %v1614_v1 = vmul.f32 %v5860_v29, %v5877_v47  ;;  %v1423_v62 = vmul.f32 %v5748_v30, %v5855_v46  ;;  %v1471_v14 = vmul.f32 %v5755_v28, %v5877_v47 }
 0x15b   : > { %2276 = vrot.lane.b32.xlu1 %v5373_v19, %s5118_s26  ;;  %v1421_v19 = vmul.f32 %v5748_v30, %v5610_v8  ;;  %v1299_v22 = vadd.f32 %v5423_v41, %v1275_v63  ;;  %v1629_v49 = vadd.f32 %v1613_v38, %v1581_v42  ;;  %v1710_v48 = vmul.f32 %v5789_v4, %v1694_v44 }
 0x15c   : > { %v1252_v17 = vadd.f32 %v1236_v31, %v1200_v36  ;;  %v1567_v13 = vmul.f32 %v5840_v33, %v1694_v44  ;;  %v1742_v36 = vld [vmem:[#allocation2 + $0x109] sm:$0xff]  ;;  %v1534_v55 = vadd.f32 %v1518_v25, %v1486_v61  ;;  %5000 = vmatpush3.bf16.msra.mxu1 %v5068_v23  ;;  %v1487_v63 = vadd.f32 %v1471_v14, %v1423_v62 }
 0x15d   : > { %v1485_v11 = vadd.f32 %v1469_v10, %v1421_v19  ;;  %v1315_v50 = vmax.f32 %v1299_v22, 0.0  ;;  %v1677_v27 = vadd.f32 %v1661_v56, %v1629_v49  ;;  %v1758_v19 = vmul.f32 %v5803_v0, %v1742_v36  ;;  %v1790_v22 = vld [vmem:[#allocation2 + $0x10a] sm:$0xff]  ;;  %v1696_v49 = vld [vmem:[#allocation2 + $0x120] sm:$0xff] }
 0x15e   : > { %v1276_v3 = vmul.f32 %v5400_v58, %v1252_v17  ;;  %v1662_v10 = vmul.f32 %v5882_v5, %v5895_v32  ;;  %v1583_v39 = vadd.f32 %v1567_v13, %v1534_v55  ;;  %v1711_v54 = vmul.f32 %v5789_v4, %v1695_v26 }
 0x15f   : > { %1354 = vrot.lane.b32.xlu1 %v1313_v20, %s5120_s27  ;;  %v1533_v59 = vadd.f32 %v1517_v21, %v1485_v11  ;;  %v1615_v20 = vmul.f32 %v5860_v29, %v1742_v36  ;;  %v1726_v17 = vadd.f32 %v1710_v48, %v1677_v27  ;;  %v1472_v11 = vmul.f32 %v5755_v28, %v1742_v36 }
 0x160   : > { %v1300_v9 = vadd.f32 %v5423_v41, %v1276_v3  ;;  %v1519_v45 = vmul.f32 %v5820_v6, %v5895_v32  ;;  %v1568_v21 = vmul.f32 %v5840_v33, %v1695_v26  ;;  %v1806_v35 = vmul.f32 %v5813_v7, %v1790_v22 }
 0x161   : > { %v1582_v24 = vadd.f32 %v1566_v2, %v1533_v59  ;;  %v1663_v42 = vmul.f32 %v5882_v5, %v1790_v22  ;;  %v1774_v59 = vadd.f32 %v1758_v19, %v1726_v17  ;;  %v1520_v53 = vmul.f32 %v5820_v6, %v1790_v22 }
 0x162   : > { %v1316_v43 = vmax.f32 %v1300_v9, 0.0  ;;  %v1535_v38 = vadd.f32 %v1519_v45, %v1487_v63  ;;  %v1631_v9 = vadd.f32 %v1615_v20, %v1583_v39  ;;  %v5924_v56 = vmul.f32 %v5860_v29, %v5562_v15  ;;  %v1792_v45 = vld [vmem:[#allocation2 + $0x122] sm:$0xff] }
 0x163   : > { %2388 = vrot.lane.b32.xlu1 %v4885_v37, %s5118_s26  ;;  %v1630_v31 = vadd.f32 %v1614_v1, %v1582_v24  ;;  %v1424_v37 = vmul.f32 %v5748_v30, %v1694_v44  ;;  %v1712_v61 = vmul.f32 %v5789_v4, %v1696_v49  ;;  %v1822_v25 = vadd.f32 %v1806_v35, %v1774_v59  ;;  %v1791_v1 = vld [vmem:[#allocation2 + $0x112] sm:$0xff]  ;;  %v1793_v35 = vld [vmem:[#allocation2 + $0x12a] sm:$0xff] }
 0x164   : > { %v1584_v44 = vadd.f32 %v1568_v21, %v1535_v38  ;;  %8637 = vst [vmem:[#allocation6_spill] sm:$0xff] %v5924_v56  ;;  %v1679_v62 = vadd.f32 %v1663_v42, %v1631_v9  ;;  %v1569_v27 = vmul.f32 %v5840_v33, %v1696_v49  ;;  %v1807_v13 = vmul.f32 %v5813_v7, %v1791_v1  ;;  %v1745_v21 = vld [vmem:[#allocation2 + $0x129] sm:$0xff]  ;;  %v1698_v9 = vld [vmem:[#allocation2 + $0x138] sm:$0xff]  ;;  %v1704_v56 = vld [vmem:[#allocation2 + $0x180] sm:$0xff] }
 0x165   : > { %v1678_v3 = vadd.f32 %v1662_v10, %v1630_v31  ;;  %v1488_v51 = vadd.f32 %v1472_v11, %v1424_v37  ;;  %v1664_v36 = vmul.f32 %v5882_v5, %v1791_v1  ;;  %v5936_v15 = vmul.f32 %v5789_v4, %v5833_v12  ;;  %v1744_v31 = vld [vmem:[#allocation2 + $0x121] sm:$0xff] }
 0x166   : > { %v1425_v55 = vmul.f32 %v5748_v30, %v1695_v26  ;;  %v5942_v10 = vmul.f32 %v5803_v0, %v5847_v16  ;;  %v5946_v20 = vmul.f32 %v5813_v7, %v5869_v18  ;;  %v1760_v12 = vmul.f32 %v5803_v0, %v1744_v31  ;;  %v1697_v26 = vld [vmem:[#allocation2 + $0x128] sm:$0xff] }
 0x167   : > { %1358 = vrot.lane.b32.xlu1 %v1315_v50, %s5120_s27  ;;  %v1743_v50 = vld [vmem:[#allocation2 + $0x111] sm:$0xff]  ;;  %v1727_v2 = vadd.f32 %v1711_v54, %v1678_v3  ;;  %v1536_v14 = vadd.f32 %v1520_v53, %v1488_v51  ;;  %8639 = vst [vmem:[#allocation10_spill] sm:$0xff] %v5936_v15  ;;  %v1838_v63 = vmul.f32 %v1822_v25, %v5400_v58 }
 0x168   : > { %v1759_v23 = vmul.f32 %v5803_v0, %v1743_v50  ;;  %v1616_v24 = vmul.f32 %v5860_v29, %v1743_v50  ;;  %v1473_v19 = vmul.f32 %v5755_v28, %v1743_v50  ;;  %8640 = vst [vmem:[#allocation11_spill] sm:$0xff] %v5942_v10  ;;  %8641 = vst [vmem:[#allocation12_spill] sm:$0xff] %v5946_v20 }
 0x169   : > { %v1728_v17 = vadd.f32 %v1712_v61, %v1679_v62  ;;  %v1585_v39 = vadd.f32 %v1569_v27, %v1536_v14  ;;  %v1617_v37 = vmul.f32 %v5860_v29, %v1744_v31  ;;  %v5957_v16 = vmul.f32 %v5860_v29, %v8634_v57  ;;  %v1699_v27 = vld [vmem:[#allocation2 + $0x140] sm:$0xff] }
 0x16a   : > { %v1775_v48 = vadd.f32 %v1759_v23, %v1727_v2  ;;  %v1713_v22 = vmul.f32 %v5789_v4, %v1697_v26  ;;  %v5966_v54 = vmul.f32 %v5789_v4, %v5855_v46  ;;  %v1489_v42 = vadd.f32 %v1473_v19, %v1425_v55  ;;  %v1746_v23 = vld [vmem:[#allocation2 + $0x139] sm:$0xff] }
 0x16b   : > { %1360 = vrot.lane.b32.xlu1 %v1316_v43, %s5120_s27  ;;  %v5920_v43 = vmul.f32 %v5840_v33, %v5548_v52  ;;  %v5932_v52 = vmul.f32 %v5882_v5, %v5564_v40  ;;  %v5950_v40 = vmul.f32 %v5840_v33, %v5610_v8  ;;  %8643 = vst [vmem:[#allocation14_spill] sm:$0xff] %v5957_v16 }
 0x16c   : > { %v1823_v11 = vadd.f32 %v1807_v13, %v1775_v48  ;;  %v5962_v8 = vmul.f32 %v5882_v5, %v8635_v34  ;;  %8645 = vst [vmem:[#allocation16_spill] sm:$0xff] %v5966_v54  ;;  %v1521_v57 = vmul.f32 %v5820_v6, %v1791_v1  ;;  %v1808_v38 = vmul.f32 %v5813_v7, %v1792_v45  ;;  %v5986_v48 = vld [vmem:[#allocation2 + $0x141] sm:$0xff] }
 0x16d   : > { %8636 = vst [vmem:[#allocation5_spill] sm:$0xff] %v5920_v43  ;;  %8638 = vst [vmem:[#allocation9_spill] sm:$0xff] %v5932_v52  ;;  %v1761_v59 = vmul.f32 %v5803_v0, %v1745_v21  ;;  %v1809_v50 = vmul.f32 %v5813_v7, %v1793_v35  ;;  %v1665_v34 = vmul.f32 %v5882_v5, %v1792_v45 }
 0x16e   : > { %8642 = vst [vmem:[#allocation13_spill] sm:$0xff] %v5950_v40  ;;  %8644 = vst [vmem:[#allocation15_spill] sm:$0xff] %v5962_v8  ;;  %v5975_v46 = vadd.f32 %v1838_v63, %v5423_v41  ;;  %v1776_v51 = vadd.f32 %v1760_v12, %v1728_v17  ;;  %v1633_v53 = vadd.f32 %v1617_v37, %v1585_v39 }
 0x16f   : > { %2484 = vrot.lane.b32.xlu1 %v4887_v60, %s5121_s10  ;;  %v1632_v60 = vadd.f32 %v1616_v24, %v1584_v44  ;;  %v1714_v2 = vmul.f32 %v5789_v4, %v1698_v9  ;;  %v1794_v44 = vld [vmem:[#allocation2 + $0x13a] sm:$0xff]  ;;  %v5979_v24 = vmul.f32 %v1823_v11, %v5400_v58  ;;  %v1762_v25 = vmul.f32 %v5803_v0, %v1746_v23 }
 0x170   : > { %v5983_v1 = vmul.f32 %v5813_v7, %v1794_v44  ;;  %v1537_v62 = vadd.f32 %v1521_v57, %v1489_v42  ;;  %v1570_v14 = vmul.f32 %v5840_v33, %v1697_v26  ;;  %v1426_v13 = vmul.f32 %v5748_v30, %v1696_v49 }
 0x171   : > { %v1680_v18 = vadd.f32 %v1664_v36, %v1632_v60  ;;  %v1474_v60 = vmul.f32 %v5755_v28, %v1744_v31  ;;  %v1427_v55 = vmul.f32 %v5748_v30, %v1697_v26  ;;  %v1475_v19 = vmul.f32 %v5755_v28, %v1745_v21  ;;  %v1700_v26 = vld [vmem:[#allocation2 + $0x150] sm:$0xff] }
 0x172   : > { %v1428_v12 = vmul.f32 %v5748_v30, %v1698_v9  ;;  %v1476_v63 = vmul.f32 %v5755_v28, %v1746_v23  ;;  %v5995_v17 = vadd.f32 %v1808_v38, %v1776_v51  ;;  %v1681_v39 = vadd.f32 %v1665_v34, %v1633_v53  ;;  %v1795_v38 = vld [vmem:[#allocation2 + $0x142] sm:$0xff] }
 0x173   : > { %v1729_v61 = vadd.f32 %v1713_v22, %v1680_v18  ;;  %v1618_v37 = vmul.f32 %v5860_v29, %v1745_v21  ;;  %v1666_v49 = vmul.f32 %v5882_v5, %v1793_v35  ;;  %v6000_v31 = vmul.f32 %v5789_v4, %v1699_v27  ;;  %v1748_v18 = vld [vmem:[#allocation2 + $0x151] sm:$0xff] }
 0x174   : > { %v1429_v22 = vmul.f32 %v5748_v30, %v1699_v27  ;;  %v1586_v42 = vadd.f32 %v1570_v14, %v1537_v62  ;;  %v6007_v57 = vmul.f32 %v5803_v0, %v5986_v48  ;;  %v1490_v21 = vadd.f32 %v1474_v60, %v1426_v13  ;;  %v1796_v13 = vld [vmem:[#allocation2 + $0x152] sm:$0xff] }
 0x175   : > { %v1777_v11 = vadd.f32 %v1761_v59, %v1729_v61  ;;  %v1522_v34 = vmul.f32 %v5820_v6, %v1792_v45  ;;  %v1491_v51 = vadd.f32 %v1475_v19, %v1427_v55  ;;  %v1523_v53 = vmul.f32 %v5820_v6, %v1793_v35 }
 0x176   : > { %v1492_v61 = vadd.f32 %v1476_v63, %v1428_v12  ;;  %v1730_v20 = vadd.f32 %v1714_v2, %v1681_v39  ;;  %v6015_v54 = vmul.f32 %v5813_v7, %v1795_v38  ;;  %v1430_v62 = vmul.f32 %v5748_v30, %v1700_v26  ;;  %v1701_v63 = vld [vmem:[#allocation2 + $0x158] sm:$0xff] }
 0x177   : > { %v1478_v14 = vmul.f32 %v5755_v28, %v1748_v18  ;;  %v6019_v10 = vadd.f32 %v1809_v50, %v1777_v11  ;;  %v1571_v45 = vmul.f32 %v5840_v33, %v1698_v9  ;;  %v1525_v55 = vmul.f32 %v5820_v6, %v1795_v38  ;;  %v6027_v39 = vld [vmem:[#allocation2 + $0x159] sm:$0xff] }
 0x178   : > { %v1634_v35 = vadd.f32 %v1618_v37, %v1586_v42  ;;  %v1538_v19 = vadd.f32 %v1522_v34, %v1490_v21  ;;  %v1619_v12 = vmul.f32 %v5860_v29, %v1746_v23  ;;  %v6025_v2 = vmul.f32 %v5882_v5, %v1794_v44 }
 0x179   : > { %v1539_v15 = vadd.f32 %v1523_v53, %v1491_v51  ;;  %v1572_v50 = vmul.f32 %v5840_v33, %v1699_v27  ;;  %v1573_v9 = vmul.f32 %v5840_v33, %v1700_v26  ;;  %v6035_v37 = vmul.f32 %v5789_v4, %v1700_v26  ;;  %v6050_v26 = vld [vmem:[#allocation2 + $0x169] sm:$0xff] }
 0x17a   : > { %v1494_v23 = vadd.f32 %v1478_v14, %v1430_v62  ;;  %v1574_v21 = vmul.f32 %v5840_v33, %v1701_v63  ;;  %v1431_v34 = vmul.f32 %v5748_v30, %v1701_v63  ;;  %v1479_v27 = vmul.f32 %v5755_v28, %v6027_v39 }
 0x17b   : > { %v1682_v51 = vadd.f32 %v1666_v49, %v1634_v35  ;;  %v1587_v53 = vadd.f32 %v1571_v45, %v1538_v19  ;;  %v1620_v62 = vmul.f32 %v5860_v29, %v5986_v48  ;;  %v1621_v49 = vmul.f32 %v5860_v29, %v1748_v18  ;;  %v6057_v45 = vld [vmem:[#allocation2 + $0x16a] sm:$0xff] }
 0x17c   : > { %v1495_v52 = vadd.f32 %v1479_v27, %v1431_v34  ;;  %v1751_v34 = vld [vmem:[#allocation2 + $0x171] sm:$0xff] }
 0x17d   : > { %v6074_v27 = vld [vmem:[#allocation2 + $0x172] sm:$0xff] }
 0x17e   : > { %v1337_v3 = vpop.permute.xlu0 %1336 }
 0x17f   : > { %1385 = vst.msk [vmem:[#allocation2 + $0x19] sm:$0xff] %vm1384_vm5, %v1337_v3  ;;  %v1477_v3 = vmul.f32 %v5755_v28, %v5986_v48  ;;  %v1480_v48 = vmul.f32 %v5755_v28, %v6050_v26 }
 0x181   : > { %v1493_v60 = vadd.f32 %v1477_v3, %v1429_v22  ;;  %v6032_v22 = vadd.f32 %v1762_v25, %v1730_v20  ;;  %v1702_v3 = vld [vmem:[#allocation2 + $0x168] sm:$0xff]  ;;  %v6043_v20 = vmul.f32 %v5803_v0, %v1748_v18  ;;  %v6048_v25 = vld [vmem:[#allocation2 + $0x15a] sm:$0xff]  ;;  %v6068_v18 = vadd.f32 %v6000_v31, %v1682_v51 }
 0x182   : > { %v1341_v36 = vpop.permute.xlu0 %1340  ;;  %v1575_v35 = vmul.f32 %v5840_v33, %v1702_v3  ;;  %v1432_v19 = vmul.f32 %v5748_v30, %v1702_v3  ;;  %v1717_v31 = vmul.f32 %v5789_v4, %v1701_v63  ;;  %v1623_v51 = vmul.f32 %v5860_v29, %v6050_v26 }
 0x183   : > { %1387 = vst.msk [vmem:[#allocation2 + $0x31] sm:$0xff] %vm1384_vm5, %v1341_v36  ;;  %v1524_v36 = vmul.f32 %v5820_v6, %v1794_v44  ;;  %v1526_v44 = vmul.f32 %v5820_v6, %v1796_v13  ;;  %v1541_v42 = vadd.f32 %v1525_v55, %v1493_v60  ;;  %v1622_v60 = vmul.f32 %v5860_v29, %v6027_v39 }
 0x184   : > { %v1496_v43 = vadd.f32 %v1480_v48, %v1432_v19  ;;  %v1577_v19 = vmul.f32 %v5840_v33, %v1704_v56  ;;  %v1481_v48 = vmul.f32 %v5755_v28, %v1751_v34  ;;  %v1529_v63 = vmul.f32 %v5820_v6, %v6074_v27 }
 0x185   : > { %v1540_v11 = vadd.f32 %v1524_v36, %v1492_v61  ;;  %v1588_v36 = vadd.f32 %v1572_v50, %v1539_v15  ;;  %v1542_v55 = vadd.f32 %v1526_v44, %v1494_v23  ;;  %v1590_v16 = vadd.f32 %v1574_v21, %v1541_v42 }
 0x186   : > { %v6010_v59 = vpop.permute.xlu0 %1996  ;;  %v1527_v15 = vmul.f32 %v5820_v6, %v6048_v25  ;;  %v1635_v50 = vadd.f32 %v1619_v12, %v1587_v53  ;;  %v1528_v23 = vmul.f32 %v5820_v6, %v6057_v45  ;;  %v1669_v21 = vmul.f32 %v5882_v5, %v1796_v13 }
 0x187   : > { %8646 = vst [vmem:[#allocation17_spill] sm:$0xff] %v6010_v59  ;;  %v1589_v14 = vadd.f32 %v1573_v9, %v1540_v11  ;;  %v1668_v11 = vmul.f32 %v5882_v5, %v1795_v38  ;;  %v1703_v9 = vld [vmem:[#allocation2 + $0x170] sm:$0xff]  ;;  %v1636_v40 = vadd.f32 %v1620_v62, %v1588_v36  ;;  %v1670_v38 = vmul.f32 %v5882_v5, %v6048_v25  ;;  %v1705_v62 = vld [vmem:[#allocation2 + $0x188] sm:$0xff] }
 0x188   : > { %v1591_v12 = vadd.f32 %v1575_v35, %v1542_v55  ;;  %v1638_v53 = vadd.f32 %v1622_v60, %v1590_v16  ;;  %v1543_v36 = vadd.f32 %v1527_v15, %v1495_v52  ;;  %v1683_v55 = vadd.f32 %v6025_v2, %v1635_v50  ;;  %v1752_v60 = vld [vmem:[#allocation2 + $0x181] sm:$0xff]  ;;  %v6092_v15 = vld [vmem:[#allocation2 + $0x189] sm:$0xff] }
 0x189   : > { %v1637_v42 = vadd.f32 %v1621_v49, %v1589_v14  ;;  %v1433_v14 = vmul.f32 %v5748_v30, %v1703_v9  ;;  %v1544_v49 = vadd.f32 %v1528_v23, %v1496_v43  ;;  %v1684_v35 = vadd.f32 %v1668_v11, %v1636_v40 }
 0x18a   : > { %v1345_v8 = vpop.permute.xlu0 %1344  ;;  %v1718_v52 = vmul.f32 %v5789_v4, %v1702_v3  ;;  %v1671_v43 = vmul.f32 %v5882_v5, %v6057_v45  ;;  %v1578_v59 = vmul.f32 %v5840_v33, %v1705_v62  ;;  %v1686_v28 = vadd.f32 %v1670_v38, %v1638_v53  ;;  %v1800_v38 = vld [vmem:[#allocation2 + $0x182] sm:$0xff] }
 0x18b   : > { %1389 = vst.msk [vmem:[#allocation2 + $0x49] sm:$0xff] %vm1384_vm5, %v1345_v8  ;;  %v6046_v8 = vmul.f32 %v5813_v7, %v1796_v13  ;;  %v1576_v13 = vmul.f32 %v5840_v33, %v1703_v9  ;;  %v1685_v16 = vadd.f32 %v1669_v21, %v1637_v42  ;;  %v1497_v23 = vadd.f32 %v1481_v48, %v1433_v14 }
 0x18c   : > { %v1719_v6 = vmul.f32 %v5789_v4, %v1703_v9  ;;  %v1624_v2 = vmul.f32 %v5860_v29, %v1751_v34  ;;  %v1593_v40 = vadd.f32 %v1577_v19, %v1544_v49  ;;  %v1625_v50 = vmul.f32 %v5860_v29, %v1752_v60 }
 0x18d   : > { %v1545_v3 = vadd.f32 %v1529_v63, %v1497_v23  ;;  %v1626_v11 = vmul.f32 %v5860_v29, %v6092_v15  ;;  %v1732_v21 = vadd.f32 %v6035_v37, %v1683_v55  ;;  %v1765_v33 = vmul.f32 %v5803_v0, %v6027_v39 }
 0x18e   : > { %v6052_v61 = vpop.permute.xlu0 %2108  ;;  %v1766_v9 = vmul.f32 %v5803_v0, %v6050_v26  ;;  %v1734_v53 = vadd.f32 %v1718_v52, %v1685_v16  ;;  %v1735_v14 = vadd.f32 %v1719_v6, %v1686_v28  ;;  %v1767_v37 = vmul.f32 %v5803_v0, %v1751_v34  ;;  %v1707_v34 = vld [vmem:[#allocation2 + $0x1a0] sm:$0xff] }
 0x18f   : > { %8647 = vst [vmem:[#allocation18_spill] sm:$0xff] %v6052_v61  ;;  %v1639_v61 = vadd.f32 %v1623_v51, %v1591_v12  ;;  %v1733_v12 = vadd.f32 %v1717_v31, %v1684_v35  ;;  %v6107_v51 = vld [vmem:[#allocation2 + $0x18a] sm:$0xff]  ;;  %v1594_v29 = vadd.f32 %v1578_v59, %v1545_v3  ;;  %v1672_v39 = vmul.f32 %v5882_v5, %v6074_v27  ;;  %v1706_v59 = vld [vmem:[#allocation2 + $0x198] sm:$0xff] }
 0x190   : > { %v1641_v49 = vadd.f32 %v1625_v50, %v1593_v40  ;;  %v1673_v26 = vmul.f32 %v5882_v5, %v1800_v38  ;;  %v1674_v48 = vmul.f32 %v5882_v5, %v6107_v51  ;;  %v1813_v28 = vmul.f32 %v5813_v7, %v6048_v25  ;;  %v1755_v40 = vld [vmem:[#allocation2 + $0x1a1] sm:$0xff] }
 0x191   : > { %v1642_v19 = vadd.f32 %v1626_v11, %v1594_v29  ;;  %v1814_v6 = vmul.f32 %v5813_v7, %v6057_v45  ;;  %v1781_v63 = vadd.f32 %v1765_v33, %v1733_v12  ;;  %v1768_v35 = vmul.f32 %v5803_v0, %v1752_v60 }
 0x192   : > { %v1349_v44 = vpop.permute.xlu0 %1348  ;;  %v1783_v16 = vadd.f32 %v1767_v37, %v1735_v14  ;;  %v1815_v5 = vmul.f32 %v5813_v7, %v6074_v27  ;;  %v1689_v52 = vadd.f32 %v1673_v26, %v1641_v49  ;;  %v1722_v25 = vmul.f32 %v5789_v4, %v1706_v59 }
 0x193   : > { %1391 = vst.msk [vmem:[#allocation2 + $0x61] sm:$0xff] %vm1384_vm5, %v1349_v44  ;;  %v1723_v45 = vmul.f32 %v5789_v4, %v1707_v34  ;;  %v1840_v23 = vmul.f32 %v5995_v17, %v5400_v58  ;;  %v1826_v60 = vadd.f32 %v5983_v1, %v6032_v22  ;;  %v1829_v50 = vadd.f32 %v1813_v28, %v1781_v63 }
 0x194   : > { %v1769_v17 = vmul.f32 %v5803_v0, %v6092_v15  ;;  %v1738_v1 = vadd.f32 %v1722_v25, %v1689_v52  ;;  %v6146_v33 = vadd.f32 %v5979_v24, %v5423_v41  ;;  %v6171_v28 = vmul.f32 %v5813_v7, %v5895_v32  ;;  %v1975_v52 = vld [vmem:[#allocation2] sm:$0xff]  ;;  %v1976_v25 = vld [vmem:[#allocation2 + $0x8] sm:$0xff] }
 0x195   : > { %v2031_v32 = vld [vmem:[#allocation2 + $0x1] sm:$0xff] }
 0x196   : > { %v6088_v44 = vpop.permute.xlu0 %2220 }
 0x197   : > { %8648 = vst [vmem:[#allocation19_spill] sm:$0xff] %v6088_v44  ;;  %v1592_v44 = vadd.f32 %v1576_v13, %v1543_v36  ;;  %v1687_v36 = vadd.f32 %v1671_v43, %v1639_v61  ;;  %v1720_v13 = vmul.f32 %v5789_v4, %v1704_v56  ;;  %v1779_v61 = vadd.f32 %v6007_v57, %v6068_v18 }
 0x198   : > { %v1780_v56 = vadd.f32 %v6043_v20, %v1732_v21  ;;  %v1721_v20 = vmul.f32 %v5789_v4, %v1705_v62  ;;  %v1690_v43 = vadd.f32 %v1674_v48, %v1642_v19  ;;  %v1754_v62 = vld [vmem:[#allocation2 + $0x199] sm:$0xff]  ;;  %v1841_v4 = vmul.f32 %v6019_v10, %v5400_v58 }
 0x199   : > { %v1640_v31 = vadd.f32 %v1624_v2, %v1592_v44  ;;  %v1782_v44 = vadd.f32 %v1766_v9, %v1734_v53  ;;  %v1736_v55 = vadd.f32 %v1720_v13, %v1687_v36  ;;  %v1827_v27 = vadd.f32 %v6015_v54, %v1779_v61  ;;  %v1802_v53 = vld [vmem:[#allocation2 + $0x19a] sm:$0xff]  ;;  %v1803_v36 = vld [vmem:[#allocation2 + $0x1a2] sm:$0xff] }
 0x19a   : > { %v1828_v2 = vadd.f32 %v6046_v8, %v1780_v56  ;;  %v1831_v21 = vadd.f32 %v1815_v5, %v1783_v16  ;;  %v1770_v54 = vmul.f32 %v5803_v0, %v1754_v62  ;;  %v1739_v22 = vadd.f32 %v1723_v45, %v1690_v43  ;;  %v8655_v45 = vld [vmem:[#allocation7_spill] sm:$0xff] }
 0x19b   : > { %v1353_v42 = vpop.permute.xlu0 %1352  ;;  %v1688_v57 = vadd.f32 %v1672_v39, %v1640_v31  ;;  %v1830_v3 = vadd.f32 %v1814_v6, %v1782_v44  ;;  %v1784_v11 = vadd.f32 %v1768_v35, %v1736_v55  ;;  %v1771_v8 = vmul.f32 %v5803_v0, %v1755_v40  ;;  %v2088_v62 = vld [vmem:[#allocation2 + $0xa] sm:$0xff] }
 0x19c   : > { %1393 = vst.msk [vmem:[#allocation2 + $0x79] sm:$0xff] %vm1384_vm5, %v1353_v42  ;;  %v1816_v42 = vmul.f32 %v5813_v7, %v1800_v38  ;;  %v6149_v9 = vadd.f32 %v1840_v23, %v5423_v41  ;;  %v1842_v10 = vmul.f32 %v1826_v60, %v5400_v58  ;;  %v1843_v38 = vmul.f32 %v1827_v27, %v5400_v58  ;;  %v8680_v55 = vld [vmem:[#allocation10_spill] sm:$0xff] }
 0x19d   : > { %v1737_v12 = vadd.f32 %v1721_v20, %v1688_v57  ;;  %v1844_v15 = vmul.f32 %v1828_v2, %v5400_v58  ;;  %v1845_v13 = vmul.f32 %v1829_v50, %v5400_v58  ;;  %v1846_v29 = vmul.f32 %v1830_v3, %v5400_v58  ;;  %v2087_v2 = vld [vmem:[#allocation2 + $0x2] sm:$0xff] }
 0x19e   : > { %v1832_v14 = vadd.f32 %v1816_v42, %v1784_v11  ;;  %v6157_v37 = vadd.f32 %v1841_v4, %v5423_v41  ;;  %v1847_v24 = vmul.f32 %v1831_v21, %v5400_v58  ;;  %v1817_v39 = vmul.f32 %v5813_v7, %v6107_v51  ;;  %v8670_v3 = vld [vmem:[#allocation13_spill] sm:$0xff] }
 0x19f   : > { %v1785_v31 = vadd.f32 %v1769_v17, %v1737_v12  ;;  %v1786_v26 = vadd.f32 %v1770_v54, %v1738_v1  ;;  %v1818_v19 = vmul.f32 %v5813_v7, %v1802_v53  ;;  %v1787_v48 = vadd.f32 %v1771_v8, %v1739_v22  ;;  %v8657_v12 = vld [vmem:[#allocation17_spill] sm:$0xff]  ;;  %v6216_v54 = vld [vmem:[#allocation2 + $0x18] sm:$0xff]  ;;  %v6220_v8 = vld [vmem:[#allocation2 + $0x30] sm:$0xff] }
 0x1a0   : > { %v1819_v61 = vmul.f32 %v5813_v7, %v1803_v36  ;;  %v6167_v56 = vmul.f32 %v5803_v0, %v5877_v47  ;;  %v6174_v6 = vadd.f32 %v1842_v10, %v5423_v41  ;;  %v6177_v51 = vadd.f32 %v1843_v38, %v5423_v41  ;;  %v6189_v47 = vpop.permute.xlu0 %2332  ;;  %v6218_v22 = vld [vmem:[#allocation2 + $0x19] sm:$0xff] }
 0x1a1   : > { %v6180_v63 = vadd.f32 %v1844_v15, %v5423_v41  ;;  %v6183_v44 = vadd.f32 %v1845_v13, %v5423_v41  ;;  %v6186_v0 = vadd.f32 %v1846_v29, %v5423_v41  ;;  %v1848_v7 = vmul.f32 %v1832_v14, %v5400_v58  ;;  %v8658_v13 = vld [vmem:[#allocation18_spill] sm:$0xff] }
 0x1a2   : > { %v1365_v18 = vpop.permute.xlu1 %1364  ;;  %8649 = vst [vmem:[#allocation20_spill] sm:$0xff] %v6174_v6  ;;  %8650 = vst [vmem:[#allocation21_spill] sm:$0xff] %v6177_v51  ;;  %v6194_v35 = vadd.f32 %v1847_v24, %v5423_v41  ;;  %v1833_v16 = vadd.f32 %v1817_v39, %v1785_v31  ;;  %v1834_v20 = vadd.f32 %v1818_v19, %v1786_v26  ;;  %v8659_v39 = vld [vmem:[#allocation8_spill] sm:$0xff] }
 0x1a3   : > { %1399 = vst.msk [vmem:[#allocation2 + $0xc1] sm:$0xff] %vm1384_vm5, %v1365_v18  ;;  %8651 = vst [vmem:[#allocation22_spill] sm:$0xff] %v6180_v63  ;;  %v1835_v18 = vadd.f32 %v1819_v61, %v1787_v48  ;;  %v6206_v11 = vadd.f32 %v1848_v7, %v5423_v41  ;;  %v6211_v17 = vmul.f32 %v8657_v12, %v1975_v52  ;;  %v6234_v61 = vld [vmem:[#allocation2 + $0x31] sm:$0xff] }
 0x1a4   : > { %8652 = vst [vmem:[#allocation23_spill] sm:$0xff] %v6183_v44  ;;  %8653 = vst [vmem:[#allocation24_spill] sm:$0xff] %v6186_v0  ;;  %v1849_v21 = vmul.f32 %v1833_v16, %v5400_v58  ;;  %v6214_v1 = vmul.f32 %v8657_v12, %v1976_v25  ;;  %v1850_v36 = vmul.f32 %v1834_v20, %v5400_v58  ;;  %v8660_v7 = vld [vmem:[#allocation19_spill] sm:$0xff] }
 0x1a5   : > { %8654 = vst [vmem:[#allocation25_spill] sm:$0xff] %v6194_v35  ;;  %8656 = vst [vmem:[#allocation7_spill] sm:$0xff] %v6206_v11  ;;  %v1851_v15 = vmul.f32 %v1835_v18, %v5400_v58  ;;  %v6226_v29 = vmul.f32 %v8658_v13, %v2087_v2  ;;  %v6229_v14 = vmul.f32 %v8658_v13, %v2088_v62  ;;  %v6252_v18 = vld [vmem:[#allocation2 + $0x61] sm:$0xff] }
 0x1a6   : > { %v6242_v16 = vmul.f32 %v8660_v7, %v6218_v22  ;;  %v6246_v20 = vmul.f32 %v6216_v54, %v8657_v12  ;;  %v6260_v2 = vld [vmem:[#allocation2 + $0x60] sm:$0xff]  ;;  %v6263_v62 = vadd.f32 %v1850_v36, %v5423_v41 }
 0x1a8   : > { %8663 = vst [vmem:[#allocation8_spill] sm:$0xff] %v6263_v62  ;;  %v2032_v62 = vld [vmem:[#allocation2 + $0x9] sm:$0xff] }
 0x1aa   : > { %v1367_v49 = vpop.permute.xlu1 %1366  ;;  %v1402_v59 = vld [vmem:[#allocation2 + $0xc0] sm:$0xff] }
 0x1ab   : > { %1400 = vst.msk [vmem:[#allocation2 + $0xc9] sm:$0xff] %vm1384_vm5, %v1367_v49  ;;  %v1450_v34 = vld [vmem:[#allocation2 + $0xc1] sm:$0xff]  ;;  %v1418_v43 = vmul.f32 %v5748_v30, %v1402_v59 }
 0x1ac   : > { %v1466_v23 = vmul.f32 %v8655_v45, %v1450_v34  ;;  %v6236_v59 = vld [vmem:[#allocation2 + $0x48] sm:$0xff] }
 0x1ad   : > { %v6299_v34 = vmul.f32 %v6189_v47, %v6236_v59 }
 0x1ae   : > { %v1482_v31 = vadd.f32 %v1466_v23, %v1418_v43  ;;  %v6258_v23 = vld [vmem:[#allocation2 + $0x49] sm:$0xff] }
 0x1af   : > { %8662 = vst [vmem:[#allocation18_spill] sm:$0xff] %v6258_v23 }
 0x1b0   : > { %v1339_v42 = vpop.permute.xlu1 %1338 }
 0x1b1   : > { %1386 = vst.msk [vmem:[#allocation2 + $0x21] sm:$0xff] %vm1384_vm5, %v1339_v42  ;;  %v6267_v42 = vmul.f32 %v6220_v8, %v8657_v12 }
 0x1b2   : > { %v1498_v10 = vld [vmem:[#allocation2 + $0xc2] sm:$0xff]  ;;  %v1357_v24 = vpop.permute.xlu0 %1356  ;;  %v1499_v48 = vld [vmem:[#allocation2 + $0xca] sm:$0xff] }
 0x1b3   : > { %v1403_v38 = vld [vmem:[#allocation2 + $0xc8] sm:$0xff]  ;;  %v1514_v49 = vmul.f32 %v8659_v39, %v1498_v10  ;;  %1395 = vst.msk [vmem:[#allocation2 + $0x91] sm:$0xff] %vm1384_vm5, %v1357_v24  ;;  %v1515_v43 = vmul.f32 %v8659_v39, %v1499_v48  ;;  %v6271_v10 = vmul.f32 %v6258_v23, %v8660_v7  ;;  %v8664_v24 = vld [vmem:[#allocation5_spill] sm:$0xff]  ;;  %v6283_v39 = vadd.f32 %v1851_v15, %v5423_v41 }
 0x1b4   : > { %v1451_v53 = vld [vmem:[#allocation2 + $0xc9] sm:$0xff]  ;;  %v1419_v26 = vmul.f32 %v5748_v30, %v1403_v38  ;;  %v6250_v30 = vmul.f32 %v6234_v61, %v8660_v7  ;;  %v6275_v38 = vmul.f32 %v6236_v59, %v8657_v12  ;;  %v6295_v48 = vmul.f32 %v6189_v47, %v6220_v8 }
 0x1b5   : > { %v1467_v19 = vmul.f32 %v8655_v45, %v1451_v53  ;;  %v1530_v52 = vadd.f32 %v1514_v49, %v1482_v31  ;;  %v6256_v45 = vadd.f32 %v1849_v21, %v5423_v41  ;;  %v6277_v21 = vld [vmem:[#allocation2 + $0x78] sm:$0xff]  ;;  %8665 = vst [vmem:[#allocation19_spill] sm:$0xff] %v6283_v39  ;;  %v6287_v49 = vmul.f32 %v6252_v18, %v8660_v7  ;;  %v8681_v39 = vld [vmem:[#allocation15_spill] sm:$0xff] }
 0x1b6   : > { %v6279_v53 = vpop.permute.xlu0 %2444  ;;  %v6303_v15 = vmul.f32 %v6189_v47, %v6260_v2  ;;  %v6320_v5 = vmul.f32 %v6189_v47, %v6277_v21 }
 0x1b7   : > { %v1483_v25 = vadd.f32 %v1467_v19, %v1419_v26  ;;  %8661 = vst [vmem:[#allocation17_spill] sm:$0xff] %v6256_v45  ;;  %v1579_v31 = vadd.f32 %v8664_v24, %v1530_v52  ;;  %8666 = vst [vmem:[#allocation5_spill] sm:$0xff] %v6287_v49  ;;  %v6289_v26 = vld [vmem:[#allocation2 + $0x79] sm:$0xff]  ;;  %v6307_v52 = vmul.f32 %v6260_v2, %v8657_v12  ;;  %v8669_v24 = vld [vmem:[#allocation6_spill] sm:$0xff] }
 0x1b8   : > { %v6291_v19 = vld [vmem:[#allocation2 + $0xc0] sm:$0xff]  ;;  %8671 = vst [vmem:[#allocation6_spill] sm:$0xff] %v6320_v5 }
 0x1b9   : > { %v1531_v36 = vadd.f32 %v1515_v43, %v1483_v25  ;;  %8667 = vst [vmem:[#allocation26_spill] sm:$0xff] %v6291_v19  ;;  %v6309_v25 = vld [vmem:[#allocation2 + $0xc8] sm:$0xff]  ;;  %v1343_v43 = vpop.permute.xlu1 %1342  ;;  %v1627_v4 = vadd.f32 %v8669_v24, %v1579_v31  ;;  %v6314_v27 = vld [vmem:[#allocation2 + $0x20] sm:$0xff]  ;;  %v6332_v31 = vmul.f32 %v6277_v21, %v8657_v12 }
 0x1ba   : > { %8668 = vst [vmem:[#allocation27_spill] sm:$0xff] %v6309_v25  ;;  %v2200_v60 = vld [vmem:[#allocation2 + $0x21] sm:$0xff]  ;;  %1388 = vst.msk [vmem:[#allocation2 + $0x39] sm:$0xff] %vm1384_vm5, %v1343_v43  ;;  %v6341_v35 = vld [vmem:[#allocation2 + $0x90] sm:$0xff] }
 0x1bb   : > { %v1580_v50 = vadd.f32 %v8670_v3, %v1531_v36  ;;  %v6316_v57 = vld [vmem:[#allocation2 + $0x1a] sm:$0xff]  ;;  %v6324_v11 = vld [vmem:[#allocation2 + $0x22] sm:$0xff]  ;;  %v6328_v3 = vmul.f32 %v6289_v26, %v8660_v7  ;;  %8673 = vst [vmem:[#allocation28_spill] sm:$0xff] %v6332_v31  ;;  %v6336_v36 = vmul.f32 %v6189_v47, %v6291_v19  ;;  %v6343_v5 = vld [vmem:[#allocation2 + $0x91] sm:$0xff]  ;;  %v6350_v31 = vmul.f32 %v8660_v7, %v2200_v60 }
 0x1bc   : > { %v8675_v24 = vld [vmem:[#allocation9_spill] sm:$0xff]  ;;  %v8676_v43 = vld [vmem:[#allocation14_spill] sm:$0xff]  ;;  %v2002_v19 = vmul.f32 %v6314_v27, %v8657_v12  ;;  %v6368_v0 = vmul.f32 %v6343_v5, %v8660_v7 }
 0x1bd   : > { %8672 = vst [vmem:[#allocation13_spill] sm:$0xff] %v6328_v3  ;;  %8674 = vst [vmem:[#allocation29_spill] sm:$0xff] %v6336_v36  ;;  %v1675_v40 = vadd.f32 %v8675_v24, %v1627_v4  ;;  %v1628_v45 = vadd.f32 %v8676_v43, %v1580_v50  ;;  %v6347_v3 = vmul.f32 %v6189_v47, %v6309_v25  ;;  %v1363_v24 = vpop.permute.xlu0 %1362  ;;  %v6358_v43 = vpop.permute.xlu1 %2052 }
 0x1be   : > { %8677 = vst [vmem:[#allocation9_spill] sm:$0xff] %v6341_v35  ;;  %8678 = vst [vmem:[#allocation14_spill] sm:$0xff] %v6343_v5  ;;  %v2113_v50 = vmul.f32 %v6316_v57, %v8658_v13  ;;  %v2114_v4 = vmul.f32 %v6324_v11, %v8658_v13  ;;  %v2055_v44 = vmul.f32 %v6358_v43, %v2031_v32 }
 0x1bf   : > { %8679 = vst [vmem:[#allocation30_spill] sm:$0xff] %v6347_v3  ;;  %v1724_v36 = vadd.f32 %v8680_v55, %v1675_v40  ;;  %v1676_v25 = vadd.f32 %v8681_v39, %v1628_v45  ;;  %v6364_v3 = vmul.f32 %v6189_v47, %v6341_v35  ;;  %8683 = vst [vmem:[#allocation15_spill] sm:$0xff] %v6368_v0  ;;  %v8684_v40 = vld [vmem:[#allocation11_spill] sm:$0xff]  ;;  %v8685_v39 = vld [vmem:[#allocation16_spill] sm:$0xff] }
 0x1c0   : > { %1398 = vst.msk [vmem:[#allocation2 + $0xb1] sm:$0xff] %vm1384_vm5, %v1363_v24  ;;  %v2056_v63 = vmul.f32 %v6358_v43, %v2032_v62  ;;  %v2057_v49 = vmul.f32 %v6218_v22, %v6358_v43  ;;  %v2058_v55 = vmul.f32 %v2200_v60, %v6358_v43  ;;  %v2061_v0 = vmul.f32 %v6258_v23, %v6358_v43  ;;  %v8686_v22 = vld [vmem:[#allocation12_spill] sm:$0xff] }
 0x1c1   : > { %8682 = vst [vmem:[#allocation10_spill] sm:$0xff] %v6364_v3  ;;  %v1772_v45 = vadd.f32 %v8684_v40, %v1724_v36  ;;  %v1725_v51 = vadd.f32 %v8685_v39, %v1676_v25  ;;  %v2059_v3 = vmul.f32 %v6234_v61, %v6358_v43  ;;  %v2071_v24 = vadd.f32 %v2055_v44, %v6211_v17  ;;  %v2312_v36 = vld [vmem:[#allocation2 + $0x38] sm:$0xff]  ;;  %v1347_v44 = vpop.permute.xlu1 %1346 }
 0x1c2   : > { %v2072_v32 = vadd.f32 %v2056_v63, %v6214_v1  ;;  %v2073_v62 = vadd.f32 %v2057_v49, %v6246_v20  ;;  %v2074_v5 = vadd.f32 %v2058_v55, %v2002_v19  ;;  %v6387_v40 = vld [vmem:[#allocation2 + $0x39] sm:$0xff]  ;;  %v6394_v23 = vmul.f32 %v6341_v35, %v8657_v12  ;;  %1390 = vst.msk [vmem:[#allocation2 + $0x51] sm:$0xff] %vm1384_vm5, %v1347_v44 }
 0x1c3   : > { %v1820_v6 = vadd.f32 %v8686_v22, %v1772_v45  ;;  %v1773_v60 = vadd.f32 %v6167_v56, %v1725_v51  ;;  %v6389_v25 = vld [vmem:[#allocation2 + $0x32] sm:$0xff]  ;;  %v2075_v39 = vadd.f32 %v2059_v3, %v6267_v42  ;;  %v2127_v63 = vadd.f32 %v6226_v29, %v2071_v24  ;;  %v6401_v56 = vld [vmem:[#allocation2 + $0x3a] sm:$0xff] }
 0x1c4   : > { %8687 = vst [vmem:[#allocation11_spill] sm:$0xff] %v6394_v23  ;;  %v2128_v17 = vadd.f32 %v6229_v14, %v2072_v32  ;;  %v6399_v1 = vmul.f32 %v6189_v47, %v2312_v36  ;;  %v6404_v51 = vadd.f32 %v2061_v0, %v6275_v38  ;;  %v6411_v49 = vmul.f32 %v6279_v53, %v6389_v25 }
 0x1c5   : > { %v1836_v20 = vmul.f32 %v1820_v6, %v5400_v58  ;;  %v1821_v42 = vadd.f32 %v6171_v28, %v1773_v60  ;;  %v6415_v29 = vmul.f32 %v6279_v53, %v6401_v56  ;;  %v2129_v14 = vadd.f32 %v2113_v50, %v2073_v62  ;;  %v6428_v24 = vpop.permute.xlu1 %2164 }
 0x1c6   : > { %v2130_v19 = vadd.f32 %v2114_v4, %v2074_v5  ;;  %v2004_v3 = vmul.f32 %v2312_v36, %v8657_v12  ;;  %v2060_v0 = vmul.f32 %v6387_v40, %v6358_v43  ;;  %v2226_v28 = vmul.f32 %v6387_v40, %v8660_v7 }
 0x1c7   : > { %v1852_v38 = vadd.f32 %v1836_v20, %v5423_v41  ;;  %v1837_v6 = vmul.f32 %v1821_v42, %v5400_v58  ;;  %v2115_v55 = vmul.f32 %v6389_v25, %v8658_v13  ;;  %v6426_v45 = vld [vmem:[#allocation2 + $0xb2] sm:$0xff]  ;;  %v2116_v50 = vmul.f32 %v6401_v56, %v8658_v13 }
 0x1c8   : > { %v2076_v5 = vadd.f32 %v2060_v0, %v2004_v3  ;;  %v2063_v4 = vmul.f32 %v6252_v18, %v6358_v43  ;;  %v6436_v58 = vmul.f32 %v6289_v26, %v6358_v43  ;;  %v2167_v22 = vmul.f32 %v6428_v24, %v6216_v54 }
 0x1c9   : > { %v1868_v32 = vmax.f32 %v1852_v38, 0.0  ;;  %v1853_v62 = vadd.f32 %v1837_v6, %v5423_v41  ;;  %v2168_v60 = vmul.f32 %v6428_v24, %v6314_v27  ;;  %v2169_v44 = vmul.f32 %v6220_v8, %v6428_v24  ;;  %v1351_v6 = vpop.permute.xlu1 %1350  ;;  %v2314_v35 = vld [vmem:[#allocation2 + $0x50] sm:$0xff] }
 0x1ca   : > { %v2170_v20 = vmul.f32 %v2312_v36, %v6428_v24  ;;  %v2131_v42 = vadd.f32 %v2115_v55, %v2075_v39  ;;  %v6448_v3 = vmul.f32 %v6279_v53, %v6426_v45  ;;  %v2183_v41 = vadd.f32 %v2167_v22, %v2127_v63  ;;  %v6453_v8 = vld [vmem:[#allocation2 + $0x51] sm:$0xff]  ;;  %1392 = vst.msk [vmem:[#allocation2 + $0x69] sm:$0xff] %vm1384_vm5, %v1351_v6 }
 0x1cb   : > { %1900 = vrot.lane.b32.xlu1 %v1868_v32, %s5120_s27  ;;  %v1869_v0 = vmax.f32 %v1853_v62, 0.0  ;;  %v2184_v38 = vadd.f32 %v2168_v60, %v2128_v17  ;;  %v2171_v54 = vmul.f32 %v6236_v59, %v6428_v24  ;;  %v2185_v27 = vadd.f32 %v2169_v44, %v2129_v14  ;;  %v2425_v36 = vld [vmem:[#allocation2 + $0x4a] sm:$0xff]  ;;  %v2426_v14 = vld [vmem:[#allocation2 + $0x52] sm:$0xff] }
 0x1cc   : > { %v2186_v23 = vadd.f32 %v2170_v20, %v2130_v19  ;;  %v2132_v39 = vadd.f32 %v2116_v50, %v2076_v5  ;;  %v2173_v55 = vmul.f32 %v6260_v2, %v6428_v24  ;;  %v2239_v63 = vadd.f32 %v6242_v16, %v2183_v41 }
 0x1cd   : > { %1902 = vrot.lane.b32.xlu0 %v1869_v0, %s5120_s27  ;;  %v2240_v17 = vadd.f32 %v6350_v31, %v2184_v38  ;;  %v2338_v59 = vmul.f32 %v6189_v47, %v2314_v35  ;;  %v6463_v19 = vadd.f32 %v2063_v4, %v6307_v52  ;;  %v2241_v32 = vadd.f32 %v6250_v30, %v2185_v27  ;;  %v6479_v30 = vpop.permute.xlu1 %2276 }
 0x1ce   : > { %v2242_v5 = vadd.f32 %v2226_v28, %v2186_v23  ;;  %v6467_v50 = vmul.f32 %v6279_v53, %v2425_v36  ;;  %v2172_v2 = vmul.f32 %v2314_v35, %v6428_v24  ;;  %v8688_v62 = vmax.f32 %v5975_v46, 0.0 }
 0x1cf   : > { %v6474_v16 = vmul.f32 %v6279_v53, %v2426_v14  ;;  %v2187_v31 = vadd.f32 %v2171_v54, %v2131_v42  ;;  %v2228_v52 = vmul.f32 %v6453_v8, %v8660_v7  ;;  %v2006_v4 = vmul.f32 %v2314_v35, %v8657_v12 }
 0x1d0   : > { %1904 = vrot.lane.b32.xlu1 %v8688_v62, %s5120_s27  ;;  %v2188_v23 = vadd.f32 %v2172_v2, %v2132_v39  ;;  %v2062_v28 = vmul.f32 %v6453_v8, %v6358_v43  ;;  %v2117_v22 = vmul.f32 %v2425_v36, %v8658_v13  ;;  %v2118_v46 = vmul.f32 %v2426_v14, %v8658_v13 }
 0x1d1   : > { %v8689_v60 = vmax.f32 %v6146_v33, 0.0  ;;  %v2279_v44 = vmul.f32 %v6479_v30, %v6316_v57  ;;  %v2280_v35 = vmul.f32 %v6479_v30, %v6324_v11  ;;  %v2281_v20 = vmul.f32 %v6389_v25, %v6479_v30  ;;  %v1355_v39 = vpop.permute.xlu1 %1354  ;;  %v2316_v2 = vld [vmem:[#allocation2 + $0x68] sm:$0xff] }
 0x1d2   : > { %v2282_v42 = vmul.f32 %v6401_v56, %v6479_v30  ;;  %v2243_v0 = vadd.f32 %v6271_v10, %v2187_v31  ;;  %v2244_v41 = vadd.f32 %v2228_v52, %v2188_v23  ;;  %v2283_v38 = vmul.f32 %v2425_v36, %v6479_v30  ;;  %v6502_v62 = vld [vmem:[#allocation2 + $0x62] sm:$0xff]  ;;  %1394 = vst.msk [vmem:[#allocation2 + $0x81] sm:$0xff] %vm1384_vm5, %v1355_v39  ;;  %v2428_v31 = vld [vmem:[#allocation2 + $0x6a] sm:$0xff] }
 0x1d3   : > { %1906 = vrot.lane.b32.xlu0 %v8689_v60, %s5120_s27  ;;  %v2284_v33 = vmul.f32 %v2426_v14, %v6479_v30  ;;  %v8690_v54 = vmax.f32 %v6149_v9, 0.0  ;;  %v2295_v57 = vadd.f32 %v2279_v44, %v2239_v63  ;;  %v2296_v6 = vadd.f32 %v2280_v35, %v2240_v17  ;;  %v8694_v35 = vld [vmem:[#allocation21_spill] sm:$0xff] }
 0x1d4   : > { %v2297_v11 = vadd.f32 %v2281_v20, %v2241_v32  ;;  %v2298_v27 = vadd.f32 %v2282_v42, %v2242_v5  ;;  %v2299_v25 = vadd.f32 %v2283_v38, %v2243_v0  ;;  %v2078_v56 = vadd.f32 %v2062_v28, %v2006_v4  ;;  %v2372_v5 = vld [vmem:[#allocation2 + $0x69] sm:$0xff] }
 0x1d5   : > { %1908 = vrot.lane.b32.xlu1 %v8690_v54, %s5120_s27  ;;  %v2133_v10 = vadd.f32 %v2117_v22, %v6404_v51  ;;  %v6507_v36 = vmul.f32 %v6277_v21, %v6428_v24  ;;  %v8691_v9 = vmax.f32 %v6157_v37, 0.0  ;;  %v2351_v63 = vadd.f32 %v6295_v48, %v2295_v57  ;;  %v8692_v37 = vld [vmem:[#allocation20_spill] sm:$0xff]  ;;  %v6525_v22 = vpop.permute.xlu1 %2388  ;;  %v8696_v42 = vld [vmem:[#allocation18_spill] sm:$0xff]  ;;  %v8697_v57 = vld [vmem:[#allocation5_spill] sm:$0xff] }
 0x1d6   : > { %v2352_v17 = vadd.f32 %v6399_v1, %v2296_v6  ;;  %v2353_v14 = vadd.f32 %v6299_v34, %v2297_v11  ;;  %v2300_v32 = vadd.f32 %v2284_v33, %v2244_v41  ;;  %v2354_v51 = vadd.f32 %v2338_v59, %v2298_v27  ;;  %v8698_v11 = vld [vmem:[#allocation22_spill] sm:$0xff] }
 0x1d7   : > { %1910 = vrot.lane.b32.xlu0 %v8691_v9, %s5120_s27  ;;  %v2340_v52 = vmul.f32 %v6189_v47, %v2316_v2  ;;  %v2355_v21 = vadd.f32 %v6303_v15, %v2299_v25  ;;  %v2451_v4 = vmul.f32 %v6279_v53, %v6502_v62  ;;  %v8693_v23 = vmax.f32 %v8692_v37, 0.0  ;;  %v8700_v37 = vld [vmem:[#allocation23_spill] sm:$0xff] }
 0x1d8   : > { %v2452_v48 = vmul.f32 %v6279_v53, %v2428_v31  ;;  %v2134_v1 = vadd.f32 %v2118_v46, %v2078_v56  ;;  %v2174_v34 = vmul.f32 %v2316_v2, %v6428_v24  ;;  %v2189_v28 = vadd.f32 %v2173_v55, %v2133_v10 }
 0x1d9   : > { %1912 = vrot.lane.b32.xlu1 %v8693_v23, %s5120_s27  ;;  %v2356_v59 = vadd.f32 %v2340_v52, %v2300_v32  ;;  %v2230_v60 = vmul.f32 %v2372_v5, %v8660_v7  ;;  %v2285_v15 = vmul.f32 %v6502_v62, %v6479_v30  ;;  %v2286_v44 = vmul.f32 %v2428_v31, %v6479_v30  ;;  %v1359_v56 = vpop.permute.xlu1 %1358  ;;  %v2318_v52 = vld [vmem:[#allocation2 + $0x80] sm:$0xff] }
 0x1da   : > { %v8695_v20 = vmax.f32 %v8694_v35, 0.0  ;;  %v2391_v46 = vmul.f32 %v6525_v22, %v6234_v61  ;;  %v2392_v55 = vmul.f32 %v6525_v22, %v6387_v40  ;;  %v2393_v0 = vmul.f32 %v6525_v22, %v8696_v42  ;;  %1396 = vst.msk [vmem:[#allocation2 + $0x99] sm:$0xff] %vm1384_vm5, %v1359_v56 }
 0x1db   : > { %v2394_v41 = vmul.f32 %v6525_v22, %v6453_v8  ;;  %v2395_v38 = vmul.f32 %v6525_v22, %v6252_v18  ;;  %v2396_v33 = vmul.f32 %v6525_v22, %v2372_v5  ;;  %v2190_v54 = vadd.f32 %v2174_v34, %v2134_v1  ;;  %v6549_v18 = vld [vmem:[#allocation2 + $0x7a] sm:$0xff] }
 0x1dc   : > { %1914 = vrot.lane.b32.xlu0 %v8695_v20, %s5120_s27  ;;  %v2245_v6 = vadd.f32 %v8697_v57, %v2189_v28  ;;  %v8699_v61 = vmax.f32 %v8698_v11, 0.0  ;;  %v2407_v27 = vadd.f32 %v2391_v46, %v2351_v63  ;;  %v2408_v40 = vadd.f32 %v2392_v55, %v2352_v17  ;;  %v8704_v20 = vld [vmem:[#allocation6_spill] sm:$0xff]  ;;  %v8707_v57 = vld [vmem:[#allocation7_spill] sm:$0xff] }
 0x1dd   : > { %v2409_v39 = vadd.f32 %v2393_v0, %v2353_v14  ;;  %v2410_v25 = vadd.f32 %v2394_v41, %v2354_v51  ;;  %v2411_v10 = vadd.f32 %v2395_v38, %v2355_v21  ;;  %v2412_v9 = vadd.f32 %v2396_v33, %v2356_v59  ;;  %v2374_v14 = vld [vmem:[#allocation2 + $0x81] sm:$0xff] }
 0x1de   : > { %1916 = vrot.lane.b32.xlu1 %v8699_v61, %s5120_s27  ;;  %v2246_v8 = vadd.f32 %v2230_v60, %v2190_v54  ;;  %v2301_v32 = vadd.f32 %v2285_v15, %v2245_v6  ;;  %v8701_v23 = vmax.f32 %v8700_v37, 0.0  ;;  %v2463_v1 = vadd.f32 %v6411_v49, %v2407_v27  ;;  %v6561_v60 = vld [vmem:[#allocation2 + $0x82] sm:$0xff]  ;;  %v8702_v15 = vld [vmem:[#allocation24_spill] sm:$0xff] }
 0x1df   : > { %v2464_v63 = vadd.f32 %v6415_v29, %v2408_v40  ;;  %v2465_v17 = vadd.f32 %v6467_v50, %v2409_v39  ;;  %v2008_v51 = vmul.f32 %v2316_v2, %v8657_v12  ;;  %v2466_v21 = vadd.f32 %v6474_v16, %v2410_v25  ;;  %v1361_v16 = vpop.permute.xlu1 %1360  ;;  %v6597_v39 = vpop.permute.xlu0 %2508 }
 0x1e0   : > { %1918 = vrot.lane.b32.xlu0 %v8701_v23, %s5120_s27  ;;  %v2467_v34 = vadd.f32 %v2451_v4, %v2411_v10  ;;  %v2302_v28 = vadd.f32 %v2286_v44, %v2246_v8  ;;  %v2342_v59 = vmul.f32 %v6189_v47, %v2318_v52  ;;  %v8703_v35 = vmax.f32 %v8702_v15, 0.0  ;;  %1397 = vst.msk [vmem:[#allocation2 + $0xa9] sm:$0xff] %vm1384_vm5, %v1361_v16 }
 0x1e1   : > { %v2468_v49 = vadd.f32 %v2452_v48, %v2412_v9  ;;  %v2357_v29 = vadd.f32 %v8704_v20, %v2301_v32  ;;  %v2397_v50 = vmul.f32 %v6525_v22, %v6289_v26  ;;  %v2453_v2 = vmul.f32 %v6279_v53, %v6549_v18  ;;  %v8705_v48 = vld [vmem:[#allocation25_spill] sm:$0xff] }
 0x1e2   : > { %1920 = vrot.lane.b32.xlu1 %v8703_v35, %s5120_s27  ;;  %v2358_v4 = vadd.f32 %v2342_v59, %v2302_v28  ;;  %v2398_v44 = vmul.f32 %v6525_v22, %v2374_v14  ;;  %v2064_v46 = vmul.f32 %v2372_v5, %v6358_v43  ;;  %v2119_v55 = vmul.f32 %v6502_v62, %v8658_v13  ;;  %v8709_v9 = vld [vmem:[#allocation17_spill] sm:$0xff]  ;;  %v8711_v59 = vld [vmem:[#allocation8_spill] sm:$0xff] }
 0x1e3   : > { %v8706_v42 = vmax.f32 %v8705_v48, 0.0  ;;  %v2413_v0 = vadd.f32 %v2397_v50, %v2357_v29  ;;  %v2454_v26 = vmul.f32 %v6279_v53, %v6561_v60  ;;  %v2120_v41 = vmul.f32 %v2428_v31, %v8658_v13  ;;  %v6595_v40 = vpop.permute.xlu1 %2484  ;;  %v6626_v29 = vld [vmem:[%s8556_s4] ss:$0 sm:$0xff]  ;;  %v6631_v50 = vld [vmem:[%s8556_s4 + $0x1] ss:$0 sm:$0xff]  ;;  %v6636_v48 = vld [vmem:[#allocation2 + $0x98] sm:$0xff] }
 0x1e4   : > { %v2176_v38 = vmul.f32 %v2318_v52, %v6428_v24  ;;  %v2414_v33 = vadd.f32 %v2398_v44, %v2358_v4  ;;  %v2080_v54 = vadd.f32 %v2064_v46, %v2008_v51  ;;  %v2135_v5 = vadd.f32 %v2119_v55, %v6463_v19 }
 0x1e5   : > { %1922 = vrot.lane.b32.xlu0 %v8706_v42, %s5120_s27  ;;  %v2232_v62 = vmul.f32 %v2374_v14, %v8660_v7  ;;  %v8708_v6 = vmax.f32 %v8707_v57, 0.0  ;;  %v2469_v11 = vadd.f32 %v2453_v2, %v2413_v0  ;;  %v2287_v61 = vmul.f32 %v6549_v18, %v6479_v30  ;;  %v8713_v2 = vld [vmem:[#allocation19_spill] sm:$0xff] }
 0x1e6   : > { %v6592_v27 = vmul.f32 %v6561_v60, %v6479_v30  ;;  %v2010_v31 = vmul.f32 %v2318_v52, %v8657_v12  ;;  %v2470_v19 = vadd.f32 %v2454_v26, %v2414_v33  ;;  %v2136_v25 = vadd.f32 %v2120_v41, %v2080_v54  ;;  %v6638_v33 = vld [vmem:[#allocation2 + $0x99] sm:$0xff] }
 0x1e7   : > { %1924 = vrot.lane.b32.xlu1 %v8708_v6, %s5120_s27  ;;  %v2191_v56 = vadd.f32 %v6507_v36, %v2135_v5  ;;  %v2066_v10 = vmul.f32 %v2374_v14, %v6358_v43  ;;  %v8710_v8 = vmax.f32 %v8709_v9, 0.0  ;;  %v2487_v32 = vmul.f32 %v6595_v40, %v2463_v1  ;;  %v6640_v54 = vld [vmem:[#allocation2 + $0x92] sm:$0xff] }
 0x1e8   : > { %v2488_v37 = vmul.f32 %v6595_v40, %v2464_v63  ;;  %v2489_v52 = vmul.f32 %v6595_v40, %v2465_v17  ;;  %v2490_v23 = vmul.f32 %v6595_v40, %v2466_v21  ;;  %v2491_v51 = vmul.f32 %v6595_v40, %v2467_v34 }
 0x1e9   : > { %1926 = vrot.lane.b32.xlu0 %v8710_v8, %s5120_s27  ;;  %v2492_v28 = vmul.f32 %v6595_v40, %v2468_v49  ;;  %v2493_v36 = vmul.f32 %v6595_v40, %v2469_v11  ;;  %v2494_v14 = vmul.f32 %v6595_v40, %v2470_v19  ;;  %v8712_v15 = vmax.f32 %v8711_v59, 0.0  ;;  %v8715_v11 = vld [vmem:[#allocation13_spill] sm:$0xff] }
 0x1ea   : > { %v2511_v1 = vadd.f32 %v6597_v39, %v2487_v32  ;;  %v2512_v63 = vadd.f32 %v6597_v39, %v2488_v37  ;;  %v2513_v17 = vadd.f32 %v6597_v39, %v2489_v52  ;;  %v2514_v21 = vadd.f32 %v6597_v39, %v2490_v23  ;;  %v8716_v37 = vld [vmem:[#allocation14_spill] sm:$0xff]  ;;  %v6648_v23 = vld [vmem:[#allocation2 + $0x9a] sm:$0xff] }
 0x1eb   : > { %1928 = vrot.lane.b32.xlu1 %v8712_v15, %s5120_s27  ;;  %v2515_v34 = vadd.f32 %v6597_v39, %v2491_v51  ;;  %v2516_v35 = vadd.f32 %v6597_v39, %v2492_v28  ;;  %v2517_v49 = vadd.f32 %v6597_v39, %v2493_v36  ;;  %v2518_v20 = vadd.f32 %v6597_v39, %v2494_v14  ;;  %v4910_v51 = vld [vmem:[%s8555_s3] ss:$0 sm:$0xff]  ;;  %v8717_v36 = vld [vmem:[#allocation28_spill] sm:$0xff]  ;;  %v4911_v15 = vld [vmem:[%s8555_s3 + $0x1] ss:$0 sm:$0xff] }
 0x1ec   : > { %v8714_v16 = vmax.f32 %v8713_v2, 0.0  ;;  %v2527_v4 = vmax.f32 %v2511_v1, 0.0  ;;  %v2528_v44 = vmax.f32 %v2512_v63, 0.0  ;;  %v2529_v46 = vmax.f32 %v2513_v17, 0.0  ;;  %v8718_v63 = vld [vmem:[#allocation10_spill] sm:$0xff] }
 0x1ed   : > { %v2530_v55 = vmax.f32 %v2514_v21, 0.0  ;;  %v2531_v42 = vmax.f32 %v2515_v34, 0.0  ;;  %v2532_v0 = vmax.f32 %v2516_v35, 0.0  ;;  %v2533_v26 = vmax.f32 %v2517_v49, 0.0  ;;  %v8719_v34 = vld [vmem:[#allocation9_spill] sm:$0xff]  ;;  %v6686_v49 = vld [vmem:[#allocation2 + $0xa9] sm:$0xff] }
 0x1ee   : > { %1930 = vrot.lane.b32.xlu0 %v8714_v16, %s5120_s27  ;;  %v2534_v41 = vmax.f32 %v2518_v20, 0.0  ;;  %v2543_v5 = vpack.c.bf16 %v2528_v44, %v2527_v4  ;;  %v2192_v6 = vadd.f32 %v2176_v38, %v2136_v25  ;;  %v2247_v19 = vadd.f32 %v8715_v11, %v2191_v56  ;;  %s5122_s27 = smov 32   ;;  %v4912_v20 = vld [vmem:[%s8555_s3 + $0x2] ss:$0 sm:$0xff] }
 0x1ef   : > { %v2544_v57 = vpack.c.bf16 %v2530_v55, %v2529_v46  ;;  %3311 = vrot.lane.b32.xlu1 %v6626_v29, %s5122_s27  ;;  %v2545_v9 = vpack.c.bf16 %v2532_v0, %v2531_v42  ;;  %v2344_v32 = vmul.f32 %v6189_v47, %v6636_v48  ;;  %v2399_v52 = vmul.f32 %v6525_v22, %v8716_v37 }
 0x1f0   : > { %v2546_v8 = vpack.c.bf16 %v2534_v41, %v2533_v26  ;;  %2551 = vst.msk [vmem:[#allocation3] sm:$0xff] %vm226_vm2, %v2543_v5  ;;  %v2248_v38 = vadd.f32 %v2232_v62, %v2192_v6  ;;  %v2303_v25 = vadd.f32 %v2287_v61, %v2247_v19  ;;  %v2400_v56 = vmul.f32 %v6525_v22, %v6638_v33  ;;  %v6700_v26 = vld [vmem:[#allocation2 + $0xb1] sm:$0xff] }
 0x1f1   : > { %2552 = vst.msk [vmem:[#allocation3 + $0x8] sm:$0xff] %vm226_vm2, %v2544_v57  ;;  %v2455_v28 = vmul.f32 %v6279_v53, %v6640_v54  ;;  %2553 = vst.msk [vmem:[#allocation3 + $0x10] sm:$0xff] %vm226_vm2, %v2545_v9  ;;  %v2081_v14 = vadd.f32 %v6436_v58, %v8717_v36  ;;  %v2082_v59 = vadd.f32 %v2066_v10, %v2010_v31  ;;  %v6677_v31 = vld [vmem:[#allocation2 + $0xa8] sm:$0xff]  ;;  %v8720_v9 = vld [vmem:[#allocation15_spill] sm:$0xff] }
 0x1f2   : > { %3351 = vrot.lane.b32.xlu0 %v6631_v50, %s5122_s27  ;;  %2554 = vst.msk [vmem:[#allocation3 + $0x18] sm:$0xff] %vm226_vm2, %v2546_v8  ;;  %v2121_v62 = vmul.f32 %v6549_v18, %v8658_v13  ;;  %v2122_v61 = vmul.f32 %v6561_v60, %v8658_v13  ;;  %v2304_v1 = vadd.f32 %v6592_v27, %v2248_v38  ;;  %v6679_v18 = vld [vmem:[#allocation2 + $0xb0] sm:$0xff]  ;;  %v4913_v36 = vld [vmem:[%s8555_s3 + $0x3] ss:$0 sm:$0xff]  ;;  %s4924_s27 = sshll.u32 %s8787_s19, 8 }
 0x1f3   : > { %v2359_v17 = vadd.f32 %v8718_v63, %v2303_v25  ;;  %v2456_v21 = vmul.f32 %v6279_v53, %v6648_v23  ;;  %v2178_v58 = vmul.f32 %v6636_v48, %v6428_v24  ;;  %3482 = vrot.lane.b32.xlu1 %v4910_v51, %s5123_s24  ;;  %v2177_v27 = vmul.f32 %v8719_v34, %v6428_v24  ;;  %s7930_s21 = scalar_lea.vmem %s8557_s5, %s4924_s27 }
 0x1f4   : > { %v2137_v60 = vadd.f32 %v2121_v62, %v2081_v14  ;;  %v2138_v10 = vadd.f32 %v2122_v61, %v2082_v59  ;;  %v2234_v35 = vmul.f32 %v6638_v33, %v8660_v7  ;;  %v2360_v2 = vadd.f32 %v2344_v32, %v2304_v1  ;;  %v2433_v59 = vld [vmem:[#allocation2 + $0xaa] sm:$0xff] }
 0x1f5   : > { %v2415_v16 = vadd.f32 %v2399_v52, %v2359_v17  ;;  %v2289_v4 = vmul.f32 %v6640_v54, %v6479_v30  ;;  %v2290_v44 = vmul.f32 %v6648_v23, %v6479_v30  ;;  %v2345_v42 = vmul.f32 %v6189_v47, %v6677_v31  ;;  %v8721_v62 = vld [vmem:[#allocation11_spill] sm:$0xff] }
 0x1f6   : > { %3538 = vrot.lane.b32.xlu0 %v4911_v15, %s5123_s24  ;;  %v2193_v46 = vadd.f32 %v2177_v27, %v2137_v60  ;;  %v2194_v55 = vadd.f32 %v2178_v58, %v2138_v10  ;;  %v2346_v0 = vmul.f32 %v6189_v47, %v6679_v18  ;;  %v2416_v41 = vadd.f32 %v2400_v56, %v2360_v2 }
 0x1f7   : > { %v2471_v5 = vadd.f32 %v2455_v28, %v2415_v16  ;;  %v2401_v57 = vmul.f32 %v6525_v22, %v6686_v49  ;;  %v2402_v6 = vmul.f32 %v6525_v22, %v6700_v26  ;;  %3594 = vrot.lane.b32.xlu1 %v4912_v20, %s5123_s24  ;;  %v3057_v11 = vld [vmem:[#allocation3] sm:$0xff]  ;;  %v2012_v52 = vmul.f32 %v6636_v48, %v8657_v12  ;;  %v4915_v20 = vld [vmem:[%s8555_s3 + $0x5] ss:$0 sm:$0xff] }
 0x1f8   : > { %v3058_v19 = vld [vmem:[#allocation3 + $0x8] sm:$0xff]  ;;  %v2249_v8 = vadd.f32 %v8720_v9, %v2193_v46  ;;  %v2250_v32 = vadd.f32 %v2234_v35, %v2194_v55  ;;  %v2067_v51 = vmul.f32 %v8716_v37, %v6358_v43  ;;  %5001 = vmatprep.mubr.msk.bf16.mxu1 %vm226_vm2, %v3057_v11  ;;  %v2472_v38 = vadd.f32 %v2456_v21, %v2416_v41  ;;  %v3059_v48 = vld [vmem:[#allocation3 + $0x10] sm:$0xff] }
 0x1f9   : > { %v2495_v25 = vmul.f32 %v6595_v40, %v2471_v5  ;;  %v2068_v56 = vmul.f32 %v6638_v33, %v6358_v43  ;;  %v2123_v28 = vmul.f32 %v6640_v54, %v8658_v13  ;;  %5002 = vmatmul.mubr.msk.bf16.vlgmr.msra.gmra.mrb[0].mxu1 %vm226_vm2, %v3058_v19  ;;  %v2124_v15 = vmul.f32 %v6648_v23, %v8658_v13  ;;  %v4914_v33 = vld [vmem:[%s8555_s3 + $0x4] ss:$0 sm:$0xff]  ;;  %v4916_v46 = vld [vmem:[%s8555_s3 + $0x6] ss:$0 sm:$0xff]  ;;  %v3060_v9 = vld [vmem:[#allocation3 + $0x18] sm:$0xff] }
 0x1fa   : > { %v2305_v14 = vadd.f32 %v2289_v4, %v2249_v8  ;;  %v2306_v37 = vadd.f32 %v2290_v44, %v2250_v32  ;;  %v2083_v61 = vadd.f32 %v2067_v51, %v8721_v62  ;;  %5005 = vmatprep.mubr.msk.bf16.mxu1 %vm226_vm2, %v3059_v48  ;;  %v2496_v54 = vmul.f32 %v6595_v40, %v2472_v38  ;;  %v6753_v19 = vld [vmem:[#allocation2 + $0xc1] sm:$0xff] }
 0x1fb   : > { %v2519_v1 = vadd.f32 %v6597_v39, %v2495_v25  ;;  %v2084_v63 = vadd.f32 %v2068_v56, %v2012_v52  ;;  %v2179_v17 = vmul.f32 %v6677_v31, %v6428_v24  ;;  %v2180_v23 = vmul.f32 %v6679_v18, %v6428_v24  ;;  %3650 = vrot.lane.b32.xlu0 %v4913_v36, %s5123_s24  ;;  %v4918_v36 = vld [vmem:[%s8555_s3 + $0x8] ss:$0 sm:$0xff] }
 0x1fc   : > { %v2361_v21 = vadd.f32 %v2345_v42, %v2305_v14  ;;  %v2362_v58 = vadd.f32 %v2346_v0, %v2306_v37  ;;  %v2139_v60 = vadd.f32 %v2123_v28, %v2083_v61  ;;  %v2520_v10 = vadd.f32 %v6597_v39, %v2496_v54  ;;  %3706 = vrot.lane.b32.xlu1 %v4914_v33, %s5123_s24  ;;  %v6767_v28 = vld [vmem:[#allocation2 + $0xc9] sm:$0xff]  ;;  %v8722_v54 = vld [vmem:[#allocation29_spill] sm:$0xff] }
 0x1fd   : > { %v2535_v34 = vmax.f32 %v2519_v1, 0.0  ;;  %v2457_v27 = vmul.f32 %v6279_v53, %v2433_v59  ;;  %v2140_v35 = vadd.f32 %v2124_v15, %v2084_v63  ;;  %v2235_v44 = vmul.f32 %v6686_v49, %v8660_v7  ;;  %v6777_v37 = vld [vmem:[#allocation2 + $0xc2] sm:$0xff]  ;;  %v6786_v1 = vld [vmem:[#allocation2 + $0xca] sm:$0xff] }
 0x1fe   : > { %v2417_v2 = vadd.f32 %v2401_v57, %v2361_v21  ;;  %v2418_v16 = vadd.f32 %v2402_v6, %v2362_v58  ;;  %v2195_v4 = vadd.f32 %v2179_v17, %v2139_v60  ;;  %v2536_v55 = vmax.f32 %v2520_v10, 0.0  ;;  %v8723_v17 = vld [vmem:[#allocation30_spill] sm:$0xff] }
 0x1ff   : > { %v2196_v42 = vadd.f32 %v2180_v23, %v2140_v35  ;;  %v2236_v0 = vmul.f32 %v6700_v26, %v8660_v7  ;;  %v2291_v41 = vmul.f32 %v2433_v59, %v6479_v30  ;;  %v2292_v6 = vmul.f32 %v6426_v45, %v6479_v30  ;;  %3762 = vrot.lane.b32.xlu0 %v4915_v20, %s5123_s24 }
 0x200   : > { %v2473_v5 = vadd.f32 %v2457_v27, %v2417_v2  ;;  %v2474_v11 = vadd.f32 %v6448_v3, %v2418_v16  ;;  %v2251_v57 = vadd.f32 %v2235_v44, %v2195_v4  ;;  %v2547_v8 = vpack.c.bf16 %v2536_v55, %v2535_v34  ;;  %3819 = vrot.lane.b32.xlu1 %v4916_v46, %s5123_s24  ;;  %v4917_v3 = vld [vmem:[%s8555_s3 + $0x7] ss:$0 sm:$0xff] }
 0x201   : > { %v2252_v32 = vadd.f32 %v2236_v0, %v2196_v42  ;;  %v2403_v52 = vmul.f32 %v6525_v22, %v6753_v19  ;;  %v2013_v51 = vmul.f32 %v6677_v31, %v8657_v12  ;;  %5006 = vmatmul.mubr.msk.bf16.gmra.mrb[4].mxu1 %vm226_vm2, %v3060_v9  ;;  %v2014_v48 = vmul.f32 %v6679_v18, %v8657_v12  ;;  %v8726_v9 = vld [vmem:[#allocation27_spill] sm:$0xff] }
 0x202   : > { %v2497_v38 = vmul.f32 %v6595_v40, %v2473_v5  ;;  %v2498_v25 = vmul.f32 %v6595_v40, %v2474_v11  ;;  %v2307_v56 = vadd.f32 %v2291_v41, %v2251_v57  ;;  %2555 = vst.msk [vmem:[#allocation3 + $0x20] sm:$0xff] %vm226_vm2, %v2547_v8  ;;  %v2404_v31 = vmul.f32 %v6525_v22, %v6767_v28  ;;  %v8725_v57 = vld [vmem:[#allocation26_spill] sm:$0xff] }
 0x203   : > { %v2308_v14 = vadd.f32 %v2292_v6, %v2252_v32  ;;  %v2069_v62 = vmul.f32 %v6686_v49, %v6358_v43  ;;  %v2070_v61 = vmul.f32 %v6700_v26, %v6358_v43  ;;  %3875 = vrot.lane.b32.xlu0 %v4917_v3, %s5123_s24  ;;  %v2125_v63 = vmul.f32 %v2433_v59, %v8658_v13 }
 0x204   : > { %v2521_v15 = vadd.f32 %v6597_v39, %v2497_v38  ;;  %v2522_v33 = vadd.f32 %v6597_v39, %v2498_v25  ;;  %v2363_v18 = vadd.f32 %v8722_v54, %v2307_v56  ;;  %3931 = vrot.lane.b32.xlu1 %v4918_v36, %s5123_s24  ;;  %v2126_v26 = vmul.f32 %v6426_v45, %v8658_v13 }
 0x205   : > { %v2364_v21 = vadd.f32 %v8723_v17, %v2308_v14  ;;  %v2085_v49 = vadd.f32 %v2069_v62, %v2013_v51  ;;  %v2086_v58 = vadd.f32 %v2070_v61, %v2014_v48  ;;  %v2459_v34 = vmul.f32 %v6279_v53, %v6777_v37 }
 0x206   : > { %v2537_v60 = vmax.f32 %v2521_v15, 0.0  ;;  %v2538_v23 = vmax.f32 %v2522_v33, 0.0  ;;  %v2419_v10 = vadd.f32 %v2403_v52, %v2363_v18  ;;  %v2460_v35 = vmul.f32 %v6279_v53, %v6786_v1 }
 0x207   : > { %v2420_v27 = vadd.f32 %v2404_v31, %v2364_v21  ;;  %v2141_v59 = vadd.f32 %v2125_v63, %v2085_v49  ;;  %v2142_v20 = vadd.f32 %v2126_v26, %v2086_v58  ;;  %3971 = vrot.lane.b32.xlu0 %v6626_v29, %s5124_s16  ;;  %v8724_v11 = vmov 0.0  }
 0x208   : > { %v2548_v2 = vpack.c.bf16 %v2538_v23, %v2537_v60  ;;  %v2475_v16 = vadd.f32 %v2459_v34, %v2419_v10  ;;  %3995 = vrot.lane.b32.xlu1 %v6631_v50, %s5124_s16  ;;  %269 = vst.msk [vmem:[#allocation4] sm:$0xff] %vm268_vm6, %v8724_v11  ;;  %270 = vst.msk [vmem:[#allocation4 + $0x8] sm:$0xff] %vm268_vm6, %v8724_v11  ;;  %v2181_v6 = vmul.f32 %v8725_v57, %v6428_v24 }
 0x209   : > { %v2476_v4 = vadd.f32 %v2460_v35, %v2420_v27  ;;  %v3061_v45 = vld [vmem:[#allocation3 + $0x20] sm:$0xff]  ;;  %271 = vst.msk [vmem:[#allocation4 + $0x10] sm:$0xff] %vm268_vm6, %v8724_v11  ;;  %273 = vst.msk [vmem:[#allocation4 + $0x198] sm:$0xff] %vm268_vm6, %v8724_v11  ;;  %v2182_v8 = vmul.f32 %v8726_v9, %v6428_v24  ;;  %v2623_v3 = vmul.f32 %v6753_v19, %v6358_v43 }
 0x20a   : > { %2556 = vst.msk [vmem:[#allocation3 + $0x28] sm:$0xff] %vm226_vm2, %v2548_v2  ;;  %v2499_v44 = vmul.f32 %v6595_v40, %v2475_v16  ;;  %5009 = vmatprep.mubr.msk.bf16.mxu1 %vm226_vm2, %v3061_v45  ;;  %v2197_v52 = vadd.f32 %v2181_v6, %v2141_v59  ;;  %v2624_v38 = vmul.f32 %v6767_v28, %v6358_v43 }
 0x20b   : > { %v2500_v46 = vmul.f32 %v6595_v40, %v2476_v4  ;;  %274 = vst.msk [vmem:[#allocation4 + $0x1a0] sm:$0xff] %vm268_vm6, %v8724_v11  ;;  %275 = vst.msk [vmem:[#allocation4 + $0x1a8] sm:$0xff] %vm268_vm6, %v8724_v11  ;;  %v2198_v51 = vadd.f32 %v2182_v8, %v2142_v20  ;;  %v2237_v56 = vmul.f32 %v6753_v19, %v8660_v7 }
 0x20c   : > { %v2523_v55 = vadd.f32 %v6597_v39, %v2499_v44  ;;  %v2575_v36 = vmul.f32 %v8725_v57, %v8657_v12  ;;  %v2238_v48 = vmul.f32 %v6767_v28, %v8660_v7  ;;  %v2576_v14 = vmul.f32 %v8726_v9, %v8657_v12  ;;  %278 = vst.msk [vmem:[#allocation4 + $0x18] sm:$0x1] %vm277_vm7, %v8724_v11 }
 0x20d   : > { %v2524_v42 = vadd.f32 %v6597_v39, %v2500_v46  ;;  %v2253_v62 = vadd.f32 %v2237_v56, %v2197_v52  ;;  %v2293_v19 = vmul.f32 %v6777_v37, %v6479_v30  ;;  %v2671_v18 = vmul.f32 %v6777_v37, %v8658_v13  ;;  %279 = vst.msk [vmem:[#allocation4 + $0x30] sm:$0x1] %vm277_vm7, %v8724_v11 }
 0x20e   : > { %v2539_v0 = vmax.f32 %v2523_v55, 0.0  ;;  %v2639_v61 = vadd.f32 %v2623_v3, %v2575_v36  ;;  %v2254_v15 = vadd.f32 %v2238_v48, %v2198_v51  ;;  %v2640_v33 = vadd.f32 %v2624_v38, %v2576_v14  ;;  %280 = vst.msk [vmem:[#allocation4 + $0x48] sm:$0x1] %vm277_vm7, %v8724_v11  ;;  %281 = vst.msk [vmem:[#allocation4 + $0x60] sm:$0x1] %vm277_vm7, %v8724_v11 }
 0x20f   : > { %v2540_v41 = vmax.f32 %v2524_v42, 0.0  ;;  %v2294_v28 = vmul.f32 %v6786_v1, %v6479_v30  ;;  %v2672_v63 = vmul.f32 %v6786_v1, %v8658_v13  ;;  %v2309_v21 = vadd.f32 %v2293_v19, %v2253_v62  ;;  %282 = vst.msk [vmem:[#allocation4 + $0x78] sm:$0x1] %vm277_vm7, %v8724_v11  ;;  %283 = vst.msk [vmem:[#allocation4 + $0x90] sm:$0x1] %vm277_vm7, %v8724_v11 }
 0x210   : > { %v2687_v26 = vadd.f32 %v2671_v18, %v2639_v61  ;;  %284 = vst.msk [vmem:[#allocation4 + $0xa8] sm:$0x1] %vm277_vm7, %v8724_v11  ;;  %285 = vst.msk [vmem:[#allocation4 + $0xc0] sm:$0x1] %vm277_vm7, %v8724_v11 }
 0x211   : > { %v3062_v5 = vld [vmem:[#allocation3 + $0x28] sm:$0xff]  ;;  %v2549_v29 = vpack.c.bf16 %v2540_v41, %v2539_v0  ;;  %v2310_v60 = vadd.f32 %v2294_v28, %v2254_v15  ;;  %v2688_v10 = vadd.f32 %v2672_v63, %v2640_v33  ;;  %286 = vst.msk [vmem:[#allocation4 + $0xd8] sm:$0x1] %vm277_vm7, %v8724_v11  ;;  %287 = vst.msk [vmem:[#allocation4 + $0xf0] sm:$0x1] %vm277_vm7, %v8724_v11 }
 0x212   : > { %5010 = vmatmul.mubr.msk.bf16.gmra.mrb[8].mxu1 %vm226_vm2, %v3062_v5  ;;  %288 = vst.msk [vmem:[#allocation4 + $0x108] sm:$0x1] %vm277_vm7, %v8724_v11  ;;  %289 = vst.msk [vmem:[#allocation4 + $0x120] sm:$0x1] %vm277_vm7, %v8724_v11 }
 0x213   : > { %2557 = vst.msk [vmem:[#allocation3 + $0x30] sm:$0xff] %vm226_vm2, %v2549_v29 }
 0x214   : > { %290 = vst.msk [vmem:[#allocation4 + $0x138] sm:$0x1] %vm277_vm7, %v8724_v11  ;;  %291 = vst.msk [vmem:[#allocation4 + $0x150] sm:$0x1] %vm277_vm7, %v8724_v11 }
 0x215   : > { %292 = vst.msk [vmem:[#allocation4 + $0x168] sm:$0x1] %vm277_vm7, %v8724_v11  ;;  %293 = vst.msk [vmem:[#allocation4 + $0x180] sm:$0x1] %vm277_vm7, %v8724_v11 }
 0x216   : > { %294 = vst.msk [vmem:[#allocation4 + $0x29] sm:$0x1] %vm277_vm7, %v8724_v11  ;;  %295 = vst.msk [vmem:[#allocation4 + $0x41] sm:$0x1] %vm277_vm7, %v8724_v11 }
 0x217   : > { %296 = vst.msk [vmem:[#allocation4 + $0x59] sm:$0x1] %vm277_vm7, %v8724_v11  ;;  %297 = vst.msk [vmem:[#allocation4 + $0x71] sm:$0x1] %vm277_vm7, %v8724_v11 }
 0x218   : > { %298 = vst.msk [vmem:[#allocation4 + $0x89] sm:$0x1] %vm277_vm7, %v8724_v11  ;;  %299 = vst.msk [vmem:[#allocation4 + $0xa1] sm:$0x1] %vm277_vm7, %v8724_v11 }
 0x219   : > { %300 = vst.msk [vmem:[#allocation4 + $0xb9] sm:$0x1] %vm277_vm7, %v8724_v11  ;;  %301 = vst.msk [vmem:[#allocation4 + $0xd1] sm:$0x1] %vm277_vm7, %v8724_v11 }
 0x21a   : > { %v3063_v50 = vld [vmem:[#allocation3 + $0x30] sm:$0xff]  ;;  %302 = vst.msk [vmem:[#allocation4 + $0xe9] sm:$0x1] %vm277_vm7, %v8724_v11  ;;  %303 = vst.msk [vmem:[#allocation4 + $0x101] sm:$0x1] %vm277_vm7, %v8724_v11 }
 0x21b   : > { %5013 = vmatprep.mubr.msk.bf16.mxu1 %vm226_vm2, %v3063_v50  ;;  %304 = vst.msk [vmem:[#allocation4 + $0x119] sm:$0x1] %vm277_vm7, %v8724_v11  ;;  %305 = vst.msk [vmem:[#allocation4 + $0x131] sm:$0x1] %vm277_vm7, %v8724_v11 }
 0x21c   : > { %306 = vst.msk [vmem:[#allocation4 + $0x149] sm:$0x1] %vm277_vm7, %v8724_v11  ;;  %307 = vst.msk [vmem:[#allocation4 + $0x161] sm:$0x1] %vm277_vm7, %v8724_v11 }
 0x21d   : > { %308 = vst.msk [vmem:[#allocation4 + $0x179] sm:$0x1] %vm277_vm7, %v8724_v11  ;;  %309 = vst.msk [vmem:[#allocation4 + $0x191] sm:$0x1] %vm277_vm7, %v8724_v11 }
 0x23d   : > { %v1901_v32 = vpop.permute.xlu1 %1900 }
 0x23e   : > { %1948 = vst.msk [vmem:[#allocation2 + $0xd9] sm:$0xff] %vm1384_vm5, %v1901_v32 }
 0x23f   : > { %v1903_v25 = vpop.permute.xlu0 %1902 }
 0x240   : > { %1949 = vst.msk [vmem:[#allocation2 + $0xe1] sm:$0xff] %vm1384_vm5, %v1903_v25 }
 0x242   : > { %v1905_v31 = vpop.permute.xlu1 %1904 }
 0x243   : > { %1950 = vst.msk [vmem:[#allocation2 + $0xf1] sm:$0xff] %vm1384_vm5, %v1905_v31 }
 0x245   : > { %v1907_v54 = vpop.permute.xlu0 %1906  ;;  %v2325_v49 = vld [vmem:[#allocation2 + $0xd8] sm:$0xff] }
 0x246   : > { %1951 = vst.msk [vmem:[#allocation2 + $0xf9] sm:$0xff] %vm1384_vm5, %v1907_v54  ;;  %v2381_v58 = vld [vmem:[#allocation2 + $0xd9] sm:$0xff]  ;;  %v2349_v23 = vmul.f32 %v6189_v47, %v2325_v49  ;;  %v2719_v37 = vmul.f32 %v2325_v49, %v6428_v24  ;;  %v2577_v2 = vmul.f32 %v2325_v49, %v8657_v12 }
 0x247   : > { %v1909_v17 = vpop.permute.xlu1 %1908  ;;  %v2326_v27 = vld [vmem:[#allocation2 + $0xe0] sm:$0xff]  ;;  %v2405_v59 = vmul.f32 %v6525_v22, %v2381_v58  ;;  %v2767_v1 = vmul.f32 %v2381_v58, %v8660_v7  ;;  %v2625_v16 = vmul.f32 %v2381_v58, %v6358_v43 }
 0x248   : > { %1952 = vst.msk [vmem:[#allocation2 + $0x109] sm:$0xff] %vm1384_vm5, %v1909_v17  ;;  %v2382_v35 = vld [vmem:[#allocation2 + $0xe1] sm:$0xff]  ;;  %v2350_v4 = vmul.f32 %v6189_v47, %v2326_v27  ;;  %v2365_v45 = vadd.f32 %v2349_v23, %v2309_v21  ;;  %v2720_v41 = vmul.f32 %v2326_v27, %v6428_v24  ;;  %v2735_v5 = vadd.f32 %v2719_v37, %v2687_v26 }
 0x249   : > { %v1911_v34 = vpop.permute.xlu0 %1910  ;;  %v2437_v20 = vld [vmem:[#allocation2 + $0xda] sm:$0xff]  ;;  %v2406_v44 = vmul.f32 %v6525_v22, %v2382_v35  ;;  %v2438_v46 = vld [vmem:[#allocation2 + $0xe2] sm:$0xff]  ;;  %v2768_v29 = vmul.f32 %v2382_v35, %v8660_v7  ;;  %v2578_v21 = vmul.f32 %v2326_v27, %v8657_v12  ;;  %v2626_v49 = vmul.f32 %v2382_v35, %v6358_v43 }
 0x24a   : > { %1953 = vst.msk [vmem:[#allocation2 + $0x111] sm:$0xff] %vm1384_vm5, %v1911_v34  ;;  %v2461_v55 = vmul.f32 %v6279_v53, %v2437_v20  ;;  %v2462_v0 = vmul.f32 %v6279_v53, %v2438_v46  ;;  %v6863_v50 = vld [vmem:[#allocation2 + $0xf0] sm:$0xff]  ;;  %v2366_v6 = vadd.f32 %v2350_v4, %v2310_v60  ;;  %v2421_v9 = vadd.f32 %v2405_v59, %v2365_v45 }
 0x24b   : > { %v1913_v42 = vpop.permute.xlu1 %1912  ;;  %v6865_v57 = vld [vmem:[#allocation2 + $0xf1] sm:$0xff]  ;;  %v2815_v8 = vmul.f32 %v2437_v20, %v6479_v30  ;;  %v2816_v32 = vmul.f32 %v2438_v46, %v6479_v30  ;;  %v2736_v3 = vadd.f32 %v2720_v41, %v2688_v10  ;;  %v2783_v51 = vadd.f32 %v2767_v1, %v2735_v5 }
 0x24c   : > { %1954 = vst.msk [vmem:[#allocation2 + $0x121] sm:$0xff] %vm1384_vm5, %v1913_v42  ;;  %v2863_v25 = vmul.f32 %v6863_v50, %v6189_v47  ;;  %v2911_v36 = vmul.f32 %v6865_v57, %v6525_v22  ;;  %v2422_v14 = vadd.f32 %v2406_v44, %v2366_v6  ;;  %v2477_v31 = vadd.f32 %v2461_v55, %v2421_v9 }
 0x24d   : > { %v6870_v38 = vld [vmem:[#allocation2 + $0xf8] sm:$0xff]  ;;  %v2784_v54 = vadd.f32 %v2768_v29, %v2736_v3  ;;  %v2831_v19 = vadd.f32 %v2815_v8, %v2783_v51  ;;  %v2641_v23 = vadd.f32 %v2625_v16, %v2577_v2  ;;  %v2673_v10 = vmul.f32 %v2437_v20, %v8658_v13 }
 0x24e   : > { %v1915_v52 = vpop.permute.xlu0 %1914  ;;  %v6874_v56 = vld [vmem:[#allocation2 + $0xf9] sm:$0xff]  ;;  %v2864_v62 = vmul.f32 %v6870_v38, %v6189_v47  ;;  %v2478_v63 = vadd.f32 %v2462_v0, %v2422_v14  ;;  %v2501_v17 = vmul.f32 %v6595_v40, %v2477_v31  ;;  %v2642_v59 = vadd.f32 %v2626_v49, %v2578_v21 }
 0x24f   : > { %v6878_v48 = vld [vmem:[#allocation2 + $0xf2] sm:$0xff]  ;;  %1955 = vst.msk [vmem:[#allocation2 + $0x129] sm:$0xff] %vm1384_vm5, %v1915_v52  ;;  %v2912_v61 = vmul.f32 %v6874_v56, %v6525_v22  ;;  %v6885_v15 = vld [vmem:[#allocation2 + $0xfa] sm:$0xff]  ;;  %v2832_v26 = vadd.f32 %v2816_v32, %v2784_v54  ;;  %v2879_v60 = vadd.f32 %v2863_v25, %v2831_v19  ;;  %v2674_v1 = vmul.f32 %v2438_v46, %v8658_v13  ;;  %v6908_v29 = vld [vmem:[#allocation2 + $0x108] sm:$0xff] }
 0x250   : > { %v1917_v33 = vpop.permute.xlu1 %1916  ;;  %v2959_v18 = vmul.f32 %v6878_v48, %v6279_v53  ;;  %v2960_v28 = vmul.f32 %v6885_v15, %v6279_v53  ;;  %v2502_v37 = vmul.f32 %v6595_v40, %v2478_v63  ;;  %v2525_v34 = vadd.f32 %v6597_v39, %v2501_v17  ;;  %v6917_v3 = vld [vmem:[#allocation2 + $0x109] sm:$0xff] }
 0x251   : > { %1956 = vst.msk [vmem:[#allocation2 + $0x139] sm:$0xff] %vm1384_vm5, %v1917_v33  ;;  %v2880_v45 = vadd.f32 %v2864_v62, %v2832_v26  ;;  %v2927_v27 = vadd.f32 %v2911_v36, %v2879_v60  ;;  %v2689_v44 = vadd.f32 %v2673_v10, %v2641_v23  ;;  %v2721_v35 = vmul.f32 %v6863_v50, %v6428_v24  ;;  %v6910_v6 = vld [vmem:[#allocation2 + $0x110] sm:$0xff] }
 0x252   : > { %v1919_v58 = vpop.permute.xlu0 %1918  ;;  %v2526_v20 = vadd.f32 %v6597_v39, %v2502_v37  ;;  %v2541_v2 = vmax.f32 %v2525_v34, 0.0  ;;  %v2690_v16 = vadd.f32 %v2674_v1, %v2642_v59  ;;  %v2722_v55 = vmul.f32 %v6870_v38, %v6428_v24  ;;  %v6922_v62 = vld [vmem:[#allocation2 + $0x111] sm:$0xff] }
 0x253   : > { %1957 = vst.msk [vmem:[#allocation2 + $0x141] sm:$0xff] %vm1384_vm5, %v1919_v58  ;;  %v2928_v0 = vadd.f32 %v2912_v61, %v2880_v45  ;;  %v2975_v41 = vadd.f32 %v2959_v18, %v2927_v27  ;;  %v2737_v46 = vadd.f32 %v2721_v35, %v2689_v44  ;;  %v2769_v5 = vmul.f32 %v6865_v57, %v8660_v7  ;;  %v6924_v61 = vld [vmem:[#allocation2 + $0x10a] sm:$0xff]  ;;  %v6926_v33 = vld [vmem:[#allocation2 + $0x112] sm:$0xff] }
 0x254   : > { %v1921_v4 = vpop.permute.xlu1 %1920  ;;  %v2542_v9 = vmax.f32 %v2526_v20, 0.0  ;;  %v2738_v8 = vadd.f32 %v2722_v55, %v2690_v16  ;;  %v2770_v32 = vmul.f32 %v6874_v56, %v8660_v7  ;;  %v2817_v52 = vmul.f32 %v6878_v48, %v6479_v30 }
 0x255   : > { %1958 = vst.msk [vmem:[#allocation2 + $0x151] sm:$0xff] %vm1384_vm5, %v1921_v4  ;;  %v2976_v25 = vadd.f32 %v2960_v28, %v2928_v0  ;;  %v2991_v36 = vmul.f32 %v2975_v41, %v6595_v40  ;;  %v2785_v14 = vadd.f32 %v2769_v5, %v2737_v46  ;;  %v2818_v31 = vmul.f32 %v6885_v15, %v6479_v30  ;;  %v6962_v41 = vld [vmem:[#allocation2 + $0x120] sm:$0xff] }
 0x256   : > { %v2550_v54 = vpack.c.bf16 %v2542_v9, %v2541_v2  ;;  %v2786_v19 = vadd.f32 %v2770_v32, %v2738_v8  ;;  %v2865_v18 = vmul.f32 %v6908_v29, %v6189_v47  ;;  %v2866_v28 = vmul.f32 %v6910_v6, %v6189_v47  ;;  %v6968_v9 = vld [vmem:[#allocation2 + $0x128] sm:$0xff] }
 0x257   : > { %v1923_v42 = vpop.permute.xlu0 %1922  ;;  %v2992_v17 = vmul.f32 %v2976_v25, %v6595_v40  ;;  %v3007_v21 = vadd.f32 %v2991_v36, %v6597_v39  ;;  %v2833_v49 = vadd.f32 %v2817_v52, %v2785_v14  ;;  %v2913_v58 = vmul.f32 %v6917_v3, %v6525_v22  ;;  %v6974_v25 = vld [vmem:[#allocation2 + $0x129] sm:$0xff] }
 0x258   : > { %1959 = vst.msk [vmem:[#allocation2 + $0x159] sm:$0xff] %vm1384_vm5, %v1923_v42  ;;  %v2834_v26 = vadd.f32 %v2818_v31, %v2786_v19  ;;  %v2914_v60 = vmul.f32 %v6922_v62, %v6525_v22  ;;  %v2961_v23 = vmul.f32 %v6924_v61, %v6279_v53  ;;  %v2962_v10 = vmul.f32 %v6926_v33, %v6279_v53  ;;  %v6976_v36 = vld [vmem:[#allocation2 + $0x122] sm:$0xff] }
 0x259   : > { %v1925_v51 = vpop.permute.xlu1 %1924  ;;  %2558 = vst.msk [vmem:[#allocation3 + $0x38] sm:$0xff] %vm226_vm2, %v2550_v54  ;;  %v3008_v34 = vadd.f32 %v2992_v17, %v6597_v39  ;;  %v3023_v59 = vmax.f32 %v3007_v21, 0.0  ;;  %v2881_v1 = vadd.f32 %v2865_v18, %v2833_v49  ;;  %v2579_v4 = vmul.f32 %v6863_v50, %v8657_v12 }
 0x25a   : > { %1960 = vst.msk [vmem:[#allocation2 + $0x169] sm:$0xff] %vm1384_vm5, %v1925_v51  ;;  %v2882_v45 = vadd.f32 %v2866_v28, %v2834_v26  ;;  %v2580_v27 = vmul.f32 %v6870_v38, %v8657_v12  ;;  %v2627_v44 = vmul.f32 %v6865_v57, %v6358_v43  ;;  %v2628_v35 = vmul.f32 %v6874_v56, %v6358_v43  ;;  %v6972_v51 = vld [vmem:[#allocation2 + $0x121] sm:$0xff]  ;;  %v6986_v28 = vld [vmem:[#allocation2 + $0x12a] sm:$0xff] }
 0x25b   : > { %v1927_v63 = vpop.permute.xlu0 %1926  ;;  %v3024_v2 = vmax.f32 %v3008_v34, 0.0  ;;  %v2929_v16 = vadd.f32 %v2913_v58, %v2881_v1  ;;  %v2675_v55 = vmul.f32 %v6878_v48, %v8658_v13  ;;  %v2676_v50 = vmul.f32 %v6885_v15, %v8658_v13 }
 0x25c   : > { %1961 = vst.msk [vmem:[#allocation2 + $0x171] sm:$0xff] %vm1384_vm5, %v1927_v63  ;;  %v2930_v42 = vadd.f32 %v2914_v60, %v2882_v45  ;;  %v2643_v0 = vadd.f32 %v2627_v44, %v2579_v4  ;;  %v2644_v38 = vadd.f32 %v2628_v35, %v2580_v27  ;;  %v2723_v57 = vmul.f32 %v6908_v29, %v6428_v24 }
 0x25d   : > { %v1929_v37 = vpop.permute.xlu1 %1928  ;;  %v3039_v56 = vpack.c.bf16 %v3024_v2, %v3023_v59  ;;  %v2977_v46 = vadd.f32 %v2961_v23, %v2929_v16  ;;  %v2724_v5 = vmul.f32 %v6910_v6, %v6428_v24  ;;  %v2771_v48 = vmul.f32 %v6917_v3, %v8660_v7 }
 0x25e   : > { %1962 = vst.msk [vmem:[#allocation2 + $0x181] sm:$0xff] %vm1384_vm5, %v1929_v37  ;;  %v2978_v15 = vadd.f32 %v2962_v10, %v2930_v42  ;;  %v2691_v8 = vadd.f32 %v2675_v55, %v2643_v0  ;;  %v2692_v32 = vadd.f32 %v2676_v50, %v2644_v38  ;;  %v2772_v52 = vmul.f32 %v6922_v62, %v8660_v7 }
 0x25f   : > { %3047 = vst.msk [vmem:[#allocation3 + $0x40] sm:$0xff] %vm226_vm2, %v3039_v56  ;;  %v2993_v31 = vmul.f32 %v2977_v46, %v6595_v40  ;;  %v2819_v54 = vmul.f32 %v6924_v61, %v6479_v30  ;;  %v2820_v19 = vmul.f32 %v6926_v33, %v6479_v30  ;;  %v2867_v18 = vmul.f32 %v6962_v41, %v6189_v47  ;;  %v7018_v56 = vld [vmem:[#allocation2 + $0x140] sm:$0xff] }
 0x260   : > { %v1931_v20 = vpop.permute.xlu0 %1930  ;;  %v3064_v14 = vld [vmem:[#allocation3 + $0x38] sm:$0xff]  ;;  %v2994_v63 = vmul.f32 %v2978_v15, %v6595_v40  ;;  %v2739_v17 = vadd.f32 %v2723_v57, %v2691_v8  ;;  %v2740_v21 = vadd.f32 %v2724_v5, %v2692_v32  ;;  %v2868_v49 = vmul.f32 %v6968_v9, %v6189_v47  ;;  %v7016_v57 = vld [vmem:[#allocation2 + $0x138] sm:$0xff] }
 0x261   : > { %1963 = vst.msk [vmem:[#allocation2 + $0x189] sm:$0xff] %vm1384_vm5, %v1931_v20  ;;  %5014 = vmatmul.mubr.msk.bf16.gmra.mrb[12].mxu1 %vm226_vm2, %v3064_v14  ;;  %v3009_v58 = vadd.f32 %v2993_v31, %v6597_v39  ;;  %v2915_v26 = vmul.f32 %v6972_v51, %v6525_v22  ;;  %v2916_v60 = vmul.f32 %v6974_v25, %v6525_v22  ;;  %v7027_v5 = vld [vmem:[#allocation2 + $0x139] sm:$0xff]  ;;  %v7036_v31 = vld [vmem:[#allocation2 + $0x142] sm:$0xff] }
 0x262   : > { %v2963_v23 = vmul.f32 %v6976_v36, %v6279_v53  ;;  %v3010_v10 = vadd.f32 %v2994_v63, %v6597_v39  ;;  %v2787_v37 = vadd.f32 %v2771_v48, %v2739_v17  ;;  %v2788_v34 = vadd.f32 %v2772_v52, %v2740_v21  ;;  %v7032_v52 = vld [vmem:[#allocation2 + $0x141] sm:$0xff] }
 0x263   : > { %v2964_v59 = vmul.f32 %v6986_v28, %v6279_v53  ;;  %v3025_v1 = vmax.f32 %v3009_v58, 0.0  ;;  %v2581_v4 = vmul.f32 %v6908_v29, %v8657_v12  ;;  %v2582_v45 = vmul.f32 %v6910_v6, %v8657_v12  ;;  %v7034_v14 = vld [vmem:[#allocation2 + $0x13a] sm:$0xff] }
 0x264   : > { %v2629_v27 = vmul.f32 %v6917_v3, %v6358_v43  ;;  %v3026_v44 = vmax.f32 %v3010_v10, 0.0  ;;  %v2835_v35 = vadd.f32 %v2819_v54, %v2787_v37  ;;  %v2836_v20 = vadd.f32 %v2820_v19, %v2788_v34 }
 0x265   : > { %v2630_v2 = vmul.f32 %v6922_v62, %v6358_v43  ;;  %v2677_v55 = vmul.f32 %v6924_v61, %v8658_v13  ;;  %v2678_v50 = vmul.f32 %v6926_v33, %v8658_v13  ;;  %v2725_v29 = vmul.f32 %v6962_v41, %v6428_v24 }
 0x266   : > { %v2645_v16 = vadd.f32 %v2629_v27, %v2581_v4  ;;  %v3065_v6 = vld [vmem:[#allocation3 + $0x40] sm:$0xff]  ;;  %v3040_v42 = vpack.c.bf16 %v3026_v44, %v3025_v1  ;;  %v2883_v0 = vadd.f32 %v2867_v18, %v2835_v35  ;;  %v2884_v3 = vadd.f32 %v2868_v49, %v2836_v20 }
 0x267   : > { %v2646_v38 = vadd.f32 %v2630_v2, %v2582_v45  ;;  %5017 = vmatprep.mubr.msk.bf16.mxu1 %vm226_vm2, %v3065_v6  ;;  %v2726_v61 = vmul.f32 %v6968_v9, %v6428_v24  ;;  %v2773_v33 = vmul.f32 %v6972_v51, %v8660_v7  ;;  %v2774_v46 = vmul.f32 %v6974_v25, %v8660_v7 }
 0x268   : > { %v2693_v62 = vadd.f32 %v2677_v55, %v2645_v16  ;;  %3048 = vst.msk [vmem:[#allocation3 + $0x48] sm:$0xff] %vm226_vm2, %v3040_v42  ;;  %v2931_v48 = vadd.f32 %v2915_v26, %v2883_v0  ;;  %v2932_v15 = vadd.f32 %v2916_v60, %v2884_v3  ;;  %v2821_v32 = vmul.f32 %v6976_v36, %v6479_v30 }
 0x269   : > { %v2694_v8 = vadd.f32 %v2678_v50, %v2646_v38  ;;  %v2822_v19 = vmul.f32 %v6986_v28, %v6479_v30  ;;  %v2869_v18 = vmul.f32 %v7016_v57, %v6189_v47  ;;  %v2870_v63 = vmul.f32 %v7018_v56, %v6189_v47 }
 0x26a   : > { %v2741_v54 = vadd.f32 %v2725_v29, %v2693_v62  ;;  %v2979_v17 = vadd.f32 %v2963_v23, %v2931_v48  ;;  %v2980_v21 = vadd.f32 %v2964_v59, %v2932_v15  ;;  %v2917_v58 = vmul.f32 %v7027_v5, %v6525_v22  ;;  %v7073_v62 = vld [vmem:[#allocation2 + $0x150] sm:$0xff] }
 0x26b   : > { %v2742_v49 = vadd.f32 %v2726_v61, %v2694_v8  ;;  %v2918_v60 = vmul.f32 %v7032_v52, %v6525_v22  ;;  %v2965_v10 = vmul.f32 %v7034_v14, %v6279_v53  ;;  %v2966_v37 = vmul.f32 %v7036_v31, %v6279_v53  ;;  %v7075_v61 = vld [vmem:[#allocation2 + $0x158] sm:$0xff] }
 0x26c   : > { %v2789_v26 = vadd.f32 %v2773_v33, %v2741_v54  ;;  %v2995_v34 = vmul.f32 %v2979_v17, %v6595_v40  ;;  %v2996_v1 = vmul.f32 %v2980_v21, %v6595_v40  ;;  %v2583_v59 = vmul.f32 %v6962_v41, %v8657_v12  ;;  %v7081_v15 = vld [vmem:[#allocation2 + $0x151] sm:$0xff]  ;;  %v7089_v17 = vld [vmem:[#allocation2 + $0x15a] sm:$0xff] }
 0x26d   : > { %v2790_v23 = vadd.f32 %v2774_v46, %v2742_v49  ;;  %v2584_v45 = vmul.f32 %v6968_v9, %v8657_v12  ;;  %v2631_v27 = vmul.f32 %v6972_v51, %v6358_v43  ;;  %v2632_v44 = vmul.f32 %v6974_v25, %v6358_v43 }
 0x26e   : > { %v2837_v4 = vadd.f32 %v2821_v32, %v2789_v26  ;;  %v3011_v35 = vadd.f32 %v2995_v34, %v6597_v39  ;;  %v3012_v20 = vadd.f32 %v2996_v1, %v6597_v39  ;;  %v2679_v16 = vmul.f32 %v6976_v36, %v8658_v13 }
 0x26f   : > { %v2838_v2 = vadd.f32 %v2822_v19, %v2790_v23  ;;  %v3066_v55 = vld [vmem:[#allocation3 + $0x48] sm:$0xff]  ;;  %v2647_v50 = vadd.f32 %v2631_v27, %v2583_v59  ;;  %v2648_v29 = vadd.f32 %v2632_v44, %v2584_v45  ;;  %v2680_v9 = vmul.f32 %v6986_v28, %v8658_v13 }
 0x270   : > { %v2885_v41 = vadd.f32 %v2869_v18, %v2837_v4  ;;  %5018 = vmatmul.mubr.msk.bf16.gmra.mrb[16].mxu1 %vm226_vm2, %v3066_v55  ;;  %v3027_v51 = vmax.f32 %v3011_v35, 0.0  ;;  %v3028_v6 = vmax.f32 %v3012_v20, 0.0  ;;  %v2727_v42 = vmul.f32 %v7016_v57, %v6428_v24  ;;  %v7085_v18 = vld [vmem:[#allocation2 + $0x159] sm:$0xff] }
 0x271   : > { %v2886_v25 = vadd.f32 %v2870_v63, %v2838_v2  ;;  %v2695_v3 = vadd.f32 %v2679_v16, %v2647_v50  ;;  %v2696_v38 = vadd.f32 %v2680_v9, %v2648_v29  ;;  %v2728_v36 = vmul.f32 %v7018_v56, %v6428_v24  ;;  %v7087_v63 = vld [vmem:[#allocation2 + $0x152] sm:$0xff] }
 0x272   : > { %v2933_v0 = vadd.f32 %v2917_v58, %v2885_v41  ;;  %v3041_v33 = vpack.c.bf16 %v3028_v6, %v3027_v51  ;;  %v2775_v46 = vmul.f32 %v7027_v5, %v8660_v7  ;;  %v2776_v48 = vmul.f32 %v7032_v52, %v8660_v7 }
 0x273   : > { %v2934_v28 = vadd.f32 %v2918_v60, %v2886_v25  ;;  %v2743_v32 = vadd.f32 %v2727_v42, %v2695_v3  ;;  %v2744_v54 = vadd.f32 %v2728_v36, %v2696_v38  ;;  %v2823_v19 = vmul.f32 %v7034_v14, %v6479_v30  ;;  %v7127_v36 = vld [vmem:[#allocation2 + $0x168] sm:$0xff] }
 0x274   : > { %v2981_v8 = vadd.f32 %v2965_v10, %v2933_v0  ;;  %3049 = vst.msk [vmem:[#allocation3 + $0x50] sm:$0xff] %vm226_vm2, %v3041_v33  ;;  %v2824_v49 = vmul.f32 %v7036_v31, %v6479_v30  ;;  %v2871_v58 = vmul.f32 %v7073_v62, %v6189_v47  ;;  %v2872_v26 = vmul.f32 %v7075_v61, %v6189_v47  ;;  %v7129_v33 = vld [vmem:[#allocation2 + $0x170] sm:$0xff] }
 0x275   : > { %v2982_v21 = vadd.f32 %v2966_v37, %v2934_v28  ;;  %v2791_v10 = vadd.f32 %v2775_v46, %v2743_v32  ;;  %v2792_v34 = vadd.f32 %v2776_v48, %v2744_v54  ;;  %v2919_v1 = vmul.f32 %v7081_v15, %v6525_v22  ;;  %v7137_v32 = vld [vmem:[#allocation2 + $0x171] sm:$0xff] }
 0x276   : > { %v2997_v60 = vmul.f32 %v2981_v8, %v6595_v40  ;;  %v2920_v37 = vmul.f32 %v7085_v18, %v6525_v22  ;;  %v2967_v59 = vmul.f32 %v7087_v63, %v6279_v53  ;;  %v2968_v4 = vmul.f32 %v7089_v17, %v6279_v53  ;;  %v7135_v8 = vld [vmem:[#allocation2 + $0x169] sm:$0xff] }
 0x277   : > { %v2998_v23 = vmul.f32 %v2982_v21, %v6595_v40  ;;  %v2839_v27 = vadd.f32 %v2823_v19, %v2791_v10  ;;  %v2840_v44 = vadd.f32 %v2824_v49, %v2792_v34  ;;  %v2585_v35 = vmul.f32 %v7016_v57, %v8657_v12 }
 0x278   : > { %v3013_v45 = vadd.f32 %v2997_v60, %v6597_v39  ;;  %v2586_v2 = vmul.f32 %v7018_v56, %v8657_v12  ;;  %v2633_v16 = vmul.f32 %v7027_v5, %v6358_v43  ;;  %v2634_v55 = vmul.f32 %v7032_v52, %v6358_v43 }
 0x279   : > { %v3014_v20 = vadd.f32 %v2998_v23, %v6597_v39  ;;  %v2887_v50 = vadd.f32 %v2871_v58, %v2839_v27  ;;  %v2888_v29 = vadd.f32 %v2872_v26, %v2840_v44  ;;  %v2681_v9 = vmul.f32 %v7034_v14, %v8658_v13  ;;  %v7144_v58 = vld [vmem:[#allocation2 + $0x16a] sm:$0xff] }
 0x27a   : > { %v3029_v41 = vmax.f32 %v3013_v45, 0.0  ;;  %v2649_v6 = vadd.f32 %v2633_v16, %v2585_v35  ;;  %v2650_v57 = vadd.f32 %v2634_v55, %v2586_v2  ;;  %v2682_v25 = vmul.f32 %v7036_v31, %v8658_v13 }
 0x27b   : > { %v3030_v51 = vmax.f32 %v3014_v20, 0.0  ;;  %v3067_v42 = vld [vmem:[#allocation3 + $0x50] sm:$0xff]  ;;  %v2935_v56 = vadd.f32 %v2919_v1, %v2887_v50  ;;  %v2936_v0 = vadd.f32 %v2920_v37, %v2888_v29  ;;  %v2729_v5 = vmul.f32 %v7073_v62, %v6428_v24  ;;  %v2954_v50 = vld [vmem:[#allocation2 + $0x172] sm:$0xff] }
 0x27c   : > { %v2730_v52 = vmul.f32 %v7075_v61, %v6428_v24  ;;  %5021 = vmatprep.mubr.msk.bf16.mxu1 %vm226_vm2, %v3067_v42  ;;  %v2697_v38 = vadd.f32 %v2681_v9, %v2649_v6  ;;  %v2698_v14 = vadd.f32 %v2682_v25, %v2650_v57  ;;  %v2777_v46 = vmul.f32 %v7081_v15, %v8660_v7 }
 0x27d   : > { %v3042_v3 = vpack.c.bf16 %v3030_v51, %v3029_v41  ;;  %v2983_v28 = vadd.f32 %v2967_v59, %v2935_v56  ;;  %v2984_v31 = vadd.f32 %v2968_v4, %v2936_v0  ;;  %v2778_v48 = vmul.f32 %v7085_v18, %v8660_v7 }
 0x27e   : > { %v2745_v54 = vadd.f32 %v2729_v5, %v2697_v38  ;;  %v2746_v19 = vadd.f32 %v2730_v52, %v2698_v14  ;;  %v2825_v21 = vmul.f32 %v7087_v63, %v6479_v30  ;;  %v2826_v49 = vmul.f32 %v7089_v17, %v6479_v30  ;;  %v2859_v52 = vld [vmem:[#allocation2 + $0x180] sm:$0xff] }
 0x27f   : > { %3050 = vst.msk [vmem:[#allocation3 + $0x58] sm:$0xff] %vm226_vm2, %v3042_v3  ;;  %v2999_v26 = vmul.f32 %v2983_v28, %v6595_v40  ;;  %v3000_v60 = vmul.f32 %v2984_v31, %v6595_v40  ;;  %v2873_v10 = vmul.f32 %v7127_v36, %v6189_v47  ;;  %v2874_v34 = vmul.f32 %v7129_v33, %v6189_v47  ;;  %v2860_v3 = vld [vmem:[#allocation2 + $0x188] sm:$0xff] }
 0x280   : > { %v2793_v1 = vadd.f32 %v2777_v46, %v2745_v54  ;;  %v2794_v23 = vadd.f32 %v2778_v48, %v2746_v19  ;;  %v2921_v37 = vmul.f32 %v7135_v8, %v6525_v22  ;;  %v2922_v59 = vmul.f32 %v7137_v32, %v6525_v22  ;;  %v2907_v28 = vld [vmem:[#allocation2 + $0x181] sm:$0xff]  ;;  %v2908_v19 = vld [vmem:[#allocation2 + $0x189] sm:$0xff] }
 0x281   : > { %v3015_v4 = vadd.f32 %v2999_v26, %v6597_v39  ;;  %v3016_v45 = vadd.f32 %v3000_v60, %v6597_v39  ;;  %v2969_v27 = vmul.f32 %v7144_v58, %v6279_v53  ;;  %v2587_v44 = vmul.f32 %v7073_v62, %v8657_v12 }
 0x282   : > { %v2841_v35 = vadd.f32 %v2825_v21, %v2793_v1  ;;  %v2842_v20 = vadd.f32 %v2826_v49, %v2794_v23  ;;  %v2588_v2 = vmul.f32 %v7075_v61, %v8657_v12  ;;  %v2635_v16 = vmul.f32 %v7081_v15, %v6358_v43 }
 0x283   : > { %v3031_v55 = vmax.f32 %v3015_v4, 0.0  ;;  %v3032_v41 = vmax.f32 %v3016_v45, 0.0  ;;  %v2636_v29 = vmul.f32 %v7085_v18, %v6358_v43  ;;  %v2683_v9 = vmul.f32 %v7087_v63, %v8658_v13 }
 0x284   : > { %v2889_v51 = vadd.f32 %v2873_v10, %v2841_v35  ;;  %v2890_v6 = vadd.f32 %v2874_v34, %v2842_v20  ;;  %v2651_v62 = vadd.f32 %v2635_v16, %v2587_v44  ;;  %v2684_v57 = vmul.f32 %v7089_v17, %v8658_v13  ;;  %v7200_v16 = vld [vmem:[#allocation2 + $0x182] sm:$0xff] }
 0x285   : > { %v3043_v61 = vpack.c.bf16 %v3032_v41, %v3031_v55  ;;  %v2652_v42 = vadd.f32 %v2636_v29, %v2588_v2  ;;  %v2731_v15 = vmul.f32 %v7127_v36, %v6428_v24  ;;  %v2732_v56 = vmul.f32 %v7129_v33, %v6428_v24 }
 0x286   : > { %v3068_v25 = vld [vmem:[#allocation3 + $0x58] sm:$0xff]  ;;  %v2937_v18 = vadd.f32 %v2921_v37, %v2889_v51  ;;  %v2938_v0 = vadd.f32 %v2922_v59, %v2890_v6  ;;  %v2970_v63 = vmul.f32 %v2954_v50, %v6279_v53  ;;  %v2699_v5 = vadd.f32 %v2683_v9, %v2651_v62 }
 0x287   : > { %5022 = vmatmul.mubr.msk.bf16.gmra.mrb[20].mxu1 %vm226_vm2, %v3068_v25  ;;  %3051 = vst.msk [vmem:[#allocation3 + $0x60] sm:$0xff] %vm226_vm2, %v3043_v61  ;;  %v2700_v17 = vadd.f32 %v2684_v57, %v2652_v42  ;;  %v2779_v38 = vmul.f32 %v7135_v8, %v8660_v7  ;;  %v2780_v14 = vmul.f32 %v7137_v32, %v8660_v7  ;;  %v2956_v51 = vld [vmem:[#allocation2 + $0x18a] sm:$0xff] }
 0x288   : > { %v2985_v31 = vadd.f32 %v2969_v27, %v2937_v18  ;;  %v2986_v46 = vadd.f32 %v2970_v63, %v2938_v0  ;;  %v2747_v48 = vadd.f32 %v2731_v15, %v2699_v5  ;;  %v2827_v54 = vmul.f32 %v7144_v58, %v6479_v30  ;;  %v2861_v5 = vld [vmem:[#allocation2 + $0x198] sm:$0xff] }
 0x289   : > { %v2748_v21 = vadd.f32 %v2732_v56, %v2700_v17  ;;  %v2828_v49 = vmul.f32 %v2954_v50, %v6479_v30  ;;  %v2875_v26 = vmul.f32 %v2859_v52, %v6189_v47  ;;  %v2876_v60 = vmul.f32 %v2860_v3, %v6189_v47  ;;  %v2862_v17 = vld [vmem:[#allocation2 + $0x1a0] sm:$0xff] }
 0x28a   : > { %v3001_v10 = vmul.f32 %v2985_v31, %v6595_v40  ;;  %v3002_v34 = vmul.f32 %v2986_v46, %v6595_v40  ;;  %v2795_v1 = vadd.f32 %v2779_v38, %v2747_v48  ;;  %v2923_v23 = vmul.f32 %v2907_v28, %v6525_v22  ;;  %v2909_v31 = vld [vmem:[#allocation2 + $0x199] sm:$0xff] }
 0x28b   : > { %v2796_v37 = vadd.f32 %v2780_v14, %v2748_v21  ;;  %v2924_v59 = vmul.f32 %v2908_v19, %v6525_v22  ;;  %v2589_v4 = vmul.f32 %v7127_v36, %v8657_v12  ;;  %v2590_v45 = vmul.f32 %v7129_v33, %v8657_v12 }
 0x28c   : > { %v3017_v27 = vadd.f32 %v3001_v10, %v6597_v39  ;;  %v3018_v44 = vadd.f32 %v3002_v34, %v6597_v39  ;;  %v2843_v35 = vadd.f32 %v2827_v54, %v2795_v1  ;;  %v2637_v20 = vmul.f32 %v7135_v8, %v6358_v43  ;;  %v2958_v34 = vld [vmem:[#allocation2 + $0x1a2] sm:$0xff] }
 0x28d   : > { %v2844_v2 = vadd.f32 %v2828_v49, %v2796_v37  ;;  %v2638_v55 = vmul.f32 %v7137_v32, %v6358_v43  ;;  %v2685_v36 = vmul.f32 %v7144_v58, %v8658_v13  ;;  %v2686_v41 = vmul.f32 %v2954_v50, %v8658_v13 }
 0x28e   : > { %v3069_v12 = vld [vmem:[#allocation3 + $0x60] sm:$0xff]  ;;  %v3033_v33 = vmax.f32 %v3017_v27, 0.0  ;;  %v3034_v29 = vmax.f32 %v3018_v44, 0.0  ;;  %v2891_v9 = vadd.f32 %v2875_v26, %v2843_v35  ;;  %v2653_v6 = vadd.f32 %v2637_v20, %v2589_v4  ;;  %v2957_v26 = vld [vmem:[#allocation2 + $0x19a] sm:$0xff] }
 0x28f   : > { %5025 = vmatprep.mubr.msk.bf16.mxu1 %vm226_vm2, %v3069_v12  ;;  %v2892_v8 = vadd.f32 %v2876_v60, %v2844_v2  ;;  %v2654_v62 = vadd.f32 %v2638_v55, %v2590_v45  ;;  %v2733_v57 = vmul.f32 %v2859_v52, %v6428_v24  ;;  %v2734_v25 = vmul.f32 %v2860_v3, %v6428_v24 }
 0x290   : > { %v3044_v43 = vpack.c.bf16 %v3034_v29, %v3033_v33  ;;  %v2939_v32 = vadd.f32 %v2923_v23, %v2891_v9  ;;  %v2971_v58 = vmul.f32 %v7200_v16, %v6279_v53  ;;  %v2701_v13 = vadd.f32 %v2685_v36, %v2653_v6  ;;  %v7302_v29 = vpop.permute.xlu1 %3311  ;;  %v7304_v9 = vpop.permute.xlu0 %3351 }
 0x291   : > { %v2940_v50 = vadd.f32 %v2924_v59, %v2892_v8  ;;  %v2972_v61 = vmul.f32 %v2956_v51, %v6279_v53  ;;  %v2702_v42 = vadd.f32 %v2686_v41, %v2654_v62  ;;  %v2781_v18 = vmul.f32 %v2907_v28, %v8660_v7 }
 0x292   : > { %3052 = vst.msk [vmem:[#allocation3 + $0x68] sm:$0xff] %vm226_vm2, %v3044_v43  ;;  %v2987_v15 = vadd.f32 %v2971_v58, %v2939_v32  ;;  %v2749_v56 = vadd.f32 %v2733_v57, %v2701_v13  ;;  %v2782_v24 = vmul.f32 %v2908_v19, %v8660_v7  ;;  %v2829_v3 = vmul.f32 %v7200_v16, %v6479_v30  ;;  %v2910_v19 = vld [vmem:[#allocation2 + $0x1a1] sm:$0xff]  ;;  %v3461_v58 = vld [vmem:[#allocation4] sm:$0xff] }
 0x293   : > { %v2988_v0 = vadd.f32 %v2972_v61, %v2940_v50  ;;  %v2750_v63 = vadd.f32 %v2734_v25, %v2702_v42  ;;  %v2830_v28 = vmul.f32 %v2956_v51, %v6479_v30  ;;  %v2877_v54 = vmul.f32 %v2861_v5, %v6189_v47  ;;  %v3517_v13 = vld [vmem:[#allocation4 + $0x1] sm:$0xff] }
 0x294   : > { %v3003_v7 = vmul.f32 %v2987_v15, %v6595_v40  ;;  %v2797_v52 = vadd.f32 %v2781_v18, %v2749_v56  ;;  %v2878_v49 = vmul.f32 %v2862_v17, %v6189_v47  ;;  %v2925_v10 = vmul.f32 %v2909_v31, %v6525_v22  ;;  %v7308_v51 = vpop.permute.xlu0 %3538  ;;  %v3462_v15 = vld [vmem:[#allocation4 + $0x8] sm:$0xff] }
 0x295   : > { %v3004_v38 = vmul.f32 %v2988_v0, %v6595_v40  ;;  %v2798_v14 = vadd.f32 %v2782_v24, %v2750_v63  ;;  %v2926_v59 = vmul.f32 %v2910_v19, %v6525_v22  ;;  %v2973_v45 = vmul.f32 %v2957_v26, %v6279_v53  ;;  %v3518_v56 = vld [vmem:[#allocation4 + $0x9] sm:$0xff] }
 0x296   : > { %v3019_v46 = vadd.f32 %v3003_v7, %v6597_v39  ;;  %v2845_v48 = vadd.f32 %v2829_v3, %v2797_v52  ;;  %v2974_v47 = vmul.f32 %v2958_v34, %v6279_v53  ;;  %v3541_v7 = vmul.f32 %v7308_v51, %v3517_v13 }
 0x297   : > { %v3020_v11 = vadd.f32 %v3004_v38, %v6597_v39  ;;  %v2846_v21 = vadd.f32 %v2830_v28, %v2798_v14  ;;  %v3573_v38 = vld [vmem:[#allocation4 + $0x2] sm:$0xff]  ;;  %v3542_v28 = vmul.f32 %v7308_v51, %v3518_v56 }
 0x298   : > { %v2893_v60 = vadd.f32 %v2877_v54, %v2845_v48  ;;  %v3035_v23 = vmax.f32 %v3019_v46, 0.0  ;;  %v7312_v8 = vpop.permute.xlu0 %3650  ;;  %v3574_v46 = vld [vmem:[#allocation4 + $0xa] sm:$0xff] }
 0x299   : > { %v3070_v1 = vld [vmem:[#allocation3 + $0x68] sm:$0xff]  ;;  %v3036_v30 = vmax.f32 %v3020_v11, 0.0  ;;  %v2894_v37 = vadd.f32 %v2878_v49, %v2846_v21 }
 0x29a   : > { %5026 = vmatmul.mubr.msk.bf16.gmra.mrb[24].mxu1 %vm226_vm2, %v3070_v1  ;;  %v2941_v4 = vadd.f32 %v2925_v10, %v2893_v60 }
 0x29b   : > { %v3045_v27 = vpack.c.bf16 %v3036_v30, %v3035_v23  ;;  %v2942_v44 = vadd.f32 %v2926_v59, %v2894_v37 }
 0x29c   : > { %v2989_v35 = vadd.f32 %v2973_v45, %v2941_v4  ;;  %v7336_v17 = vpop.permute.xlu0 %3762 }
 0x29d   : > { %3053 = vst.msk [vmem:[#allocation3 + $0x70] sm:$0xff] %vm226_vm2, %v3045_v27  ;;  %v2990_v20 = vadd.f32 %v2974_v47, %v2942_v44 }
 0x29e   : > { %v3005_v2 = vmul.f32 %v2989_v35, %v6595_v40 }
 0x29f   : > { %v3006_v16 = vmul.f32 %v2990_v20, %v6595_v40  ;;  %v7306_v40 = vpop.permute.xlu1 %3482 }
 0x2a0   : > { %v3021_v55 = vadd.f32 %v3005_v2, %v6597_v39  ;;  %v3485_v5 = vmul.f32 %v7306_v40, %v3461_v58  ;;  %v3486_v14 = vmul.f32 %v7306_v40, %v3462_v15  ;;  %v7368_v45 = vpop.permute.xlu0 %3875 }
 0x2a1   : > { %v3022_v22 = vadd.f32 %v3006_v16, %v6597_v39 }
 0x2a2   : > { %v3037_v36 = vmax.f32 %v3021_v55, 0.0  ;;  %v3557_v10 = vadd.f32 %v3541_v7, %v3485_v5  ;;  %v3558_v34 = vadd.f32 %v3542_v28, %v3486_v14 }
 0x2a3   : > { %v3038_v41 = vmax.f32 %v3022_v22, 0.0  ;;  %v7310_v39 = vpop.permute.xlu1 %3594 }
 0x2a4   : > { %v3071_v12 = vld [vmem:[#allocation3 + $0x70] sm:$0xff]  ;;  %v3597_v49 = vmul.f32 %v7310_v39, %v3573_v38  ;;  %v3598_v1 = vmul.f32 %v7310_v39, %v3574_v46 }
 0x2a5   : > { %5029 = vmatprep.mubr.msk.bf16.mxu1 %vm226_vm2, %v3071_v12  ;;  %v3046_v33 = vpack.c.bf16 %v3038_v41, %v3037_v36 }
 0x2a6   : > { %v3613_v2 = vadd.f32 %v3597_v49, %v3557_v10  ;;  %v3614_v22 = vadd.f32 %v3598_v1, %v3558_v34 }
 0x2a7   : > { %3054 = vst.msk [vmem:[#allocation3 + $0x78] sm:$0xff] %vm226_vm2, %v3046_v33  ;;  %v7316_v32 = vpop.permute.xlu1 %3706 }
 0x2ab   : > { %v7348_v19 = vpop.permute.xlu1 %3819 }
 0x2ae   : > { %v3072_v53 = vld [vmem:[#allocation3 + $0x78] sm:$0xff] }
 0x2af   : > { %5030 = vmatmul.mubr.msk.bf16.gmra.mrb[28].mxu1 %vm226_vm2, %v3072_v53  ;;  %v7378_v20 = vpop.permute.xlu1 %3931 }
 0x2cc   : > { %v5003_v6 = vpop.f32.mrb[0].mxu1 }
 0x2cd   : > { %v3316_v62 = vmul.f32 %v5003_v6, %v7302_v29  ;;  %v3179_v57 = vpop.f32.mrb[1].mxu1 }
 0x2ce   : > { %v3314_v25 = vmul.f32 %v7302_v29, %v3179_v57  ;;  %v5004_v43 = vpop.f32.mrb[2].mxu1 }
 0x2cf   : > { %v7319_v50 = vadd.f32 %v7304_v9, %v3316_v62  ;;  %v3317_v61 = vmul.f32 %v5004_v43, %v7302_v29  ;;  %v3182_v42 = vpop.f32.mrb[3].mxu1 }
 0x2d0   : > { %v7323_v18 = vadd.f32 %v7304_v9, %v3314_v25  ;;  %v3315_v0 = vmul.f32 %v7302_v29, %v3182_v42 }
 0x2d1   : > { %v8602_v63 = vmax.f32 %v7319_v50, 0.0  ;;  %v7328_v24 = vadd.f32 %v7304_v9, %v3317_v61 }
 0x2d2   : > { %v8604_v52 = vmax.f32 %v7323_v18, 0.0  ;;  %v7334_v3 = vadd.f32 %v7304_v9, %v3315_v0 }
 0x2d3   : > { %3420 = vst.msk [vmem:[#allocation4 + $0x31] sm:$0xff] %vm268_vm6, %v8602_v63  ;;  %v8601_v31 = vmax.f32 %v7328_v24, 0.0 }
 0x2d4   : > { %3418 = vst.msk [vmem:[#allocation4 + $0x19] sm:$0xff] %vm268_vm6, %v8604_v52  ;;  %v8603_v48 = vmax.f32 %v7334_v3, 0.0  ;;  %v5007_v54 = vpop.f32.mrb[4].mxu1 }
 0x2d5   : > { %3421 = vst.msk [vmem:[#allocation4 + $0x39] sm:$0xff] %vm268_vm6, %v8601_v31  ;;  %v3320_v11 = vmul.f32 %v5007_v54, %v7302_v29  ;;  %v3195_v21 = vpop.f32.mrb[5].mxu1 }
 0x2d6   : > { %3419 = vst.msk [vmem:[#allocation4 + $0x21] sm:$0xff] %vm268_vm6, %v8603_v48  ;;  %v3318_v26 = vmul.f32 %v7302_v29, %v3195_v21  ;;  %v5008_v60 = vpop.f32.mrb[6].mxu1 }
 0x2d7   : > { %v7361_v23 = vadd.f32 %v7304_v9, %v3320_v11  ;;  %v3321_v30 = vmul.f32 %v5008_v60, %v7302_v29  ;;  %v3198_v37 = vpop.f32.mrb[7].mxu1 }
 0x2d8   : > { %v7365_v59 = vadd.f32 %v7304_v9, %v3318_v26  ;;  %v3319_v4 = vmul.f32 %v7302_v29, %v3198_v37 }
 0x2d9   : > { %8727 = vst [vmem:[#allocation16_spill] sm:$0xff] %v7361_v23  ;;  %v8590_v27 = vmax.f32 %v7361_v23, 0.0  ;;  %v7372_v44 = vadd.f32 %v7304_v9, %v3321_v30 }
 0x2da   : > { %v8600_v47 = vmax.f32 %v7365_v59, 0.0  ;;  %v7376_v35 = vadd.f32 %v7304_v9, %v3319_v4  ;;  %v3798_v16 = vld [vmem:[#allocation4 + $0x30] sm:$0xff] }
 0x2db   : > { %8728 = vst [vmem:[#allocation12_spill] sm:$0xff] %v7372_v44  ;;  %v7380_v55 = vld [vmem:[#allocation4 + $0x31] sm:$0xff]  ;;  %3424 = vst.msk [vmem:[#allocation4 + $0x61] sm:$0xff] %vm268_vm6, %v8590_v27  ;;  %v8589_v36 = vmax.f32 %v7372_v44, 0.0  ;;  %v3685_v12 = vld [vmem:[#allocation4 + $0x19] sm:$0xff]  ;;  %v3822_v33 = vmul.f32 %v7348_v19, %v3798_v16  ;;  %v3655_v6 = vmul.f32 %v3798_v16, %v7312_v8 }
 0x2dc   : > { %8729 = vst [vmem:[#allocation20_spill] sm:$0xff] %v7376_v35  ;;  %v3629_v41 = vld [vmem:[#allocation4 + $0x18] sm:$0xff]  ;;  %v3878_v53 = vmul.f32 %v7368_v45, %v7380_v55  ;;  %3422 = vst.msk [vmem:[#allocation4 + $0x49] sm:$0xff] %vm268_vm6, %v8600_v47  ;;  %v8591_v62 = vmax.f32 %v7376_v35, 0.0  ;;  %v3709_v25 = vmul.f32 %v7316_v32, %v3685_v12  ;;  %v3543_v38 = vmul.f32 %v3685_v12, %v7308_v51 }
 0x2dd   : > { %v3653_v57 = vmul.f32 %v7312_v8, %v3629_v41  ;;  %v7396_v43 = vld [vmem:[#allocation4 + $0x32] sm:$0xff]  ;;  %v3487_v61 = vmul.f32 %v3629_v41, %v7306_v40  ;;  %3425 = vst.msk [vmem:[#allocation4 + $0x69] sm:$0xff] %vm268_vm6, %v8589_v36  ;;  %v3741_v42 = vld [vmem:[#allocation4 + $0x1a] sm:$0xff]  ;;  %v3742_v11 = vld [vmem:[#allocation4 + $0x22] sm:$0xff]  ;;  %v3711_v30 = vmul.f32 %v7380_v55, %v7316_v32 }
 0x2de   : > { %v7398_v58 = vld [vmem:[#allocation4 + $0x38] sm:$0xff]  ;;  %v3934_v15 = vmul.f32 %v7378_v20, %v7396_v43  ;;  %v3630_v56 = vld [vmem:[#allocation4 + $0x20] sm:$0xff]  ;;  %3423 = vst.msk [vmem:[#allocation4 + $0x51] sm:$0xff] %vm268_vm6, %v8591_v62  ;;  %v3765_v28 = vmul.f32 %v7336_v17, %v3741_v42  ;;  %v3766_v49 = vmul.f32 %v7336_v17, %v3742_v11  ;;  %v3599_v10 = vmul.f32 %v3741_v42, %v7310_v39 }
 0x2df   : > { %v7400_v13 = vld [vmem:[#allocation4 + $0x39] sm:$0xff]  ;;  %v3686_v0 = vld [vmem:[#allocation4 + $0x21] sm:$0xff]  ;;  %v3823_v5 = vmul.f32 %v7348_v19, %v7398_v58  ;;  %v3669_v14 = vadd.f32 %v3653_v57, %v3613_v2  ;;  %v3654_v46 = vmul.f32 %v7312_v8, %v3630_v56  ;;  %v3559_v60 = vadd.f32 %v3543_v38, %v3487_v61 }
 0x2e0   : > { %v3879_v7 = vmul.f32 %v7368_v45, %v7400_v13  ;;  %v3710_v54 = vmul.f32 %v7316_v32, %v3686_v0  ;;  %v7419_v21 = vld [vmem:[#allocation4 + $0x3a] sm:$0xff]  ;;  %v3767_v37 = vmul.f32 %v7396_v43, %v7336_v17  ;;  %v3488_v2 = vmul.f32 %v3630_v56, %v7306_v40 }
 0x2e1   : > { %v3935_v26 = vmul.f32 %v7378_v20, %v7419_v21  ;;  %v3725_v34 = vadd.f32 %v3709_v25, %v3669_v14  ;;  %v3670_v1 = vadd.f32 %v3654_v46, %v3614_v22  ;;  %v3615_v4 = vadd.f32 %v3599_v10, %v3559_v60 }
 0x2e2   : > { %v3544_v41 = vmul.f32 %v3686_v0, %v7308_v51  ;;  %v3600_v12 = vmul.f32 %v3742_v11, %v7310_v39  ;;  %v3656_v61 = vmul.f32 %v7398_v58, %v7312_v8  ;;  %v3712_v22 = vmul.f32 %v7400_v13, %v7316_v32 }
 0x2e3   : > { %v3781_v57 = vadd.f32 %v3765_v28, %v3725_v34  ;;  %v3726_v36 = vadd.f32 %v3710_v54, %v3670_v1  ;;  %v3671_v25 = vadd.f32 %v3655_v6, %v3615_v4  ;;  %v7436_v42 = vld [vmem:[#allocation4 + $0x48] sm:$0xff]  ;;  %v3768_v56 = vmul.f32 %v7419_v21, %v7336_v17 }
 0x2e4   : > { %v7438_v38 = vld [vmem:[#allocation4 + $0x49] sm:$0xff]  ;;  %v3560_v14 = vadd.f32 %v3544_v41, %v3488_v2  ;;  %v3489_v0 = vmul.f32 %v3798_v16, %v7306_v40  ;;  %v3824_v11 = vmul.f32 %v7348_v19, %v7436_v42  ;;  %v3545_v2 = vmul.f32 %v7380_v55, %v7308_v51 }
 0x2e5   : > { %v5011_v46 = vpop.f32.mrb[8].mxu1  ;;  %v3838_v28 = vadd.f32 %v3822_v33, %v3781_v57  ;;  %v3782_v54 = vadd.f32 %v3766_v49, %v3726_v36  ;;  %v3880_v60 = vmul.f32 %v7368_v45, %v7438_v38  ;;  %v3727_v34 = vadd.f32 %v3711_v30, %v3671_v25  ;;  %v7448_v1 = vld [vmem:[#allocation4 + $0x4a] sm:$0xff]  ;;  %v7459_v25 = vpop.permute.xlu0 %3971 }
 0x2e6   : > { %v3324_v6 = vmul.f32 %v5011_v46, %v7302_v29  ;;  %v3211_v10 = vpop.f32.mrb[9].mxu1  ;;  %v3616_v4 = vadd.f32 %v3600_v12, %v3560_v14  ;;  %v3936_v41 = vmul.f32 %v7378_v20, %v7448_v1 }
 0x2e7   : > { %v3322_v16 = vmul.f32 %v7302_v29, %v3211_v10  ;;  %v5012_v33 = vpop.f32.mrb[10].mxu1  ;;  %v3894_v36 = vadd.f32 %v3878_v53, %v3838_v28  ;;  %v3839_v49 = vadd.f32 %v3823_v5, %v3782_v54  ;;  %v3783_v12 = vadd.f32 %v3767_v37, %v3727_v34  ;;  %v7465_v28 = vld [vmem:[#allocation4 + $0x50] sm:$0xff] }
 0x2e8   : > { %v7456_v57 = vadd.f32 %v7304_v9, %v3324_v6  ;;  %v3325_v46 = vmul.f32 %v5012_v33, %v7302_v29  ;;  %v3214_v30 = vpop.f32.mrb[11].mxu1  ;;  %v3672_v14 = vadd.f32 %v3656_v61, %v3616_v4  ;;  %v7471_v33 = vpop.permute.xlu1 %3995 }
 0x2e9   : > { %v7462_v55 = vadd.f32 %v7304_v9, %v3322_v16  ;;  %v3323_v10 = vmul.f32 %v7302_v29, %v3214_v30  ;;  %v3950_v53 = vadd.f32 %v3934_v15, %v3894_v36  ;;  %v3895_v5 = vadd.f32 %v3879_v7, %v3839_v49  ;;  %v7478_v7 = vld [vmem:[#allocation4 + $0x51] sm:$0xff] }
 0x2ea   : > { %8730 = vst [vmem:[#allocation21_spill] sm:$0xff] %v7456_v57  ;;  %v8593_v54 = vmax.f32 %v7456_v57, 0.0  ;;  %v7469_v6 = vadd.f32 %v7304_v9, %v3325_v46  ;;  %v3840_v27 = vadd.f32 %v3824_v11, %v3783_v12  ;;  %v3728_v62 = vadd.f32 %v3712_v22, %v3672_v14  ;;  %v7492_v46 = vld [vmem:[#allocation4 + $0x52] sm:$0xff] }
 0x2eb   : > { %8731 = vst [vmem:[#allocation18_spill] sm:$0xff] %v7462_v55  ;;  %v8595_v37 = vmax.f32 %v7462_v55, 0.0  ;;  %v7475_v61 = vadd.f32 %v7304_v9, %v3323_v10  ;;  %v3974_v34 = vmul.f32 %v7459_v25, %v3950_v53  ;;  %v3951_v15 = vadd.f32 %v3935_v26, %v3895_v5 }
 0x2ec   : > { %8732 = vst [vmem:[#allocation5_spill] sm:$0xff] %v7469_v6  ;;  %3428 = vst.msk [vmem:[#allocation4 + $0x91] sm:$0xff] %vm268_vm6, %v8593_v54  ;;  %v8592_v4 = vmax.f32 %v7469_v6, 0.0  ;;  %v3896_v16 = vadd.f32 %v3880_v60, %v3840_v27  ;;  %v3784_v36 = vadd.f32 %v3768_v56, %v3728_v62  ;;  %v3825_v22 = vmul.f32 %v7348_v19, %v7465_v28 }
 0x2ed   : > { %8733 = vst [vmem:[#allocation22_spill] sm:$0xff] %v7475_v61  ;;  %3426 = vst.msk [vmem:[#allocation4 + $0x79] sm:$0xff] %vm268_vm6, %v8595_v37  ;;  %v8594_v11 = vmax.f32 %v7475_v61, 0.0  ;;  %v3998_v26 = vadd.f32 %v7471_v33, %v3974_v34  ;;  %v3975_v49 = vmul.f32 %v7459_v25, %v3951_v15  ;;  %v3881_v56 = vmul.f32 %v7368_v45, %v7478_v7  ;;  %v3802_v34 = vld [vmem:[#allocation4 + $0x60] sm:$0xff] }
 0x2ee   : > { %3429 = vst.msk [vmem:[#allocation4 + $0x99] sm:$0xff] %vm268_vm6, %v8592_v4  ;;  %v3952_v27 = vadd.f32 %v3936_v41, %v3896_v16  ;;  %v3841_v62 = vadd.f32 %v3825_v22, %v3784_v36  ;;  %v3561_v60 = vadd.f32 %v3545_v2, %v3489_v0  ;;  %v3601_v14 = vmul.f32 %v7396_v43, %v7310_v39 }
 0x2ef   : > { %3427 = vst.msk [vmem:[#allocation4 + $0x81] sm:$0xff] %vm268_vm6, %v8594_v11  ;;  %v4014_v30 = vmax.f32 %v3998_v26, 0.0  ;;  %v3999_v12 = vadd.f32 %v7471_v33, %v3975_v49  ;;  %v3657_v10 = vmul.f32 %v7436_v42, %v7312_v8  ;;  %v3937_v5 = vmul.f32 %v7378_v20, %v7492_v46  ;;  %v3858_v26 = vld [vmem:[#allocation4 + $0x61] sm:$0xff] }
 0x2f0   : > { %v3976_v41 = vmul.f32 %v7459_v25, %v3952_v27  ;;  %v3897_v53 = vadd.f32 %v3881_v56, %v3841_v62  ;;  %v3617_v2 = vadd.f32 %v3601_v14, %v3561_v60  ;;  %v3490_v43 = vmul.f32 %v7398_v58, %v7306_v40 }
 0x2f1   : > { %4545 = vrot.lane.b32.xlu0 %v4014_v30, %s5125_s17  ;;  %v4015_v0 = vmax.f32 %v3999_v12, 0.0  ;;  %v3713_v22 = vmul.f32 %v7438_v38, %v7316_v32  ;;  %v3546_v49 = vmul.f32 %v7400_v13, %v7308_v51  ;;  %v3769_v56 = vmul.f32 %v7448_v1, %v7336_v17  ;;  %v3914_v30 = vld [vmem:[#allocation4 + $0x62] sm:$0xff] }
 0x2f2   : > { %v4000_v15 = vadd.f32 %v7471_v33, %v3976_v41  ;;  %v3953_v16 = vadd.f32 %v3937_v5, %v3897_v53  ;;  %v3673_v36 = vadd.f32 %v3657_v10, %v3617_v2  ;;  %v3826_v60 = vmul.f32 %v7348_v19, %v3802_v34  ;;  %v7530_v53 = vld [vmem:[#allocation4 + $0x68] sm:$0xff] }
 0x2f3   : > { %4547 = vrot.lane.b32.xlu1 %v4015_v0, %s5125_s17  ;;  %v3562_v12 = vadd.f32 %v3546_v49, %v3490_v43  ;;  %v3602_v14 = vmul.f32 %v7419_v21, %v7310_v39  ;;  %v3658_v10 = vmul.f32 %v7465_v28, %v7312_v8  ;;  %v3882_v41 = vmul.f32 %v7368_v45, %v3858_v26  ;;  %v7532_v5 = vld [vmem:[#allocation4 + $0x69] sm:$0xff] }
 0x2f4   : > { %v4016_v27 = vmax.f32 %v4000_v15, 0.0  ;;  %v3977_v62 = vmul.f32 %v7459_v25, %v3953_v16  ;;  %v3729_v58 = vadd.f32 %v3713_v22, %v3673_v36  ;;  %v3491_v0 = vmul.f32 %v7436_v42, %v7306_v40 }
 0x2f5   : > { %v3547_v2 = vmul.f32 %v7438_v38, %v7308_v51  ;;  %v3938_v15 = vmul.f32 %v7378_v20, %v3914_v30  ;;  %v3618_v16 = vadd.f32 %v3602_v14, %v3562_v12  ;;  %v3603_v43 = vmul.f32 %v7448_v1, %v7310_v39  ;;  %v7551_v12 = vld [vmem:[#allocation4 + $0x78] sm:$0xff] }
 0x2f6   : > { %4549 = vrot.lane.b32.xlu0 %v4016_v27, %s5125_s17  ;;  %v4001_v13 = vadd.f32 %v7471_v33, %v3977_v62  ;;  %v3785_v21 = vadd.f32 %v3769_v56, %v3729_v58  ;;  %v3714_v22 = vmul.f32 %v7478_v7, %v7316_v32  ;;  %v3770_v49 = vmul.f32 %v7492_v46, %v7336_v17  ;;  %v3915_v27 = vld [vmem:[#allocation4 + $0x6a] sm:$0xff]  ;;  %v7553_v14 = vld [vmem:[#allocation4 + $0x79] sm:$0xff] }
 0x2f7   : > { %v3563_v62 = vadd.f32 %v3547_v2, %v3491_v0  ;;  %v3674_v4 = vadd.f32 %v3658_v10, %v3618_v16  ;;  %v3827_v38 = vmul.f32 %v7348_v19, %v7530_v53  ;;  %v3883_v56 = vmul.f32 %v7368_v45, %v7532_v5 }
 0x2f8   : > { %v4017_v36 = vmax.f32 %v4001_v13, 0.0  ;;  %v3842_v42 = vadd.f32 %v3826_v60, %v3785_v21  ;;  %v3659_v58 = vmul.f32 %v3802_v34, %v7312_v8  ;;  %v3492_v13 = vmul.f32 %v7465_v28, %v7306_v40 }
 0x2f9   : > { %v3619_v1 = vadd.f32 %v3603_v43, %v3563_v62  ;;  %v3548_v60 = vmul.f32 %v7478_v7, %v7308_v51  ;;  %v3730_v0 = vadd.f32 %v3714_v22, %v3674_v4  ;;  %v3939_v2 = vmul.f32 %v7378_v20, %v3915_v27  ;;  %v7568_v4 = vld [vmem:[#allocation4 + $0x7a] sm:$0xff] }
 0x2fa   : > { %4551 = vrot.lane.b32.xlu1 %v4017_v36, %s5125_s17  ;;  %v3898_v10 = vadd.f32 %v3882_v41, %v3842_v42  ;;  %v3715_v21 = vmul.f32 %v3858_v26, %v7316_v32  ;;  %v3771_v43 = vmul.f32 %v3914_v30, %v7336_v17  ;;  %v3604_v62 = vmul.f32 %v7492_v46, %v7310_v39 }
 0x2fb   : > { %v3675_v16 = vadd.f32 %v3659_v58, %v3619_v1  ;;  %v3564_v36 = vadd.f32 %v3548_v60, %v3492_v13  ;;  %v3786_v11 = vadd.f32 %v3770_v49, %v3730_v0  ;;  %v3828_v28 = vmul.f32 %v7348_v19, %v7551_v12 }
 0x2fc   : > { %v3954_v54 = vadd.f32 %v3938_v15, %v3898_v10  ;;  %v3884_v7 = vmul.f32 %v7368_v45, %v7553_v14  ;;  %v3660_v42 = vmul.f32 %v7530_v53, %v7312_v8  ;;  %v3493_v1 = vmul.f32 %v3802_v34, %v7306_v40  ;;  %v7574_v15 = vld [vmem:[#allocation4 + $0x80] sm:$0xff] }
 0x2fd   : > { %v3731_v41 = vadd.f32 %v3715_v21, %v3675_v16  ;;  %v3620_v22 = vadd.f32 %v3604_v62, %v3564_v36  ;;  %v3843_v46 = vadd.f32 %v3827_v38, %v3786_v11  ;;  %v3549_v49 = vmul.f32 %v3858_v26, %v7308_v51  ;;  %v7582_v16 = vld [vmem:[#allocation4 + $0x81] sm:$0xff] }
 0x2fe   : > { %v3978_v58 = vmul.f32 %v7459_v25, %v3954_v54  ;;  %v3605_v13 = vmul.f32 %v3914_v30, %v7310_v39  ;;  %v3940_v10 = vmul.f32 %v7378_v20, %v7568_v4  ;;  %v3716_v21 = vmul.f32 %v7532_v5, %v7316_v32 }
 0x2ff   : > { %v3787_v60 = vadd.f32 %v3771_v43, %v3731_v41  ;;  %v3676_v0 = vadd.f32 %v3660_v42, %v3620_v22  ;;  %v3899_v54 = vadd.f32 %v3883_v56, %v3843_v46  ;;  %v3565_v11 = vadd.f32 %v3549_v49, %v3493_v1  ;;  %v7598_v46 = vld [vmem:[#allocation4 + $0x82] sm:$0xff] }
 0x300   : > { %v4002_v34 = vadd.f32 %v7471_v33, %v3978_v58  ;;  %v3661_v38 = vmul.f32 %v7551_v12, %v7312_v8  ;;  %v3772_v30 = vmul.f32 %v3915_v27, %v7336_v17  ;;  %v3829_v43 = vmul.f32 %v7348_v19, %v7574_v15 }
 0x301   : > { %v3844_v26 = vadd.f32 %v3828_v28, %v3787_v60  ;;  %v3732_v36 = vadd.f32 %v3716_v21, %v3676_v0  ;;  %v3955_v41 = vadd.f32 %v3939_v2, %v3899_v54  ;;  %v3885_v22 = vmul.f32 %v7368_v45, %v7582_v16  ;;  %v7603_v0 = vld [vmem:[#allocation4 + $0x90] sm:$0xff] }
 0x302   : > { %v4018_v62 = vmax.f32 %v4002_v34, 0.0  ;;  %v3621_v42 = vadd.f32 %v3605_v13, %v3565_v11  ;;  %v3494_v56 = vmul.f32 %v7530_v53, %v7306_v40  ;;  %v3550_v28 = vmul.f32 %v7532_v5, %v7308_v51 }
 0x303   : > { %v3900_v37 = vadd.f32 %v3884_v7, %v3844_v26  ;;  %v3788_v58 = vadd.f32 %v3772_v30, %v3732_v36  ;;  %v3979_v1 = vmul.f32 %v7459_v25, %v3955_v41  ;;  %v3717_v2 = vmul.f32 %v7553_v14, %v7316_v32  ;;  %v7618_v41 = vld [vmem:[#allocation4 + $0x92] sm:$0xff] }
 0x304   : > { %4553 = vrot.lane.b32.xlu0 %v4018_v62, %s5125_s17  ;;  %v3677_v49 = vadd.f32 %v3661_v38, %v3621_v42  ;;  %v3606_v13 = vmul.f32 %v3915_v27, %v7310_v39  ;;  %v3566_v53 = vadd.f32 %v3550_v28, %v3494_v56  ;;  %v3662_v5 = vmul.f32 %v7574_v15, %v7312_v8  ;;  %v3807_v28 = vld [vmem:[#allocation4 + $0x98] sm:$0xff] }
 0x305   : > { %v3956_v7 = vadd.f32 %v3940_v10, %v3900_v37  ;;  %v3845_v60 = vadd.f32 %v3829_v43, %v3788_v58  ;;  %v4003_v21 = vadd.f32 %v7471_v33, %v3979_v1  ;;  %v3773_v54 = vmul.f32 %v7568_v4, %v7336_v17  ;;  %v7613_v37 = vld [vmem:[#allocation4 + $0x91] sm:$0xff] }
 0x306   : > { %v3733_v34 = vadd.f32 %v3717_v2, %v3677_v49  ;;  %v3941_v27 = vmul.f32 %v7378_v20, %v7598_v46  ;;  %v3622_v10 = vadd.f32 %v3606_v13, %v3566_v53  ;;  %v3830_v30 = vmul.f32 %v7348_v19, %v7603_v0  ;;  %v3863_v53 = vld [vmem:[#allocation4 + $0x99] sm:$0xff] }
 0x307   : > { %v3980_v11 = vmul.f32 %v7459_v25, %v3956_v7  ;;  %v3901_v38 = vadd.f32 %v3885_v22, %v3845_v60  ;;  %v4019_v26 = vmax.f32 %v4003_v21, 0.0  ;;  %v3718_v22 = vmul.f32 %v7582_v16, %v7316_v32 }
 0x308   : > { %v3789_v36 = vadd.f32 %v3773_v54, %v3733_v34  ;;  %v3678_v42 = vadd.f32 %v3662_v5, %v3622_v10  ;;  %v3886_v56 = vmul.f32 %v7368_v45, %v7613_v37  ;;  %v3774_v13 = vmul.f32 %v7598_v46, %v7336_v17 }
 0x309   : > { %v4004_v43 = vadd.f32 %v7471_v33, %v3980_v11  ;;  %v3957_v62 = vadd.f32 %v3941_v27, %v3901_v38  ;;  %4555 = vrot.lane.b32.xlu1 %v4019_v26, %s5125_s17  ;;  %v3942_v60 = vmul.f32 %v7378_v20, %v7618_v41  ;;  %v3831_v34 = vmul.f32 %v7348_v19, %v3807_v28  ;;  %v7633_v11 = vld [vmem:[#allocation4 + $0x9a] sm:$0xff] }
 0x30a   : > { %v3846_v58 = vadd.f32 %v3830_v30, %v3789_v36  ;;  %v3734_v2 = vadd.f32 %v3718_v22, %v3678_v42  ;;  %v3887_v10 = vmul.f32 %v7368_v45, %v3863_v53  ;;  %v3943_v30 = vmul.f32 %v7378_v20, %v7633_v11 }
 0x30b   : > { %v4020_v1 = vmax.f32 %v4004_v43, 0.0  ;;  %v3981_v49 = vmul.f32 %v7459_v25, %v3957_v62 }
 0x30c   : > { %v3902_v7 = vadd.f32 %v3886_v56, %v3846_v58  ;;  %v3790_v21 = vadd.f32 %v3774_v13, %v3734_v2  ;;  %v3496_v2 = vmul.f32 %v7574_v15, %v7306_v40  ;;  %v3552_v13 = vmul.f32 %v7582_v16, %v7308_v51 }
 0x30d   : > { %4557 = vrot.lane.b32.xlu0 %v4020_v1, %s5125_s17  ;;  %v4005_v5 = vadd.f32 %v7471_v33, %v3981_v49  ;;  %v3495_v1 = vmul.f32 %v7551_v12, %v7306_v40  ;;  %v3551_v49 = vmul.f32 %v7553_v14, %v7308_v51  ;;  %v3663_v15 = vmul.f32 %v7603_v0, %v7312_v8 }
 0x30e   : > { %v3958_v54 = vadd.f32 %v3942_v60, %v3902_v7  ;;  %v3847_v27 = vadd.f32 %v3831_v34, %v3790_v21  ;;  %v3607_v60 = vmul.f32 %v7568_v4, %v7310_v39 }
 0x30f   : > { %v4021_v38 = vmax.f32 %v4005_v5, 0.0  ;;  %v3567_v7 = vadd.f32 %v3551_v49, %v3495_v1  ;;  %v3568_v5 = vadd.f32 %v3552_v13, %v3496_v2  ;;  %v3554_v13 = vmul.f32 %v3863_v53, %v7308_v51 }
 0x310   : > { %v3982_v26 = vmul.f32 %v7459_v25, %v3958_v54  ;;  %v3903_v36 = vadd.f32 %v3887_v10, %v3847_v27  ;;  %v3608_v54 = vmul.f32 %v7598_v46, %v7310_v39 }
 0x311   : > { %4559 = vrot.lane.b32.xlu1 %v4021_v38, %s5125_s17  ;;  %v3623_v34 = vadd.f32 %v3607_v60, %v3567_v7  ;;  %v3719_v7 = vmul.f32 %v7613_v37, %v7316_v32  ;;  %v3720_v60 = vmul.f32 %v3863_v53, %v7316_v32  ;;  %v3775_v53 = vmul.f32 %v7618_v41, %v7336_v17 }
 0x312   : > { %v4006_v43 = vadd.f32 %v7471_v33, %v3982_v26  ;;  %v3959_v62 = vadd.f32 %v3943_v30, %v3903_v36  ;;  %v3624_v16 = vadd.f32 %v3608_v54, %v3568_v5  ;;  %v3664_v36 = vmul.f32 %v3807_v28, %v7312_v8 }
 0x314   : > { %v4022_v42 = vmax.f32 %v4006_v43, 0.0  ;;  %v3983_v22 = vmul.f32 %v7459_v25, %v3959_v62  ;;  %v3679_v43 = vadd.f32 %v3663_v15, %v3623_v34  ;;  %v3497_v62 = vmul.f32 %v7603_v0, %v7306_v40 }
 0x315   : > { %v3680_v2 = vadd.f32 %v3664_v36, %v3624_v16  ;;  %v3609_v34 = vmul.f32 %v7618_v41, %v7310_v39  ;;  %v3610_v15 = vmul.f32 %v7633_v11, %v7310_v39 }
 0x316   : > { %4561 = vrot.lane.b32.xlu0 %v4022_v42, %s5125_s17  ;;  %v4007_v58 = vadd.f32 %v7471_v33, %v3983_v22  ;;  %v3735_v5 = vadd.f32 %v3719_v7, %v3679_v43 }
 0x318   : > { %v4023_v56 = vmax.f32 %v4007_v58, 0.0  ;;  %v3553_v58 = vmul.f32 %v7613_v37, %v7308_v51  ;;  %v3736_v37 = vadd.f32 %v3720_v60, %v3680_v2  ;;  %v3791_v16 = vadd.f32 %v3775_v53, %v3735_v5 }
 0x31a   : > { %4563 = vrot.lane.b32.xlu1 %v4023_v56, %s5125_s17  ;;  %v3498_v56 = vmul.f32 %v3807_v28, %v7306_v40 }
 0x31c   : > { %v3570_v54 = vadd.f32 %v3554_v13, %v3498_v56  ;;  %v7726_v56 = vld [vmem:[%s5185_s30 + $0x10] sm:$0xff]  }
 0x31d   : > { %8738 = vst [vmem:[#allocation7_spill] sm:$0xff] %v7726_v56 }
 0x334   : > { %v5015_v21 = vpop.f32.mrb[12].mxu1 }
 0x335   : > { %v3328_v12 = vmul.f32 %v5015_v21, %v7302_v29  ;;  %v3227_v38 = vpop.f32.mrb[13].mxu1  ;;  %v3569_v21 = vadd.f32 %v3553_v58, %v3497_v62  ;;  %v7723_v58 = vadd.f32 %v3610_v15, %v3570_v54 }
 0x336   : > { %v3326_v14 = vmul.f32 %v7302_v29, %v3227_v38  ;;  %v5016_v27 = vpop.f32.mrb[14].mxu1 }
 0x337   : > { %v7662_v10 = vadd.f32 %v7304_v9, %v3328_v12  ;;  %v3329_v4 = vmul.f32 %v5016_v27, %v7302_v29  ;;  %v3230_v26 = vpop.f32.mrb[15].mxu1  ;;  %v7706_v12 = vld [vmem:[%s5185_s30] sm:$0xff]   ;;  %v3776_v27 = vmul.f32 %v7633_v11, %v7336_v17 }
 0x338   : > { %v7667_v46 = vadd.f32 %v7304_v9, %v3326_v14  ;;  %v3327_v30 = vmul.f32 %v7302_v29, %v3230_v26  ;;  %v7715_v26 = vld [vmem:[%s5185_s30 + $0x8] sm:$0xff]  }
 0x339   : > { %8734 = vst [vmem:[#allocation23_spill] sm:$0xff] %v7662_v10  ;;  %v8597_v42 = vmax.f32 %v7662_v10, 0.0  ;;  %v7674_v22 = vadd.f32 %v7304_v9, %v3329_v4  ;;  %v3625_v4 = vadd.f32 %v3609_v34, %v3569_v21  ;;  %v7745_v34 = vld [vmem:[%s5185_s30 + $0x18] sm:$0xff]  }
 0x33a   : > { %8735 = vst [vmem:[#allocation24_spill] sm:$0xff] %v7667_v46  ;;  %v8599_v1 = vmax.f32 %v7667_v46, 0.0  ;;  %v7681_v49 = vadd.f32 %v7304_v9, %v3327_v30  ;;  %v3792_v30 = vadd.f32 %v3776_v27, %v3736_v37 }
 0x33b   : > { %8736 = vst [vmem:[#allocation6_spill] sm:$0xff] %v7674_v22  ;;  %3432 = vst.msk [vmem:[#allocation4 + $0xc1] sm:$0xff] %vm268_vm6, %v8597_v42  ;;  %v8596_v0 = vmax.f32 %v7674_v22, 0.0 }
 0x33c   : > { %8737 = vst [vmem:[#allocation25_spill] sm:$0xff] %v7681_v49  ;;  %3430 = vst.msk [vmem:[#allocation4 + $0xa9] sm:$0xff] %vm268_vm6, %v8599_v1  ;;  %v8598_v28 = vmax.f32 %v7681_v49, 0.0 }
 0x33d   : > { %3433 = vst.msk [vmem:[#allocation4 + $0xc9] sm:$0xff] %vm268_vm6, %v8596_v0 }
 0x33e   : > { %3431 = vst.msk [vmem:[#allocation4 + $0xb1] sm:$0xff] %vm268_vm6, %v8598_v28 }
 0x342   : > { %v7719_v43 = vld [vmem:[#allocation4 + $0xc0] sm:$0xff] }
 0x343   : > { %v7721_v62 = vld [vmem:[#allocation4 + $0xc1] sm:$0xff]  ;;  %v7730_v7 = vld [vmem:[#allocation4 + $0xa9] sm:$0xff]  ;;  %v7734_v60 = vmul.f32 %v7348_v19, %v7719_v43  ;;  %v7742_v21 = vmul.f32 %v7719_v43, %v7312_v8  ;;  %v5019_v54 = vpop.f32.mrb[16].mxu1 }
 0x344   : > { %v3808_v13 = vld [vmem:[#allocation4 + $0xa8] sm:$0xff]  ;;  %v7738_v5 = vmul.f32 %v7368_v45, %v7721_v62  ;;  %v3888_v27 = vmul.f32 %v7368_v45, %v7730_v7  ;;  %v7760_v1 = vmul.f32 %v7721_v62, %v7316_v32  ;;  %v3332_v37 = vmul.f32 %v5019_v54, %v7302_v29  ;;  %v3243_v2 = vpop.f32.mrb[17].mxu1 }
 0x345   : > { %v3832_v53 = vmul.f32 %v7348_v19, %v3808_v13  ;;  %v3665_v15 = vmul.f32 %v3808_v13, %v7312_v8  ;;  %v7752_v0 = vld [vmem:[#allocation4 + $0xc2] sm:$0xff]  ;;  %v3920_v11 = vld [vmem:[#allocation4 + $0xaa] sm:$0xff]  ;;  %v3721_v31 = vmul.f32 %v7730_v7, %v7316_v32  ;;  %v3330_v14 = vmul.f32 %v7302_v29, %v3243_v2  ;;  %v5020_v48 = vpop.f32.mrb[18].mxu1  ;;  %v3921_v52 = vld [vmem:[#allocation4 + $0xb2] sm:$0xff] }
 0x346   : > { %v7754_v42 = vld [vmem:[#allocation4 + $0xc8] sm:$0xff]  ;;  %v3809_v47 = vld [vmem:[#allocation4 + $0xb0] sm:$0xff]  ;;  %v7767_v36 = vmul.f32 %v7378_v20, %v7752_v0  ;;  %v7780_v10 = vadd.f32 %v7304_v9, %v3332_v37  ;;  %v3333_v49 = vmul.f32 %v5020_v48, %v7302_v29  ;;  %v3246_v46 = vpop.f32.mrb[19].mxu1  ;;  %v3944_v6 = vmul.f32 %v7378_v20, %v3920_v11 }
 0x347   : > { %v7756_v28 = vld [vmem:[#allocation4 + $0xc9] sm:$0xff]  ;;  %v3865_v41 = vld [vmem:[#allocation4 + $0xb1] sm:$0xff]  ;;  %v7771_v63 = vmul.f32 %v7348_v19, %v7754_v42  ;;  %v3848_v38 = vadd.f32 %v3832_v53, %v3791_v16  ;;  %v3833_v54 = vmul.f32 %v7348_v19, %v3809_v47  ;;  %v7786_v2 = vadd.f32 %v7304_v9, %v3330_v14 }
 0x348   : > { %v7777_v22 = vmul.f32 %v7368_v45, %v7756_v28  ;;  %v3889_v57 = vmul.f32 %v7368_v45, %v3865_v41  ;;  %v3331_v16 = vmul.f32 %v7302_v29, %v3246_v46  ;;  %v8619_v55 = vmax.f32 %v7780_v10, 0.0 }
 0x349   : > { %v3904_v53 = vadd.f32 %v3888_v27, %v3848_v38  ;;  %v3849_v61 = vadd.f32 %v3833_v54, %v3792_v30  ;;  %v7791_v44 = vadd.f32 %v7304_v9, %v3333_v49  ;;  %v3945_v37 = vmul.f32 %v7378_v20, %v3921_v52  ;;  %v7810_v27 = vld [vmem:[#allocation4 + $0xca] sm:$0xff] }
 0x34a   : > { %v3681_v48 = vadd.f32 %v3665_v15, %v3625_v4  ;;  %v8621_v23 = vmax.f32 %v7786_v2, 0.0  ;;  %v7796_v35 = vadd.f32 %v7304_v9, %v3331_v16  ;;  %3436 = vst.msk [vmem:[#allocation4 + $0xf1] sm:$0xff] %vm268_vm6, %v8619_v55  ;;  %v3777_v49 = vmul.f32 %v3920_v11, %v7336_v17 }
 0x34b   : > { %v3960_v56 = vadd.f32 %v3944_v6, %v3904_v53  ;;  %v3905_v14 = vadd.f32 %v3889_v57, %v3849_v61  ;;  %v8618_v46 = vmax.f32 %v7791_v44, 0.0  ;;  %v3666_v30 = vmul.f32 %v3809_v47, %v7312_v8 }
 0x34c   : > { %v3737_v38 = vadd.f32 %v3721_v31, %v3681_v48  ;;  %3434 = vst.msk [vmem:[#allocation4 + $0xd9] sm:$0xff] %vm268_vm6, %v8621_v23  ;;  %v8620_v4 = vmax.f32 %v7796_v35, 0.0  ;;  %v3722_v61 = vmul.f32 %v3865_v41, %v7316_v32  ;;  %v3778_v54 = vmul.f32 %v3921_v52, %v7336_v17 }
 0x34d   : > { %v3984_v6 = vmul.f32 %v7459_v25, %v3960_v56  ;;  %v3961_v57 = vadd.f32 %v3945_v37, %v3905_v14  ;;  %3437 = vst.msk [vmem:[#allocation4 + $0xf9] sm:$0xff] %vm268_vm6, %v8618_v46  ;;  %v3682_v15 = vadd.f32 %v3666_v30, %v7723_v58  ;;  %v3499_v16 = vmul.f32 %v3808_v13, %v7306_v40 }
 0x34e   : > { %v3793_v31 = vadd.f32 %v3777_v49, %v3737_v38  ;;  %3435 = vst.msk [vmem:[#allocation4 + $0xe1] sm:$0xff] %vm268_vm6, %v8620_v4  ;;  %v3555_v37 = vmul.f32 %v7730_v7, %v7308_v51  ;;  %v3611_v48 = vmul.f32 %v3920_v11, %v7310_v39  ;;  %v3947_v38 = vmul.f32 %v7378_v20, %v7810_v27 }
 0x34f   : > { %v4008_v56 = vadd.f32 %v7471_v33, %v3984_v6  ;;  %v3985_v53 = vmul.f32 %v7459_v25, %v3961_v57  ;;  %v3738_v58 = vadd.f32 %v3722_v61, %v3682_v15  ;;  %v3500_v13 = vmul.f32 %v3809_v47, %v7306_v40 }
 0x350   : > { %v3850_v14 = vadd.f32 %v7734_v60, %v3793_v31  ;;  %v3571_v46 = vadd.f32 %v3555_v37, %v3499_v16  ;;  %v3556_v6 = vmul.f32 %v3865_v41, %v7308_v51  ;;  %v3779_v11 = vmul.f32 %v7752_v0, %v7336_v17 }
 0x351   : > { %v4024_v49 = vmax.f32 %v4008_v56, 0.0  ;;  %v4009_v30 = vadd.f32 %v7471_v33, %v3985_v53  ;;  %v3794_v55 = vadd.f32 %v3778_v54, %v3738_v58  ;;  %v3612_v7 = vmul.f32 %v3921_v52, %v7310_v39 }
 0x352   : > { %v3906_v57 = vadd.f32 %v7738_v5, %v3850_v14  ;;  %v3627_v61 = vadd.f32 %v3611_v48, %v3571_v46  ;;  %v3572_v31 = vadd.f32 %v3556_v6, %v3500_v13  ;;  %v3668_v47 = vmul.f32 %v7754_v42, %v7312_v8 }
 0x353   : > { %4565 = vrot.lane.b32.xlu0 %v4024_v49, %s5125_s17  ;;  %v4025_v60 = vmax.f32 %v4009_v30, 0.0  ;;  %v3851_v41 = vadd.f32 %v7771_v63, %v3794_v55  ;;  %v7841_v16 = vld [vmem:[#allocation4 + $0xd8] sm:$0xff]  ;;  %v3724_v54 = vmul.f32 %v7756_v28, %v7316_v32  ;;  %v3780_v52 = vmul.f32 %v7810_v27, %v7336_v17 }
 0x354   : > { %v3962_v15 = vadd.f32 %v7767_v36, %v3906_v57  ;;  %v7843_v5 = vld [vmem:[#allocation4 + $0xd9] sm:$0xff]  ;;  %v3683_v46 = vadd.f32 %v7742_v21, %v3627_v61  ;;  %v3836_v56 = vmul.f32 %v7348_v19, %v7841_v16  ;;  %v3628_v36 = vadd.f32 %v3612_v7, %v3572_v31 }
 0x355   : > { %4567 = vrot.lane.b32.xlu1 %v4025_v60, %s5125_s17  ;;  %v4047_v63 = vmul.f32 %v7719_v43, %v7306_v40  ;;  %v3907_v53 = vadd.f32 %v7777_v22, %v3851_v41  ;;  %v3892_v37 = vmul.f32 %v7368_v45, %v7843_v5  ;;  %v7859_v48 = vld [vmem:[#allocation4 + $0xda] sm:$0xff]  ;;  %v4095_v21 = vmul.f32 %v7721_v62, %v7308_v51  ;;  %v7870_v30 = vld [vmem:[#allocation4 + $0xe2] sm:$0xff] }
 0x356   : > { %v3986_v55 = vmul.f32 %v7459_v25, %v3962_v15  ;;  %v7861_v14 = vld [vmem:[#allocation4 + $0xe0] sm:$0xff]  ;;  %v3739_v13 = vadd.f32 %v7760_v1, %v3683_v46  ;;  %v3948_v43 = vmul.f32 %v7378_v20, %v7859_v48  ;;  %v3684_v49 = vadd.f32 %v3668_v47, %v3628_v36  ;;  %v7881_v47 = vld [vmem:[#allocation4 + $0xf0] sm:$0xff] }
 0x357   : > { %v7863_v58 = vld [vmem:[#allocation4 + $0xe1] sm:$0xff]  ;;  %v4143_v22 = vmul.f32 %v7752_v0, %v7310_v39  ;;  %v3963_v57 = vadd.f32 %v3947_v38, %v3907_v53  ;;  %v3837_v7 = vmul.f32 %v7348_v19, %v7861_v14  ;;  %v4111_v61 = vadd.f32 %v4095_v21, %v4047_v63  ;;  %v7883_v15 = vld [vmem:[#allocation4 + $0xf1] sm:$0xff] }
 0x358   : > { %v4010_v6 = vadd.f32 %v7471_v33, %v3986_v55  ;;  %v3893_v62 = vmul.f32 %v7368_v45, %v7863_v58  ;;  %v3795_v60 = vadd.f32 %v3779_v11, %v3739_v13  ;;  %v3740_v1 = vadd.f32 %v3724_v54, %v3684_v49 }
 0x359   : > { %v4192_v31 = vmul.f32 %v7841_v16, %v7312_v8  ;;  %v3987_v41 = vmul.f32 %v7459_v25, %v3963_v57  ;;  %v3949_v38 = vmul.f32 %v7378_v20, %v7870_v30  ;;  %v4240_v46 = vmul.f32 %v7843_v5, %v7316_v32 }
 0x35a   : > { %v4026_v0 = vmax.f32 %v4010_v6, 0.0  ;;  %v5023_v36 = vpop.f32.mrb[20].mxu1  ;;  %v3852_v11 = vadd.f32 %v3836_v56, %v3795_v60  ;;  %v3796_v54 = vadd.f32 %v3780_v52, %v3740_v1  ;;  %v4159_v63 = vadd.f32 %v4143_v22, %v4111_v61 }
 0x35b   : > { %v4288_v55 = vmul.f32 %v7859_v48, %v7336_v17  ;;  %v3336_v53 = vmul.f32 %v5023_v36, %v7302_v29  ;;  %v3259_v21 = vpop.f32.mrb[21].mxu1  ;;  %v4011_v13 = vadd.f32 %v7471_v33, %v3987_v41  ;;  %v4337_v49 = vmul.f32 %v7881_v47, %v7348_v19 }
 0x35c   : > { %4569 = vrot.lane.b32.xlu0 %v4026_v0, %s5125_s17  ;;  %v4385_v6 = vmul.f32 %v7883_v15, %v7368_v45  ;;  %v3334_v52 = vmul.f32 %v7302_v29, %v3259_v21  ;;  %v5024_v56 = vpop.f32.mrb[22].mxu1  ;;  %v3908_v22 = vadd.f32 %v3892_v37, %v3852_v11  ;;  %v3853_v57 = vadd.f32 %v3837_v7, %v3796_v54 }
 0x35d   : > { %v4208_v60 = vadd.f32 %v4192_v31, %v4159_v63  ;;  %v7901_v1 = vadd.f32 %v7304_v9, %v3336_v53  ;;  %v3337_v61 = vmul.f32 %v5024_v56, %v7302_v29  ;;  %v3262_v0 = vpop.f32.mrb[23].mxu1  ;;  %v4027_v36 = vmax.f32 %v4011_v13, 0.0 }
 0x35e   : > { %v4048_v41 = vmul.f32 %v7754_v42, %v7306_v40  ;;  %v7907_v4 = vadd.f32 %v7304_v9, %v3334_v52  ;;  %v3335_v23 = vmul.f32 %v7302_v29, %v3262_v0  ;;  %v3964_v21 = vadd.f32 %v3948_v43, %v3908_v22 }
 0x35f   : > { %v3909_v37 = vadd.f32 %v3893_v62, %v3853_v57  ;;  %v8623_v7 = vmax.f32 %v7901_v1, 0.0  ;;  %v7913_v31 = vadd.f32 %v7304_v9, %v3337_v61  ;;  %4571 = vrot.lane.b32.xlu1 %v4027_v36, %s5125_s17  ;;  %v4256_v11 = vadd.f32 %v4240_v46, %v4208_v60 }
 0x360   : > { %v4096_v54 = vmul.f32 %v7756_v28, %v7308_v51  ;;  %v8629_v42 = vmax.f32 %v7907_v4, 0.0  ;;  %v7920_v63 = vadd.f32 %v7304_v9, %v3335_v23  ;;  %v3988_v43 = vmul.f32 %v7459_v25, %v3964_v21 }
 0x361   : > { %v3965_v62 = vadd.f32 %v3949_v38, %v3909_v37  ;;  %3440 = vst.msk [vmem:[#allocation4 + $0x121] sm:$0xff] %vm268_vm6, %v8623_v7  ;;  %v8622_v13 = vmax.f32 %v7913_v31, 0.0  ;;  %v8739_v28 = vmax.f32 %v7323_v18, 0.0  ;;  %v4304_v46 = vadd.f32 %v4288_v55, %v4256_v11  ;;  %v7943_v18 = vld [vmem:[#allocation4 + $0xf2] sm:$0xff] }
 0x362   : > { %v4112_v52 = vadd.f32 %v4096_v54, %v4048_v41  ;;  %3438 = vst.msk [vmem:[#allocation4 + $0x109] sm:$0xff] %vm268_vm6, %v8629_v42  ;;  %v8628_v38 = vmax.f32 %v7920_v63, 0.0  ;;  %v8740_v56 = vunpack.c.l.bf16 %v7706_v12  ;;  %v4012_v60 = vadd.f32 %v7471_v33, %v3988_v43  ;;  %v7955_v37 = vld [vmem:[#allocation4 + $0xf8] sm:$0xff] }
 0x363   : > { %v4546_v53 = vpop.permute.xlu0 %4545  ;;  %v3989_v61 = vmul.f32 %v7459_v25, %v3965_v62  ;;  %3441 = vst.msk [vmem:[#allocation4 + $0x129] sm:$0xff] %vm268_vm6, %v8622_v13  ;;  %v8741_v55 = vmax.f32 %v7334_v3, 0.0  ;;  %v4353_v36 = vadd.f32 %v4337_v49, %v4304_v46  ;;  %v4144_v41 = vmul.f32 %v7810_v27, %v7310_v39  ;;  %v7970_v46 = vld [vmem:[#allocation4 + $0xf9] sm:$0xff] }
 0x364   : > { %v4641_v23 = vsel %vm268_vm6, %v8739_v28, %v4546_v53  ;;  %v4193_v21 = vmul.f32 %v7861_v14, %v7312_v8  ;;  %3439 = vst.msk [vmem:[#allocation4 + $0x111] sm:$0xff] %vm268_vm6, %v8628_v38  ;;  %v8742_v3 = vunpack.c.h.bf16 %v7706_v12  ;;  %v4028_v54 = vmax.f32 %v4012_v60, 0.0 }
 0x365   : > { %v4705_v22 = vadd.f32 %v8740_v56, %v4641_v23  ;;  %v4548_v57 = vpop.permute.xlu1 %4547  ;;  %v4013_v49 = vadd.f32 %v7471_v33, %v3989_v61  ;;  %v4680_v27 = vunpack.c.h.bf16 %v7745_v34  ;;  %v4401_v43 = vadd.f32 %v4385_v6, %v4353_v36  ;;  %v7972_v56 = vld [vmem:[#allocation4 + $0xfa] sm:$0xff] }
 0x366   : > { %v4642_v0 = vsel %vm268_vm6, %v8741_v55, %v4548_v57  ;;  %v4433_v62 = vmul.f32 %v7943_v18, %v7378_v20  ;;  %v4160_v28 = vadd.f32 %v4144_v41, %v4112_v52  ;;  %v4241_v23 = vmul.f32 %v7863_v58, %v7316_v32  ;;  %4573 = vrot.lane.b32.xlu0 %v4028_v54, %s5125_s17 }
 0x367   : > { %4737 = vst.msk [vmem:[%s7930_s21] sm:$0xff] %vm425_vm1, %v4705_v22  ;;  %v4706_v11 = vadd.f32 %v8742_v3, %v4642_v0  ;;  %v8743_v12 = vmax.f32 %v7319_v50, 0.0  ;;  %v4029_v22 = vmax.f32 %v4013_v49, 0.0  ;;  %v4289_v52 = vmul.f32 %v7870_v30, %v7336_v17 }
 0x368   : > { %v4550_v53 = vpop.permute.xlu0 %4549  ;;  %v4338_v57 = vmul.f32 %v7955_v37, %v7348_v19  ;;  %v8744_v60 = vunpack.c.l.bf16 %v7715_v26  ;;  %v4449_v55 = vadd.f32 %v4433_v62, %v4401_v43  ;;  %v4209_v0 = vadd.f32 %v4193_v21, %v4160_v28 }
 0x369   : > { %4738 = vst.msk [vmem:[%s7930_s21 + $0x8] sm:$0xff] %vm425_vm1, %v4706_v11  ;;  %v4643_v6 = vsel %vm268_vm6, %v8743_v12, %v4550_v53  ;;  %v4049_v36 = vmul.f32 %v7841_v16, %v7306_v40  ;;  %4575 = vrot.lane.b32.xlu1 %v4029_v22, %s5125_s17  ;;  %v4386_v50 = vmul.f32 %v7970_v46, %v7368_v45  ;;  %v8002_v53 = vld [vmem:[#allocation4 + $0x108] sm:$0xff]  ;;  %v8745_v62 = vmax.f32 %v7328_v24, 0.0 }
 0x36a   : > { %v4707_v61 = vadd.f32 %v8744_v60, %v4643_v6  ;;  %v4434_v41 = vmul.f32 %v7972_v56, %v7378_v20  ;;  %v4097_v3 = vmul.f32 %v7843_v5, %v7308_v51  ;;  %v4145_v11 = vmul.f32 %v7859_v48, %v7310_v39  ;;  %v8004_v43 = vld [vmem:[#allocation4 + $0x109] sm:$0xff] }
 0x36b   : > { %v4465_v54 = vmul.f32 %v4449_v55, %v7459_v25  ;;  %v4257_v16 = vadd.f32 %v4241_v23, %v4209_v0  ;;  %v4194_v49 = vmul.f32 %v7881_v47, %v7312_v8  ;;  %v4050_v5 = vmul.f32 %v7861_v14, %v7306_v40  ;;  %v8018_v55 = vld [vmem:[#allocation4 + $0x10a] sm:$0xff] }
 0x36c   : > { %4739 = vst.msk [vmem:[%s7930_s21 + $0x10] sm:$0xff] %vm425_vm1, %v4707_v61  ;;  %v4552_v21 = vpop.permute.xlu1 %4551  ;;  %v4113_v28 = vadd.f32 %v4097_v3, %v4049_v36  ;;  %v4242_v12 = vmul.f32 %v7883_v15, %v7316_v32  ;;  %v4290_v23 = vmul.f32 %v7943_v18, %v7336_v17  ;;  %v8746_v6 = vunpack.c.h.bf16 %v7715_v26  ;;  %v8028_v26 = vld [vmem:[#allocation4 + $0x110] sm:$0xff] }
 0x36d   : > { %v4644_v48 = vsel %vm268_vm6, %v8745_v62, %v4552_v21  ;;  %v4481_v60 = vadd.f32 %v4465_v54, %v7471_v33  ;;  %v4305_v61 = vadd.f32 %v4289_v52, %v4257_v16  ;;  %v4098_v24 = vmul.f32 %v7863_v58, %v7308_v51  ;;  %v8062_v7 = vld [vmem:[#allocation4 + $0x111] sm:$0xff] }
 0x36e   : > { %v4708_v22 = vadd.f32 %v8746_v6, %v4644_v48  ;;  %v4161_v14 = vadd.f32 %v4145_v11, %v4113_v28  ;;  %v4339_v0 = vmul.f32 %v8002_v53, %v7348_v19  ;;  %v4387_v36 = vmul.f32 %v8004_v43, %v7368_v45  ;;  %v5027_v11 = vpop.f32.mrb[24].mxu1 }
 0x36f   : > { %v4435_v3 = vmul.f32 %v8018_v55, %v7378_v20  ;;  %v4497_v52 = vmax.f32 %v4481_v60, 0.0  ;;  %v4354_v21 = vadd.f32 %v4338_v57, %v4305_v61  ;;  %v4114_v54 = vadd.f32 %v4098_v24, %v4050_v5 }
 0x370   : > { %4740 = vst.msk [vmem:[%s7930_s21 + $0x18] sm:$0xff] %vm425_vm1, %v4708_v22  ;;  %v4146_v58 = vmul.f32 %v7870_v30, %v7310_v39  ;;  %v4210_v16 = vadd.f32 %v4194_v49, %v4161_v14  ;;  %v4195_v62 = vmul.f32 %v7955_v37, %v7312_v8  ;;  %v4243_v48 = vmul.f32 %v7970_v46, %v7316_v32  ;;  %v3275_v22 = vpop.f32.mrb[25].mxu1 }
 0x371   : > { %v4291_v28 = vmul.f32 %v7972_v56, %v7336_v17  ;;  %v3340_v6 = vmul.f32 %v5027_v11, %v7302_v29  ;;  %4577 = vrot.lane.b32.xlu0 %v4497_v52, %s5125_s17  ;;  %v4402_v57 = vadd.f32 %v4386_v50, %v4354_v21  ;;  %v4340_v30 = vmul.f32 %v8028_v26, %v7348_v19  ;;  %v5028_v60 = vpop.f32.mrb[26].mxu1 }
 0x372   : > { %v4162_v5 = vadd.f32 %v4146_v58, %v4114_v54  ;;  %v3338_v49 = vmul.f32 %v7302_v29, %v3275_v22  ;;  %v4258_v61 = vadd.f32 %v4242_v12, %v4210_v16  ;;  %v4051_v24 = vmul.f32 %v7881_v47, %v7306_v40  ;;  %v3278_v50 = vpop.f32.mrb[27].mxu1 }
 0x373   : > { %v4099_v14 = vmul.f32 %v7883_v15, %v7308_v51  ;;  %v8050_v11 = vadd.f32 %v7304_v9, %v3340_v6  ;;  %v3341_v52 = vmul.f32 %v5028_v60, %v7302_v29  ;;  %v4450_v21 = vadd.f32 %v4434_v41, %v4402_v57 }
 0x374   : > { %v4211_v54 = vadd.f32 %v4195_v62, %v4162_v5  ;;  %v8054_v58 = vadd.f32 %v7304_v9, %v3338_v49  ;;  %v3339_v22 = vmul.f32 %v7302_v29, %v3278_v50  ;;  %v4306_v12 = vadd.f32 %v4290_v23, %v4258_v61 }
 0x375   : > { %v4115_v16 = vadd.f32 %v4099_v14, %v4051_v24  ;;  %v8625_v47 = vmax.f32 %v8050_v11, 0.0  ;;  %v8059_v13 = vadd.f32 %v7304_v9, %v3341_v52  ;;  %v4466_v15 = vmul.f32 %v4450_v21, %v7459_v25  ;;  %v8078_v14 = vld [vmem:[#allocation4 + $0x112] sm:$0xff] }
 0x376   : > { %v4259_v6 = vadd.f32 %v4243_v48, %v4211_v54  ;;  %v8627_v41 = vmax.f32 %v8054_v58, 0.0  ;;  %v8066_v62 = vadd.f32 %v7304_v9, %v3339_v22  ;;  %v4554_v57 = vpop.permute.xlu0 %4553  ;;  %v4355_v5 = vadd.f32 %v4339_v0, %v4306_v12  ;;  %v8748_v0 = vld [vmem:[#allocation7_spill] sm:$0xff] }
 0x377   : > { %v4147_v23 = vmul.f32 %v7943_v18, %v7310_v39  ;;  %3444 = vst.msk [vmem:[#allocation4 + $0x151] sm:$0xff] %vm268_vm6, %v8625_v47  ;;  %v8624_v49 = vmax.f32 %v8059_v13, 0.0  ;;  %v8747_v48 = vmax.f32 %v7365_v59, 0.0  ;;  %v4482_v61 = vadd.f32 %v4466_v15, %v7471_v33  ;;  %v8093_v15 = vld [vmem:[#allocation4 + $0x120] sm:$0xff] }
 0x378   : > { %v4307_v24 = vadd.f32 %v4291_v28, %v4259_v6  ;;  %3442 = vst.msk [vmem:[#allocation4 + $0x139] sm:$0xff] %vm268_vm6, %v8627_v41  ;;  %v8626_v18 = vmax.f32 %v8066_v62, 0.0  ;;  %v8749_v52 = vunpack.c.l.bf16 %v8748_v0  ;;  %v4403_v21 = vadd.f32 %v4387_v36, %v4355_v5  ;;  %v8101_v6 = vld [vmem:[%s5185_s30 + $0x20] sm:$0xff]  }
 0x379   : > { %v4645_v60 = vsel %vm268_vm6, %v8747_v48, %v4554_v57  ;;  %v4388_v59 = vmul.f32 %v8062_v7, %v7368_v45  ;;  %3445 = vst.msk [vmem:[#allocation4 + $0x159] sm:$0xff] %vm268_vm6, %v8624_v49  ;;  %v4498_v28 = vmax.f32 %v4482_v61, 0.0  ;;  %v4163_v22 = vadd.f32 %v4147_v23, %v4115_v16 }
 0x37a   : > { %v4709_v50 = vadd.f32 %v8749_v52, %v4645_v60  ;;  %v4356_v54 = vadd.f32 %v4340_v30, %v4307_v24  ;;  %v4196_v12 = vmul.f32 %v8002_v53, %v7312_v8  ;;  %3443 = vst.msk [vmem:[#allocation4 + $0x141] sm:$0xff] %vm268_vm6, %v8626_v18  ;;  %v4451_v36 = vadd.f32 %v4435_v3, %v4403_v21  ;;  %v8119_v21 = vld [vmem:[#allocation4 + $0x122] sm:$0xff] }
 0x37b   : > { %v4681_v57 = vunpack.c.l.bf16 %v8101_v6  ;;  %v4436_v30 = vmul.f32 %v8078_v14, %v7378_v20  ;;  %v4682_v16 = vunpack.c.h.bf16 %v8101_v6  ;;  %4579 = vrot.lane.b32.xlu1 %v4498_v28, %s5125_s17  ;;  %v4244_v48 = vmul.f32 %v8004_v43, %v7316_v32  ;;  %v4556_v3 = vpop.permute.xlu1 %4555  ;;  %v8750_v28 = vld [vmem:[#allocation20_spill] sm:$0xff] }
 0x37c   : > { %4741 = vst.msk [vmem:[%s7930_s21 + $0x20] sm:$0xff] %vm425_vm1, %v4709_v50  ;;  %v4404_v5 = vadd.f32 %v4388_v59, %v4356_v54  ;;  %v4212_v23 = vadd.f32 %v4196_v12, %v4163_v22  ;;  %v4052_v60 = vmul.f32 %v7955_v37, %v7306_v40  ;;  %v4467_v61 = vmul.f32 %v4451_v36, %v7459_v25  ;;  %v8117_v50 = vld [vmem:[#allocation4 + $0x121] sm:$0xff] }
 0x37d   : > { %v4292_v24 = vmul.f32 %v8018_v55, %v7336_v17  ;;  %v4341_v52 = vmul.f32 %v8093_v15, %v7348_v19  ;;  %v4100_v59 = vmul.f32 %v7970_v46, %v7308_v51  ;;  %v8751_v54 = vmax.f32 %v8750_v28, 0.0 }
 0x37e   : > { %v4452_v22 = vadd.f32 %v4436_v30, %v4404_v5  ;;  %v4260_v12 = vadd.f32 %v4244_v48, %v4212_v23  ;;  %v4148_v36 = vmul.f32 %v7972_v56, %v7310_v39  ;;  %v8752_v49 = vunpack.c.h.bf16 %v8748_v0  ;;  %v8753_v56 = vld [vmem:[#allocation16_spill] sm:$0xff] }
 0x37f   : > { %v4646_v37 = vsel %vm268_vm6, %v8751_v54, %v4556_v3  ;;  %v4483_v18 = vadd.f32 %v4467_v61, %v7471_v33  ;;  %v4116_v41 = vadd.f32 %v4100_v59, %v4052_v60  ;;  %v4197_v38 = vmul.f32 %v8028_v26, %v7312_v8  ;;  %v4558_v42 = vpop.permute.xlu0 %4557  ;;  %v8145_v3 = vld [vmem:[#allocation4 + $0x128] sm:$0xff] }
 0x380   : > { %v4710_v47 = vadd.f32 %v8752_v49, %v4646_v37  ;;  %v4468_v46 = vmul.f32 %v4452_v22, %v7459_v25  ;;  %v4308_v28 = vadd.f32 %v4292_v24, %v4260_v12  ;;  %v4389_v30 = vmul.f32 %v8117_v50, %v7368_v45  ;;  %v8147_v61 = vld [vmem:[#allocation4 + $0x129] sm:$0xff] }
 0x381   : > { %v4437_v5 = vmul.f32 %v8119_v21, %v7378_v20  ;;  %v8754_v49 = vmax.f32 %v8753_v56, 0.0  ;;  %v4499_v23 = vmax.f32 %v4483_v18, 0.0  ;;  %v4164_v48 = vadd.f32 %v4148_v36, %v4116_v41  ;;  %v8152_v37 = vld [vmem:[#allocation4 + $0x12a] sm:$0xff] }
 0x382   : > { %4742 = vst.msk [vmem:[%s7930_s21 + $0x28] sm:$0xff] %vm425_vm1, %v4710_v47  ;;  %v4245_v60 = vmul.f32 %v8062_v7, %v7316_v32  ;;  %v8755_v24 = vunpack.c.l.bf16 %v7745_v34  ;;  %v4484_v54 = vadd.f32 %v4468_v46, %v7471_v33  ;;  %v4357_v47 = vadd.f32 %v4341_v52, %v4308_v28  ;;  %v8756_v28 = vld [vmem:[#allocation12_spill] sm:$0xff] }
 0x383   : > { %v4647_v0 = vsel %vm268_vm6, %v8754_v49, %v4558_v42  ;;  %v4053_v42 = vmul.f32 %v8002_v53, %v7306_v40  ;;  %4581 = vrot.lane.b32.xlu0 %v4499_v23, %s5125_s17  ;;  %v4213_v41 = vadd.f32 %v4197_v38, %v4164_v48  ;;  %v4293_v18 = vmul.f32 %v8078_v14, %v7336_v17  ;;  %v4560_v52 = vpop.permute.xlu1 %4559  ;;  %v5031_v23 = vpop.f32.mrb[28].mxu1 }
 0x384   : > { %v4711_v59 = vadd.f32 %v8755_v24, %v4647_v0  ;;  %v4101_v22 = vmul.f32 %v8004_v43, %v7308_v51  ;;  %v4149_v12 = vmul.f32 %v8018_v55, %v7310_v39  ;;  %v4500_v36 = vmax.f32 %v4484_v54, 0.0  ;;  %v3291_v54 = vpop.f32.mrb[29].mxu1 }
 0x385   : > { %v4405_v46 = vadd.f32 %v4389_v30, %v4357_v47  ;;  %v4342_v53 = vmul.f32 %v8145_v3, %v7348_v19  ;;  %v4390_v38 = vmul.f32 %v8147_v61, %v7368_v45  ;;  %v8757_v56 = vmax.f32 %v8756_v28, 0.0 }
 0x386   : > { %4743 = vst.msk [vmem:[%s7930_s21 + $0x30] sm:$0xff] %vm425_vm1, %v4711_v59  ;;  %v4261_v0 = vadd.f32 %v4245_v60, %v4213_v41  ;;  %v4438_v43 = vmul.f32 %v8152_v37, %v7378_v20  ;;  %v4117_v55 = vadd.f32 %v4101_v22, %v4053_v42  ;;  %4583 = vrot.lane.b32.xlu1 %v4500_v36, %s5125_s17 }
 0x387   : > { %v4648_v49 = vsel %vm268_vm6, %v8757_v56, %v4560_v52  ;;  %v4453_v48 = vadd.f32 %v4437_v5, %v4405_v46  ;;  %v4198_v24 = vmul.f32 %v8093_v15, %v7312_v8  ;;  %v4246_v59 = vmul.f32 %v8117_v50, %v7316_v32 }
 0x388   : > { %v4712_v30 = vadd.f32 %v4680_v27, %v4648_v49  ;;  %v3344_v60 = vmul.f32 %v5031_v23, %v7302_v29  ;;  %v4309_v47 = vadd.f32 %v4293_v18, %v4261_v0  ;;  %v4165_v41 = vadd.f32 %v4149_v12, %v4117_v55  ;;  %v5032_v27 = vpop.f32.mrb[30].mxu1  ;;  %v4562_v46 = vpop.permute.xlu0 %4561  ;;  %v8758_v55 = vld [vmem:[#allocation18_spill] sm:$0xff] }
 0x389   : > { %v4294_v42 = vmul.f32 %v8119_v21, %v7336_v17  ;;  %v3342_v34 = vmul.f32 %v7302_v29, %v3291_v54  ;;  %v4469_v5 = vmul.f32 %v4453_v48, %v7459_v25  ;;  %v4054_v22 = vmul.f32 %v8028_v26, %v7306_v40  ;;  %v3294_v12 = vpop.f32.mrb[31].mxu1 }
 0x38a   : > { %4744 = vst.msk [vmem:[%s7930_s21 + $0x38] sm:$0xff] %vm425_vm1, %v4712_v30  ;;  %v4102_v52 = vmul.f32 %v8062_v7, %v7308_v51  ;;  %v8193_v36 = vadd.f32 %v7304_v9, %v3344_v60  ;;  %v3345_v18 = vmul.f32 %v5032_v27, %v7302_v29  ;;  %v4358_v28 = vadd.f32 %v4342_v53, %v4309_v47  ;;  %v8210_v60 = vld [vmem:[#allocation4 + $0x138] sm:$0xff] }
 0x38b   : > { %v4214_v56 = vadd.f32 %v4198_v24, %v4165_v41  ;;  %v8197_v49 = vadd.f32 %v7304_v9, %v3342_v34  ;;  %v3343_v0 = vmul.f32 %v7302_v29, %v3294_v12  ;;  %v8759_v26 = vmax.f32 %v8758_v55, 0.0 }
 0x38c   : > { %v4485_v7 = vadd.f32 %v4469_v5, %v7471_v33  ;;  %v3416_v30 = vmax.f32 %v8193_v36, 0.0  ;;  %v8206_v48 = vadd.f32 %v7304_v9, %v3345_v18  ;;  %v4406_v24 = vadd.f32 %v4390_v38, %v4358_v28 }
 0x38d   : > { %v4649_v23 = vsel %vm268_vm6, %v8759_v26, %v4562_v46  ;;  %v3414_v54 = vmax.f32 %v8197_v49, 0.0  ;;  %v8214_v29 = vadd.f32 %v7304_v9, %v3343_v0  ;;  %v4262_v41 = vadd.f32 %v4246_v59, %v4214_v56  ;;  %v4564_v59 = vpop.permute.xlu1 %4563  ;;  %v4423_v46 = vld [vmem:[#allocation4 + $0x13a] sm:$0xff] }
 0x38e   : > { %v4713_v53 = vadd.f32 %v4681_v57, %v4649_v23  ;;  %v4501_v47 = vmax.f32 %v4485_v7, 0.0  ;;  %3448 = vst.msk [vmem:[#allocation4 + $0x181] sm:$0xff] %vm268_vm6, %v3416_v30  ;;  %v3417_v34 = vmax.f32 %v8206_v48, 0.0  ;;  %v4454_v27 = vadd.f32 %v4438_v43, %v4406_v24  ;;  %v8222_v57 = vld [vmem:[#allocation4 + $0x139] sm:$0xff]  ;;  %v8254_v24 = vld [vmem:[#allocation4 + $0x141] sm:$0xff] }
 0x38f   : > { %v4118_v38 = vadd.f32 %v4102_v52, %v4054_v22  ;;  %v4150_v5 = vmul.f32 %v8078_v14, %v7310_v39  ;;  %3446 = vst.msk [vmem:[#allocation4 + $0x169] sm:$0xff] %vm268_vm6, %v3414_v54  ;;  %v3415_v9 = vmax.f32 %v8214_v29, 0.0  ;;  %v4310_v18 = vadd.f32 %v4294_v42, %v4262_v41  ;;  %v8760_v43 = vld [vmem:[#allocation22_spill] sm:$0xff] }
 0x390   : > { %4745 = vst.msk [vmem:[%s7930_s21 + $0x40] sm:$0xff] %vm425_vm1, %v4713_v53  ;;  %4585 = vrot.lane.b32.xlu0 %v4501_v47, %s5125_s17  ;;  %v4343_v12 = vmul.f32 %v8210_v60, %v7348_v19  ;;  %v8761_v22 = vmax.f32 %v8760_v43, 0.0  ;;  %v4470_v52 = vmul.f32 %v4454_v27, %v7459_v25  ;;  %v4199_v56 = vmul.f32 %v8145_v3, %v7312_v8  ;;  %v8252_v53 = vld [vmem:[#allocation4 + $0x140] sm:$0xff] }
 0x391   : > { %3449 = vst.msk [vmem:[#allocation4 + $0x189] sm:$0xff] %vm268_vm6, %v3417_v34  ;;  %v4166_v28 = vadd.f32 %v4150_v5, %v4118_v38  ;;  %3447 = vst.msk [vmem:[#allocation4 + $0x171] sm:$0xff] %vm268_vm6, %v3415_v9  ;;  %v4391_v55 = vmul.f32 %v8222_v57, %v7368_v45  ;;  %v4247_v26 = vmul.f32 %v8147_v61, %v7316_v32 }
 0x392   : > { %v4650_v14 = vsel %vm268_vm6, %v8761_v22, %v4564_v59  ;;  %v4359_v0 = vadd.f32 %v4343_v12, %v4310_v18  ;;  %v4486_v23 = vadd.f32 %v4470_v52, %v7471_v33  ;;  %v4055_v47 = vmul.f32 %v8093_v15, %v7306_v40  ;;  %v8267_v18 = vld [vmem:[#allocation4 + $0x142] sm:$0xff] }
 0x393   : > { %v4714_v42 = vadd.f32 %v4682_v16, %v4650_v14  ;;  %v4215_v7 = vadd.f32 %v4199_v56, %v4166_v28  ;;  %v4103_v6 = vmul.f32 %v8117_v50, %v7308_v51  ;;  %v4439_v41 = vmul.f32 %v4423_v46, %v7378_v20  ;;  %v8278_v28 = vld [vmem:[#allocation4 + $0x151] sm:$0xff] }
 0x394   : > { %v4407_v16 = vadd.f32 %v4391_v55, %v4359_v0  ;;  %v4295_v27 = vmul.f32 %v8152_v37, %v7336_v17  ;;  %v4151_v38 = vmul.f32 %v8119_v21, %v7310_v39  ;;  %v4502_v5 = vmax.f32 %v4486_v23, 0.0  ;;  %v8276_v21 = vld [vmem:[#allocation4 + $0x150] sm:$0xff] }
 0x395   : > { %4746 = vst.msk [vmem:[%s7930_s21 + $0x48] sm:$0xff] %vm425_vm1, %v4714_v42  ;;  %v4263_v59 = vadd.f32 %v4247_v26, %v4215_v7  ;;  %v4119_v12 = vadd.f32 %v4103_v6, %v4055_v47  ;;  %v4200_v15 = vmul.f32 %v8210_v60, %v7312_v8  ;;  %v4344_v43 = vmul.f32 %v8252_v53, %v7348_v19  ;;  %v8291_v6 = vld [vmem:[#allocation4 + $0x152] sm:$0xff] }
 0x396   : > { %v4455_v50 = vadd.f32 %v4439_v41, %v4407_v16  ;;  %v4392_v22 = vmul.f32 %v8254_v24, %v7368_v45  ;;  %4587 = vrot.lane.b32.xlu1 %v4502_v5, %s5125_s17  ;;  %v4056_v56 = vmul.f32 %v8145_v3, %v7306_v40  ;;  %v4104_v42 = vmul.f32 %v8147_v61, %v7308_v51 }
 0x397   : > { %v4311_v14 = vadd.f32 %v4295_v27, %v4263_v59  ;;  %v4167_v52 = vadd.f32 %v4151_v38, %v4119_v12  ;;  %v4440_v55 = vmul.f32 %v8267_v18, %v7378_v20  ;;  %v4248_v26 = vmul.f32 %v8222_v57, %v7316_v32  ;;  %v8301_v12 = vld [vmem:[#allocation4 + $0x158] sm:$0xff] }
 0x398   : > { %v4471_v0 = vmul.f32 %v4455_v50, %v7459_v25  ;;  %v4152_v23 = vmul.f32 %v8152_v37, %v7310_v39  ;;  %v4120_v16 = vadd.f32 %v4104_v42, %v4056_v56  ;;  %v4201_v3 = vmul.f32 %v8252_v53, %v7312_v8 }
 0x399   : > { %v4360_v7 = vadd.f32 %v4344_v43, %v4311_v14  ;;  %v4216_v47 = vadd.f32 %v4200_v15, %v4167_v52  ;;  %v4296_v41 = vmul.f32 %v4423_v46, %v7336_v17  ;;  %v4345_v27 = vmul.f32 %v8276_v21, %v7348_v19  ;;  %v8303_v15 = vld [vmem:[#allocation4 + $0x159] sm:$0xff] }
 0x39a   : > { %v4487_v61 = vadd.f32 %v4471_v0, %v7471_v33  ;;  %v4393_v38 = vmul.f32 %v8278_v28, %v7368_v45  ;;  %v4168_v59 = vadd.f32 %v4152_v23, %v4120_v16  ;;  %v4057_v50 = vmul.f32 %v8210_v60, %v7306_v40  ;;  %v8309_v52 = vld [vmem:[#allocation4 + $0x15a] sm:$0xff] }
 0x39b   : > { %v4408_v5 = vadd.f32 %v4392_v22, %v4360_v7  ;;  %v4264_v37 = vadd.f32 %v4248_v26, %v4216_v47  ;;  %v4441_v14 = vmul.f32 %v8291_v6, %v7378_v20  ;;  %v4105_v56 = vmul.f32 %v8222_v57, %v7308_v51 }
 0x39c   : > { %v4503_v43 = vmax.f32 %v4487_v61, 0.0  ;;  %v4153_v22 = vmul.f32 %v4423_v46, %v7310_v39  ;;  %v4217_v26 = vadd.f32 %v4201_v3, %v4168_v59  ;;  %v4249_v23 = vmul.f32 %v8254_v24, %v7316_v32 }
 0x39d   : > { %v4456_v42 = vadd.f32 %v4440_v55, %v4408_v5  ;;  %v4312_v0 = vadd.f32 %v4296_v41, %v4264_v37  ;;  %v4297_v60 = vmul.f32 %v8267_v18, %v7336_v17  ;;  %v4346_v7 = vmul.f32 %v8301_v12, %v7348_v19  ;;  %v8328_v5 = vld [vmem:[#allocation4 + $0x168] sm:$0xff] }
 0x39e   : > { %4589 = vrot.lane.b32.xlu0 %v4503_v43, %s5125_s17  ;;  %v4394_v47 = vmul.f32 %v8303_v15, %v7368_v45  ;;  %v4121_v57 = vadd.f32 %v4105_v56, %v4057_v50  ;;  %v4265_v16 = vadd.f32 %v4249_v23, %v4217_v26  ;;  %v4442_v3 = vmul.f32 %v8309_v52, %v7378_v20 }
 0x39f   : > { %v4472_v46 = vmul.f32 %v4456_v42, %v7459_v25  ;;  %v4361_v55 = vadd.f32 %v4345_v27, %v4312_v0  ;;  %v4202_v41 = vmul.f32 %v8276_v21, %v7312_v8  ;;  %v4058_v37 = vmul.f32 %v8252_v53, %v7306_v40  ;;  %v8337_v42 = vld [vmem:[#allocation4 + $0x169] sm:$0xff] }
 0x3a0   : > { %v4169_v61 = vadd.f32 %v4153_v22, %v4121_v57  ;;  %v4106_v59 = vmul.f32 %v8254_v24, %v7308_v51  ;;  %v4313_v27 = vadd.f32 %v4297_v60, %v4265_v16  ;;  %v4250_v56 = vmul.f32 %v8278_v28, %v7316_v32 }
 0x3a1   : > { %v4488_v50 = vadd.f32 %v4472_v46, %v7471_v33  ;;  %v4409_v43 = vadd.f32 %v4393_v38, %v4361_v55  ;;  %v4298_v0 = vmul.f32 %v8291_v6, %v7336_v17  ;;  %v4154_v53 = vmul.f32 %v8267_v18, %v7310_v39  ;;  %v4427_v18 = vld [vmem:[#allocation4 + $0x16a] sm:$0xff] }
 0x3a2   : > { %v4218_v22 = vadd.f32 %v4202_v41, %v4169_v61  ;;  %v4122_v26 = vadd.f32 %v4106_v59, %v4058_v37  ;;  %v4362_v24 = vadd.f32 %v4346_v7, %v4313_v27  ;;  %v4347_v38 = vmul.f32 %v8328_v5, %v7348_v19 }
 0x3a3   : > { %v4504_v23 = vmax.f32 %v4488_v50, 0.0  ;;  %v4457_v57 = vadd.f32 %v4441_v14, %v4409_v43  ;;  %v4395_v46 = vmul.f32 %v8337_v42, %v7368_v45  ;;  %v4203_v16 = vmul.f32 %v8301_v12, %v7312_v8  ;;  %v4332_v43 = vld [vmem:[#allocation4 + $0x170] sm:$0xff] }
 0x3a4   : > { %v4266_v60 = vadd.f32 %v4250_v56, %v4218_v22  ;;  %v4170_v55 = vadd.f32 %v4154_v53, %v4122_v26  ;;  %v4410_v41 = vadd.f32 %v4394_v47, %v4362_v24  ;;  %v4059_v14 = vmul.f32 %v8276_v21, %v7306_v40  ;;  %v4380_v47 = vld [vmem:[#allocation4 + $0x171] sm:$0xff] }
 0x3a5   : > { %4591 = vrot.lane.b32.xlu1 %v4504_v23, %s5125_s17  ;;  %v4473_v61 = vmul.f32 %v4457_v57, %v7459_v25  ;;  %v4107_v7 = vmul.f32 %v8278_v28, %v7308_v51  ;;  %v4251_v50 = vmul.f32 %v8303_v15, %v7316_v32  ;;  %v4155_v27 = vmul.f32 %v8291_v6, %v7310_v39 }
 0x3a6   : > { %v4314_v37 = vadd.f32 %v4298_v0, %v4266_v60  ;;  %v4219_v59 = vadd.f32 %v4203_v16, %v4170_v55  ;;  %v4458_v22 = vadd.f32 %v4442_v3, %v4410_v41  ;;  %v4204_v21 = vmul.f32 %v8328_v5, %v7312_v8  ;;  %v4428_v41 = vld [vmem:[#allocation4 + $0x172] sm:$0xff] }
 0x3a7   : > { %v4489_v56 = vadd.f32 %v4473_v61, %v7471_v33  ;;  %v4123_v26 = vadd.f32 %v4107_v7, %v4059_v14  ;;  %v4443_v28 = vmul.f32 %v4427_v18, %v7378_v20  ;;  %v4299_v23 = vmul.f32 %v8309_v52, %v7336_v17 }
 0x3a8   : > { %v4363_v53 = vadd.f32 %v4347_v38, %v4314_v37  ;;  %v4267_v0 = vadd.f32 %v4251_v50, %v4219_v59  ;;  %v4474_v24 = vmul.f32 %v4458_v22, %v7459_v25  ;;  %v4348_v6 = vmul.f32 %v4332_v43, %v7348_v19  ;;  %v4333_v37 = vld [vmem:[#allocation4 + $0x180] sm:$0xff] }
 0x3a9   : > { %v4505_v57 = vmax.f32 %v4489_v56, 0.0  ;;  %v4171_v60 = vadd.f32 %v4155_v27, %v4123_v26  ;;  %v4396_v16 = vmul.f32 %v4380_v47, %v7368_v45  ;;  %v4060_v61 = vmul.f32 %v8301_v12, %v7306_v40  ;;  %v4381_v56 = vld [vmem:[#allocation4 + $0x181] sm:$0xff] }
 0x3aa   : > { %v4411_v55 = vadd.f32 %v4395_v46, %v4363_v53  ;;  %v4315_v3 = vadd.f32 %v4299_v23, %v4267_v0  ;;  %v4490_v38 = vadd.f32 %v4474_v24, %v7471_v33  ;;  %v4252_v7 = vmul.f32 %v8337_v42, %v7316_v32 }
 0x3ab   : > { %4593 = vrot.lane.b32.xlu0 %v4505_v57, %s5125_s17  ;;  %v4220_v14 = vadd.f32 %v4204_v21, %v4171_v60  ;;  %v4108_v59 = vmul.f32 %v8303_v15, %v7308_v51  ;;  %v4300_v27 = vmul.f32 %v4427_v18, %v7336_v17  ;;  %v4156_v12 = vmul.f32 %v8309_v52, %v7310_v39 }
 0x3ac   : > { %v4459_v46 = vadd.f32 %v4443_v28, %v4411_v55  ;;  %v4364_v50 = vadd.f32 %v4348_v6, %v4315_v3  ;;  %v4506_v22 = vmax.f32 %v4490_v38, 0.0  ;;  %v4205_v21 = vmul.f32 %v4332_v43, %v7312_v8  ;;  %v4429_v28 = vld [vmem:[#allocation4 + $0x182] sm:$0xff] }
 0x3ad   : > { %v4268_v26 = vadd.f32 %v4252_v7, %v4220_v14  ;;  %v4124_v53 = vadd.f32 %v4108_v59, %v4060_v61  ;;  %v4444_v57 = vmul.f32 %v4428_v41, %v7378_v20  ;;  %v4349_v15 = vmul.f32 %v4333_v37, %v7348_v19 }
 0x3ae   : > { %v4475_v0 = vmul.f32 %v4459_v46, %v7459_v25  ;;  %v4412_v23 = vadd.f32 %v4396_v16, %v4364_v50  ;;  %4595 = vrot.lane.b32.xlu1 %v4506_v22, %s5125_s17  ;;  %v4397_v6 = vmul.f32 %v4381_v56, %v7368_v45  ;;  %v4061_v52 = vmul.f32 %v8328_v5, %v7306_v40  ;;  %v4334_v46 = vld [vmem:[#allocation4 + $0x188] sm:$0xff] }
 0x3af   : > { %v4316_v24 = vadd.f32 %v4300_v27, %v4268_v26  ;;  %v4172_v60 = vadd.f32 %v4156_v12, %v4124_v53  ;;  %v4109_v16 = vmul.f32 %v8337_v42, %v7308_v51  ;;  %v4157_v61 = vmul.f32 %v4427_v18, %v7310_v39  ;;  %v4382_v53 = vld [vmem:[#allocation4 + $0x189] sm:$0xff] }
 0x3b0   : > { %v4491_v55 = vadd.f32 %v4475_v0, %v7471_v33  ;;  %v4460_v3 = vadd.f32 %v4444_v57, %v4412_v23  ;;  %v4445_v14 = vmul.f32 %v4429_v28, %v7378_v20  ;;  %v4253_v59 = vmul.f32 %v4380_v47, %v7316_v32 }
 0x3b1   : > { %v4365_v38 = vadd.f32 %v4349_v15, %v4316_v24  ;;  %v4221_v7 = vadd.f32 %v4205_v21, %v4172_v60  ;;  %v4301_v5 = vmul.f32 %v4428_v41, %v7336_v17  ;;  %v4125_v12 = vadd.f32 %v4109_v16, %v4061_v52  ;;  %v4430_v60 = vld [vmem:[#allocation4 + $0x18a] sm:$0xff]  ;;  %v4335_v16 = vld [vmem:[#allocation4 + $0x198] sm:$0xff] }
 0x3b2   : > { %v4507_v50 = vmax.f32 %v4491_v55, 0.0  ;;  %v4476_v27 = vmul.f32 %v4460_v3, %v7459_v25  ;;  %v4062_v42 = vmul.f32 %v4332_v43, %v7306_v40  ;;  %v4110_v18 = vmul.f32 %v4380_v47, %v7308_v51 }
 0x3b3   : > { %v4413_v22 = vadd.f32 %v4397_v6, %v4365_v38  ;;  %v4269_v26 = vadd.f32 %v4253_v59, %v4221_v7  ;;  %v4350_v0 = vmul.f32 %v4334_v46, %v7348_v19  ;;  %v4173_v23 = vadd.f32 %v4157_v61, %v4125_v12  ;;  %v4383_v59 = vld [vmem:[#allocation4 + $0x199] sm:$0xff] }
 0x3b4   : > { %4597 = vrot.lane.b32.xlu0 %v4507_v50, %s5125_s17  ;;  %v4492_v21 = vadd.f32 %v4476_v27, %v7471_v33  ;;  %v4206_v57 = vmul.f32 %v4333_v37, %v7312_v8  ;;  %v4126_v52 = vadd.f32 %v4110_v18, %v4062_v42  ;;  %v4158_v6 = vmul.f32 %v4428_v41, %v7310_v39  ;;  %v4336_v12 = vld [vmem:[#allocation4 + $0x1a0] sm:$0xff] }
 0x3b5   : > { %v4461_v15 = vadd.f32 %v4445_v14, %v4413_v22  ;;  %v4317_v24 = vadd.f32 %v4301_v5, %v4269_v26  ;;  %v4398_v40 = vmul.f32 %v4382_v53, %v7368_v45  ;;  %v4254_v51 = vmul.f32 %v4381_v56, %v7316_v32 }
 0x3b6   : > { %v4508_v55 = vmax.f32 %v4492_v21, 0.0  ;;  %v4222_v43 = vadd.f32 %v4206_v57, %v4173_v23  ;;  %v4174_v38 = vadd.f32 %v4158_v6, %v4126_v52  ;;  %v4207_v61 = vmul.f32 %v4334_v46, %v7312_v8  ;;  %v4431_v46 = vld [vmem:[#allocation4 + $0x19a] sm:$0xff] }
 0x3b7   : > { %v4477_v47 = vmul.f32 %v4461_v15, %v7459_v25  ;;  %v4366_v3 = vadd.f32 %v4350_v0, %v4317_v24  ;;  %v4446_v37 = vmul.f32 %v4430_v60, %v7378_v20  ;;  %v4302_v39 = vmul.f32 %v4429_v28, %v7336_v17  ;;  %v4384_v21 = vld [vmem:[#allocation4 + $0x1a1] sm:$0xff] }
 0x3b8   : > { %4599 = vrot.lane.b32.xlu1 %v4508_v55, %s5125_s17  ;;  %v4270_v14 = vadd.f32 %v4254_v51, %v4222_v43  ;;  %v4223_v50 = vadd.f32 %v4207_v61, %v4174_v38  ;;  %v4255_v56 = vmul.f32 %v4382_v53, %v7316_v32  ;;  %v4351_v5 = vmul.f32 %v4335_v16, %v7348_v19  ;;  %v4432_v15 = vld [vmem:[#allocation4 + $0x1a2] sm:$0xff]  ;;  %v5099_v16 = vld [vmem:[%s5185_s30 + $0x28] sm:$0xff]  }
 0x3b9   : > { %v4493_v41 = vadd.f32 %v4477_v47, %v7471_v33  ;;  %v4414_v7 = vadd.f32 %v4398_v40, %v4366_v3  ;;  %v4303_v42 = vmul.f32 %v4430_v60, %v7336_v17  ;;  %v4399_v28 = vmul.f32 %v4383_v59, %v7368_v45  ;;  %v8764_v59 = vld [vmem:[#allocation5_spill] sm:$0xff] }
 0x3ba   : > { %v4318_v27 = vadd.f32 %v4302_v39, %v4270_v14  ;;  %v4271_v26 = vadd.f32 %v4255_v56, %v4223_v50  ;;  %v4352_v32 = vmul.f32 %v4336_v12, %v7348_v19  ;;  %v4447_v57 = vmul.f32 %v4431_v46, %v7378_v20  ;;  %v8762_v14 = vld [vmem:[#allocation21_spill] sm:$0xff] }
 0x3bb   : > { %v4509_v22 = vmax.f32 %v4493_v41, 0.0  ;;  %v4462_v8 = vadd.f32 %v4446_v37, %v4414_v7  ;;  %v4400_v17 = vmul.f32 %v4384_v21, %v7368_v45  ;;  %v4448_v40 = vmul.f32 %v4432_v15, %v7378_v20 }
 0x3bc   : > { %v4367_v18 = vadd.f32 %v4351_v5, %v4318_v27  ;;  %v4319_v23 = vadd.f32 %v4303_v42, %v4271_v26  ;;  %v4683_v38 = vunpack.c.l.bf16 %v5099_v16  ;;  %v4684_v37 = vunpack.c.h.bf16 %v5099_v16  ;;  %v5100_v27 = vld [vmem:[%s5185_s30 + $0x30] sm:$0xff]  }
 0x3bd   : > { %4601 = vrot.lane.b32.xlu0 %v4509_v22, %s5125_s17  ;;  %v4478_v0 = vmul.f32 %v4462_v8, %v7459_v25  ;;  %v8763_v39 = vmax.f32 %v8762_v14, 0.0  ;;  %v8765_v50 = vmax.f32 %v8764_v59, 0.0  ;;  %v4685_v5 = vunpack.c.l.bf16 %v5100_v27  ;;  %v8766_v22 = vld [vmem:[#allocation24_spill] sm:$0xff] }
 0x3be   : > { %v4415_v53 = vadd.f32 %v4399_v28, %v4367_v18  ;;  %v4368_v52 = vadd.f32 %v4352_v32, %v4319_v23  ;;  %v8767_v8 = vmax.f32 %v8766_v22, 0.0  ;;  %v4686_v42 = vunpack.c.h.bf16 %v5100_v27  ;;  %v8768_v28 = vld [vmem:[#allocation25_spill] sm:$0xff]  ;;  %v5101_v32 = vld [vmem:[%s5185_s30 + $0x38] sm:$0xff]  }
 0x3bf   : > { %v4494_v24 = vadd.f32 %v4478_v0, %v7471_v33  ;;  %v8769_v21 = vmax.f32 %v8768_v28, 0.0  ;;  %v4688_v15 = vunpack.c.h.bf16 %v5101_v32 }
 0x3c0   : > { %v4463_v60 = vadd.f32 %v4447_v57, %v4415_v53  ;;  %v4416_v55 = vadd.f32 %v4400_v17, %v4368_v52  ;;  %v4687_v53 = vunpack.c.l.bf16 %v5101_v32  ;;  %v8780_v32 = vmax.f32 %v7901_v1, 0.0 }
 0x3c1   : > { %v4510_v6 = vmax.f32 %v4494_v24, 0.0  ;;  %v8770_v24 = vld [vmem:[#allocation23_spill] sm:$0xff] }
 0x3c2   : > { %v4479_v43 = vmul.f32 %v4463_v60, %v7459_v25  ;;  %v4464_v19 = vadd.f32 %v4448_v40, %v4416_v55  ;;  %v8771_v52 = vmax.f32 %v8770_v24, 0.0  ;;  %v8772_v55 = vld [vmem:[#allocation6_spill] sm:$0xff] }
 0x3c3   : > { %4603 = vrot.lane.b32.xlu1 %v4510_v6, %s5125_s17  ;;  %v8773_v40 = vmax.f32 %v8772_v55, 0.0  ;;  %v8782_v55 = vmax.f32 %v8054_v58, 0.0 }
 0x3c4   : > { %v4495_v51 = vadd.f32 %v4479_v43, %v7471_v33  ;;  %v4480_v47 = vmul.f32 %v4464_v19, %v7459_v25 }
 0x3c5   : > { %v4566_v61 = vpop.permute.xlu0 %4565 }
 0x3c6   : > { %v4511_v3 = vmax.f32 %v4495_v51, 0.0  ;;  %v4496_v45 = vadd.f32 %v4480_v47, %v7471_v33  ;;  %v4651_v41 = vsel %vm268_vm6, %v8763_v39, %v4566_v61  ;;  %v5102_v51 = vld [vmem:[%s5185_s30 + $0x40] sm:$0xff]  }
 0x3c7   : > { %v4715_v25 = vadd.f32 %v4683_v38, %v4651_v41  ;;  %v4568_v7 = vpop.permute.xlu1 %4567  ;;  %v4689_v47 = vunpack.c.l.bf16 %v5102_v51  ;;  %v5103_v41 = vld [vmem:[%s5185_s30 + $0x48] sm:$0xff]  }
 0x3c8   : > { %4605 = vrot.lane.b32.xlu0 %v4511_v3, %s5125_s17  ;;  %v4512_v20 = vmax.f32 %v4496_v45, 0.0  ;;  %v4652_v33 = vsel %vm268_vm6, %v8765_v50, %v4568_v7  ;;  %v8774_v45 = vmax.f32 %v7786_v2, 0.0  ;;  %v4691_v2 = vunpack.c.l.bf16 %v5103_v41 }
 0x3c9   : > { %4747 = vst.msk [vmem:[%s7930_s21 + $0x50] sm:$0xff] %vm425_vm1, %v4715_v25  ;;  %v4716_v56 = vadd.f32 %v4684_v37, %v4652_v33  ;;  %v8775_v37 = vmax.f32 %v7796_v35, 0.0  ;;  %v8776_v7 = vmax.f32 %v7780_v10, 0.0  ;;  %v4692_v50 = vunpack.c.h.bf16 %v5103_v41 }
 0x3ca   : > { %4607 = vrot.lane.b32.xlu1 %v4512_v20, %s5125_s17  ;;  %v4690_v20 = vunpack.c.h.bf16 %v5102_v51  ;;  %v8777_v35 = vmax.f32 %v7791_v44, 0.0  ;;  %v8783_v51 = vmax.f32 %v8066_v62, 0.0 }
 0x3cb   : > { %4748 = vst.msk [vmem:[%s7930_s21 + $0x58] sm:$0xff] %vm425_vm1, %v4716_v56 }
 0x3ce   : > { %v4570_v12 = vpop.permute.xlu0 %4569 }
 0x3cf   : > { %v4653_v46 = vsel %vm268_vm6, %v8767_v8, %v4570_v12  ;;  %v5104_v12 = vld [vmem:[%s5185_s30 + $0x50] sm:$0xff]   ;;  %v8778_v8 = vmax.f32 %v7907_v4, 0.0 }
 0x3d0   : > { %v4717_v26 = vadd.f32 %v4685_v5, %v4653_v46  ;;  %v4693_v22 = vunpack.c.l.bf16 %v5104_v12 }
 0x3d1   : > { %v4572_v18 = vpop.permute.xlu1 %4571 }
 0x3d2   : > { %4749 = vst.msk [vmem:[%s7930_s21 + $0x60] sm:$0xff] %vm425_vm1, %v4717_v26  ;;  %v4654_v0 = vsel %vm268_vm6, %v8769_v21, %v4572_v18  ;;  %v8779_v18 = vmax.f32 %v7920_v63, 0.0  ;;  %v8781_v63 = vmax.f32 %v7913_v31, 0.0 }
 0x3d3   : > { %v4718_v23 = vadd.f32 %v4686_v42, %v4654_v0  ;;  %v4694_v42 = vunpack.c.h.bf16 %v5104_v12  ;;  %v5105_v0 = vld [vmem:[%s5185_s30 + $0x58] sm:$0xff]  }
 0x3d5   : > { %4750 = vst.msk [vmem:[%s7930_s21 + $0x68] sm:$0xff] %vm425_vm1, %v4718_v23  ;;  %v4695_v23 = vunpack.c.l.bf16 %v5105_v0 }
 0x3d8   : > { %v4574_v57 = vpop.permute.xlu0 %4573 }
 0x3d9   : > { %v4655_v17 = vsel %vm268_vm6, %v8771_v52, %v4574_v57 }
 0x3da   : > { %v4719_v60 = vadd.f32 %v4687_v53, %v4655_v17 }
 0x3db   : > { %v4576_v6 = vpop.permute.xlu1 %4575 }
 0x3dc   : > { %v4656_v43 = vsel %vm268_vm6, %v8773_v40, %v4576_v6  ;;  %4751 = vst.msk [vmem:[%s7930_s21 + $0x70] sm:$0xff] %vm425_vm1, %v4719_v60  ;;  %v5106_v60 = vld [vmem:[%s5185_s30 + $0x60] sm:$0xff]  }
 0x3dd   : > { %v4720_v19 = vadd.f32 %v4688_v15, %v4656_v43  ;;  %v4696_v15 = vunpack.c.h.bf16 %v5105_v0  ;;  %v4697_v6 = vunpack.c.l.bf16 %v5106_v60 }
 0x3df   : > { %4752 = vst.msk [vmem:[%s7930_s21 + $0x78] sm:$0xff] %vm425_vm1, %v4720_v19  ;;  %v4698_v19 = vunpack.c.h.bf16 %v5106_v60 }
 0x3e3   : > { %v4578_v3 = vpop.permute.xlu0 %4577 }
 0x3e4   : > { %v4657_v16 = vsel %vm268_vm6, %v8774_v45, %v4578_v3  ;;  %v5107_v45 = vld [vmem:[%s5185_s30 + $0x68] sm:$0xff]  }
 0x3e5   : > { %v4721_v38 = vadd.f32 %v4689_v47, %v4657_v16  ;;  %v4699_v16 = vunpack.c.l.bf16 %v5107_v45 }
 0x3e7   : > { %4753 = vst.msk [vmem:[%s7930_s21 + $0x80] sm:$0xff] %vm425_vm1, %v4721_v38  ;;  %v8784_v38 = vmax.f32 %v8050_v11, 0.0 }
 0x3ed   : > { %v4580_v61 = vpop.permute.xlu1 %4579 }
 0x3ee   : > { %v4658_v14 = vsel %vm268_vm6, %v8775_v37, %v4580_v61  ;;  %v4700_v37 = vunpack.c.h.bf16 %v5107_v45 }
 0x3ef   : > { %v4722_v39 = vadd.f32 %v4690_v20, %v4658_v14  ;;  %v8785_v14 = vmax.f32 %v8059_v13, 0.0 }
 0x3f1   : > { %4754 = vst.msk [vmem:[%s7930_s21 + $0x88] sm:$0xff] %vm425_vm1, %v4722_v39 }
 0x3f5   : > { %v4582_v25 = vpop.permute.xlu0 %4581 }
 0x3f6   : > { %v4659_v59 = vsel %vm268_vm6, %v8776_v7, %v4582_v25 }
 0x3f7   : > { %v4723_v33 = vadd.f32 %v4691_v2, %v4659_v59  ;;  %v5108_v2 = vld [vmem:[%s5185_s30 + $0x70] sm:$0xff]  }
 0x3f8   : > { %v4584_v56 = vpop.permute.xlu1 %4583  ;;  %v4701_v25 = vunpack.c.l.bf16 %v5108_v2 }
 0x3f9   : > { %4755 = vst.msk [vmem:[%s7930_s21 + $0x90] sm:$0xff] %vm425_vm1, %v4723_v33  ;;  %v4660_v27 = vsel %vm268_vm6, %v8777_v35, %v4584_v56  ;;  %v5109_v35 = vld [vmem:[%s5185_s30 + $0x78] sm:$0xff]  }
 0x3fa   : > { %v4724_v5 = vadd.f32 %v4692_v50, %v4660_v27  ;;  %v4702_v50 = vunpack.c.h.bf16 %v5108_v2  ;;  %v4703_v27 = vunpack.c.l.bf16 %v5109_v35 }
 0x3fc   : > { %4756 = vst.msk [vmem:[%s7930_s21 + $0x98] sm:$0xff] %vm425_vm1, %v4724_v5 }
 0x402   : > { %v4586_v10 = vpop.permute.xlu0 %4585 }
 0x403   : > { %v4661_v46 = vsel %vm268_vm6, %v8778_v8, %v4586_v10 }
 0x404   : > { %v4725_v26 = vadd.f32 %v4693_v22, %v4661_v46 }
 0x406   : > { %4757 = vst.msk [vmem:[%s7930_s21 + $0xa0] sm:$0xff] %vm425_vm1, %v4725_v26 }
 0x408   : > { %v4588_v44 = vpop.permute.xlu1 %4587 }
 0x409   : > { %v4662_v28 = vsel %vm268_vm6, %v8779_v18, %v4588_v44 }
 0x40a   : > { %v4726_v21 = vadd.f32 %v4694_v42, %v4662_v28 }
 0x40c   : > { %4758 = vst.msk [vmem:[%s7930_s21 + $0xa8] sm:$0xff] %vm425_vm1, %v4726_v21 }
 0x410   : > { %v4590_v4 = vpop.permute.xlu0 %4589 }
 0x411   : > { %v4663_v53 = vsel %vm268_vm6, %v8780_v32, %v4590_v4 }
 0x412   : > { %v4727_v57 = vadd.f32 %v4695_v23, %v4663_v53 }
 0x414   : > { %4759 = vst.msk [vmem:[%s7930_s21 + $0xb0] sm:$0xff] %vm425_vm1, %v4727_v57 }
 0x417   : > { %v4592_v24 = vpop.permute.xlu1 %4591 }
 0x418   : > { %v4664_v52 = vsel %vm268_vm6, %v8781_v63, %v4592_v24 }
 0x419   : > { %v4728_v17 = vadd.f32 %v4696_v15, %v4664_v52 }
 0x41b   : > { %4760 = vst.msk [vmem:[%s7930_s21 + $0xb8] sm:$0xff] %vm425_vm1, %v4728_v17 }
 0x41d   : > { %v4594_v1 = vpop.permute.xlu0 %4593 }
 0x41e   : > { %v4665_v40 = vsel %vm268_vm6, %v8782_v55, %v4594_v1 }
 0x41f   : > { %v4729_v43 = vadd.f32 %v4697_v6, %v4665_v40 }
 0x420   : > { %v4596_v31 = vpop.permute.xlu1 %4595 }
 0x421   : > { %4761 = vst.msk [vmem:[%s7930_s21 + $0xc0] sm:$0xff] %vm425_vm1, %v4729_v43  ;;  %v4666_v47 = vsel %vm268_vm6, %v8783_v51, %v4596_v31 }
 0x422   : > { %v4730_v3 = vadd.f32 %v4698_v19, %v4666_v47 }
 0x424   : > { %4762 = vst.msk [vmem:[%s7930_s21 + $0xc8] sm:$0xff] %vm425_vm1, %v4730_v3 }
 0x426   : > { %v4598_v58 = vpop.permute.xlu0 %4597 }
 0x427   : > { %v4667_v20 = vsel %vm268_vm6, %v8784_v38, %v4598_v58 }
 0x428   : > { %v4731_v61 = vadd.f32 %v4699_v16, %v4667_v20 }
 0x42a   : > { %4763 = vst.msk [vmem:[%s7930_s21 + $0xd0] sm:$0xff] %vm425_vm1, %v4731_v61  ;;  %v4600_v62 = vpop.permute.xlu1 %4599 }
 0x42b   : > { %v4668_v39 = vsel %vm268_vm6, %v8785_v14, %v4600_v62 }
 0x42c   : > { %v4732_v41 = vadd.f32 %v4700_v37, %v4668_v39 }
 0x42e   : > { %4764 = vst.msk [vmem:[%s7930_s21 + $0xd8] sm:$0xff] %vm425_vm1, %v4732_v41 }
 0x42f   : > { %v4602_v7 = vpop.permute.xlu0 %4601 }
 0x430   : > { %v4669_v11 = vsel %vm268_vm6, %v3414_v54, %v4602_v7  ;;  %v4704_v54 = vunpack.c.h.bf16 %v5109_v35 }
 0x431   : > { %v4733_v59 = vadd.f32 %v4701_v25, %v4669_v11 }
 0x433   : > { %4765 = vst.msk [vmem:[%s7930_s21 + $0xe0] sm:$0xff] %vm425_vm1, %v4733_v59 }
 0x435   : > { %v4604_v13 = vpop.permute.xlu1 %4603 }
 0x436   : > { %v4670_v33 = vsel %vm268_vm6, %v3415_v9, %v4604_v13 }
 0x437   : > { %v4734_v56 = vadd.f32 %v4702_v50, %v4670_v33 }
 0x439   : > { %4766 = vst.msk [vmem:[%s7930_s21 + $0xe8] sm:$0xff] %vm425_vm1, %v4734_v56 }
 0x43a   : > { %v4606_v5 = vpop.permute.xlu0 %4605 }
 0x43b   : > { %v4671_v49 = vsel %vm268_vm6, %v3416_v30, %v4606_v5 }
 0x43c   : > { %v4735_v12 = vadd.f32 %v4703_v27, %v4671_v49  ;;  %v4608_v22 = vpop.permute.xlu1 %4607 }
 0x43d   : > { %v4672_v29 = vsel %vm268_vm6, %v3417_v34, %v4608_v22 }
 0x43e   : > { %4767 = vst.msk [vmem:[%s7930_s21 + $0xf0] sm:$0xff] %vm425_vm1, %v4735_v12  ;;  %v4736_v9 = vadd.f32 %v4704_v54, %v4672_v29 }
 0x440   : > { %4768 = vst.msk [vmem:[%s7930_s21 + $0xf8] sm:$0xff] %vm425_vm1, %v4736_v9 }
 0x441 PF: > { %s15_s18 = sadd.s32 1, %s5116_s18  }
 0x442   : > { %p12_p4 = scmp.ge.s32.totalorder %s15_s18, 4  }
 0x444   :  { %14 = sbr.rel (!%p12_p4) target bundleno = 1 (0x1), region = 82 }

</bundles_post_ra>
